<compile_context>
chip_gen: v7x
topology: tpu7x:2x2x1
jax: 0.10.0
libtpu: 0.0.40
codegen_flags: <defaults>
</compile_context>

<pallas_src>
import functools

import jax
import jax.numpy as jnp
from jax.experimental import pallas as pl
from jax.experimental.pallas import tpu as pltpu

NEG_SLOPE = 0.2          # LeakyReLU slope
EPS = 1e-5               # InstanceNorm2d default eps
KW = 4                   # discriminator kernel size
PADW = 2                 # int(ceil((4-1)/2))
LANES = 128
ROW_BLOCK_TARGET_BYTES = 2 * 1024 * 1024


def _round_up(x, m):
    return ((x + m - 1) // m) * m


@functools.lru_cache(maxsize=None)
def _vmem_limit_bytes():
    """Generation-aware scoped-VMEM limit (96 MiB on v5e/v6e, 48 MiB on v7x)."""
    try:
        cap = int(getattr(pltpu.get_tpu_info(), "vmem_capacity_bytes", 0))
    except Exception:
        cap = 0
    if cap >= 100 * 1024 * 1024:          # v5e / v6e: 128 MiB physical
        return 96 * 1024 * 1024
    if cap > 0:                           # v7x: 64 MiB physical
        return 48 * 1024 * 1024
    return 32 * 1024 * 1024               # safe default


def _choose_row_block(oh, per_row_bytes):
    """Output rows per block (~2 MiB blocks, balanced so padding is minimal)."""
    rb = max(1, min(oh, ROW_BLOCK_TARGET_BYTES // max(per_row_bytes, 1)))
    nb = pl.cdiv(oh, rb)
    return pl.cdiv(oh, nb)


# ----------------------------------------------------------------------------
# Pallas kernels (shifted-matmul conv; stride already folded away in glue)
# ----------------------------------------------------------------------------
def _conv_rows_kernel(k_sz, use_bias, apply_lrelu, *refs):
    """Conv [+bias] [+LeakyReLU] for one (image, output-row-block).

    x_ref: (1, HT, WT, Cp)   whole padded/transformed input image (bf16)
    w_ref: (k_sz*k_sz, Cp, Cpad) weights per shift (bf16)
    b_ref: (1, Cpad) f32 bias (optional)
    o_ref: (1, RB, OW, Cpad) output row block
    """
    if use_bias:
        x_ref, w_ref, b_ref, o_ref = refs
    else:
        x_ref, w_ref, o_ref = refs
    _, RB, OW, Cpad = o_ref.shape
    row0 = pl.program_id(1) * RB

    def row_body(r, carry):
        R = row0 + r
        acc = jnp.zeros((OW, Cpad), jnp.float32)
        for di in range(k_sz):
            for dj in range(k_sz):
                xs = x_ref[0, R + di, pl.ds(dj, OW), :]          # (OW, Cp)
                acc += jnp.dot(xs, w_ref[di * k_sz + dj],
                               preferred_element_type=jnp.float32)
        if use_bias:
            acc = acc + b_ref[...]
        if apply_lrelu:
            acc = jnp.maximum(acc, NEG_SLOPE * acc)
        o_ref[0, r] = acc.astype(o_ref.dtype)
        return carry

    jax.lax.fori_loop(0, RB, row_body, 0)


def _conv_inorm_kernel(k_sz, x_ref, w_ref, o_ref):
    """Conv + InstanceNorm2d(affine=False) + LeakyReLU fused, one image.

    Pass 1 computes conv rows (f32), writes them (bf16) and accumulates
    per-channel sum / sum-of-squares.  Pass 2 normalizes in place.
    Zero-padded output channels stay exactly 0 through the normalization
    (zero weights -> zero sums -> mean 0, var 0 -> 0 * rsqrt(eps) = 0).
    """
    _, OH, OW, Cpad = o_ref.shape

    def row_body(r, carry):
        s, ss = carry
        acc = jnp.zeros((OW, Cpad), jnp.float32)
        for di in range(k_sz):
            for dj in range(k_sz):
                xs = x_ref[0, r + di, pl.ds(dj, OW), :]          # (OW, Cp)
                acc += jnp.dot(xs, w_ref[di * k_sz + dj],
                               preferred_element_type=jnp.float32)
        o_ref[0, r] = acc.astype(o_ref.dtype)
        s = s + jnp.sum(acc, axis=0, keepdims=True)
        ss = ss + jnp.sum(acc * acc, axis=0, keepdims=True)
        return (s, ss)

    init = (jnp.zeros((1, Cpad), jnp.float32),
            jnp.zeros((1, Cpad), jnp.float32))
    s, ss = jax.lax.fori_loop(0, OH, row_body, init)

    inv_n = 1.0 / float(OH * OW)
    mean = s * inv_n
    var = jnp.maximum(ss * inv_n - mean * mean, 0.0)
    scale = jax.lax.rsqrt(var + EPS)

    def norm_body(r, carry):
        v = o_ref[0, r].astype(jnp.float32)
        z = (v - mean) * scale
        o_ref[0, r] = jnp.maximum(z, NEG_SLOPE * z).astype(o_ref.dtype)
        return carry

    jax.lax.fori_loop(0, OH, norm_body, 0)


# ----------------------------------------------------------------------------
# pallas_call wrappers
# ----------------------------------------------------------------------------
def conv_rows_call(xT, wT, bias, k_sz, OH, OW, apply_lrelu, out_dtype):
    """xT: (N,HT,WT,Cp) bf16, wT: (KK,Cp,Cpad) bf16 -> (N, OH_pad, OW, Cpad)."""
    N = xT.shape[0]
    KK, Cp, Cpad = wT.shape
    itemsize = jnp.dtype(out_dtype).itemsize
    RB = _choose_row_block(OH, OW * Cpad * itemsize)
    nblocks = pl.cdiv(OH, RB)
    OH_pad = nblocks * RB
    if OH_pad > OH:                              # extra rows read zero padding
        xT = jnp.pad(xT, ((0, 0), (0, OH_pad - OH), (0, 0), (0, 0)))
    _, HT, WT, _ = xT.shape

    use_bias = bias is not None
    kern = functools.partial(_conv_rows_kernel, k_sz, use_bias, apply_lrelu)

    in_specs = [
        pl.BlockSpec((1, HT, WT, Cp), lambda n, r: (n, 0, 0, 0)),     # image-resident
        pl.BlockSpec((KK, Cp, Cpad), lambda n, r: (0, 0, 0)),         # weights resident
    ]
    args = [xT, wT]
    if use_bias:
        in_specs.append(pl.BlockSpec((1, Cpad), lambda n, r: (0, 0)))
        args.append(bias)

    flops = 2 * N * OH_pad * OW * KK * Cp * Cpad
    bytes_accessed = (xT.size * xT.dtype.itemsize + wT.size * wT.dtype.itemsize
                      + N * OH_pad * OW * Cpad * itemsize
                      + (bias.size * 4 if use_bias else 0))

    return pl.pallas_call(
        kern,
        out_shape=jax.ShapeDtypeStruct((N, OH_pad, OW, Cpad), out_dtype),
        grid=(N, nblocks),
        in_specs=in_specs,
        out_specs=pl.BlockSpec((1, RB, OW, Cpad), lambda n, r: (n, r, 0, 0)),
        compiler_params=pltpu.CompilerParams(
            dimension_semantics=("parallel", "parallel"),
            vmem_limit_bytes=_vmem_limit_bytes()),
        cost_estimate=pl.CostEstimate(flops=flops, transcendentals=0,
                                      bytes_accessed=bytes_accessed),
    )(*args)


def conv_inorm_call(xT, wT, k_sz, OH, OW, out_dtype):
    """xT: (N,HT,WT,Cp) bf16, wT: (KK,Cp,Cpad) bf16 -> (N, OH, OW, Cpad)."""
    N, HT, WT, Cp = xT.shape
    KK, _, Cpad = wT.shape
    kern = functools.partial(_conv_inorm_kernel, k_sz)

    flops = 2 * N * OH * OW * KK * Cp * Cpad
    bytes_accessed = (xT.size * xT.dtype.itemsize + wT.size * wT.dtype.itemsize
                      + N * OH * OW * Cpad * jnp.dtype(out_dtype).itemsize)

    return pl.pallas_call(
        kern,
        out_shape=jax.ShapeDtypeStruct((N, OH, OW, Cpad), out_dtype),
        grid=(N,),
        in_specs=[
            pl.BlockSpec((1, HT, WT, Cp), lambda n: (n, 0, 0, 0)),
            pl.BlockSpec((KK, Cp, Cpad), lambda n: (0, 0, 0)),
        ],
        out_specs=pl.BlockSpec((1, OH, OW, Cpad), lambda n: (n, 0, 0, 0)),
        compiler_params=pltpu.CompilerParams(
            dimension_semantics=("parallel",),
            vmem_limit_bytes=_vmem_limit_bytes()),
        cost_estimate=pl.CostEstimate(flops=flops, transcendentals=N * Cpad,
                                      bytes_accessed=bytes_accessed),
    )(xT, wT)


# ----------------------------------------------------------------------------
# Glue: stride folding (pad + space-to-depth), weight reshaping, composition
# ----------------------------------------------------------------------------
def _transform_input(x, stride):
    """Pad (k=4, pad=2); for stride 2 apply a 2x2 space-to-depth so the conv
    becomes an equivalent stride-1 conv with k'=2 and 4*Cin channels.
    Returns (xT, k', OH, OW) with xT rows = OH - 1 + k' exactly."""
    N, H, W, C = x.shape
    xp = jnp.pad(x, ((0, 0), (PADW, PADW), (PADW, PADW), (0, 0)))
    Hp, Wp = H + 2 * PADW, W + 2 * PADW
    OH = (Hp - KW) // stride + 1
    OW = (Wp - KW) // stride + 1
    if stride == 1:
        return xp, KW, OH, OW
    # stride == 2
    A, B = OH + 1, OW + 1
    xp = xp[:, :2 * A, :2 * B, :]
    xT = (xp.reshape(N, A, 2, B, 2, C)
            .transpose(0, 1, 3, 2, 4, 5)       # (N, A, B, p, q, c)
            .reshape(N, A, B, 4 * C))
    return xT, 2, OH, OW


def _transform_weight(w, stride, Cpad):
    """Torch (Cout, Cin, 4, 4) -> (k'*k', C', Cpad) bf16 matching _transform_input."""
    Cout, Cin, kh, kw = w.shape
    if stride == 1:
        wm = jnp.transpose(w, (2, 3, 1, 0)).reshape(kh * kw, Cin, Cout)
    else:
        # kernel index i = 2*di + p, j = 2*dj + q; channel order (p, q, c)
        w6 = w.reshape(Cout, Cin, 2, 2, 2, 2)             # (cout, c, di, p, dj, q)
        wm = jnp.transpose(w6, (2, 4, 3, 5, 1, 0)).reshape(4, 4 * Cin, Cout)
    wm = jnp.pad(wm, ((0, 0), (0, 0), (0, Cpad - Cout)))  # zero-pad lanes
    return wm.astype(jnp.bfloat16)


def conv_layer(x_nhwc, w, b, stride, *, fuse_norm, apply_lrelu, out_dtype):
    """Conv2d(k=4, pad=2) [+bias] [+InstanceNorm] [+LeakyReLU] -> NHWC out."""
    Cout = w.shape[0]
    Cpad = _round_up(Cout, LANES)

    xT, k_sz, OH, OW = _transform_input(x_nhwc.astype(jnp.bfloat16), stride)
    wT = _transform_weight(w, stride, Cpad)

    if fuse_norm:
        y = conv_inorm_call(xT, wT, k_sz, OH, OW, out_dtype)     # (N, OH, OW, Cpad)
        return y[..., :Cout]

    bias = None
    if b is not None:
        bias = jnp.pad(b.astype(jnp.float32).reshape(1, Cout),
                       ((0, 0), (0, Cpad - Cout)))
    y = conv_rows_call(xT, wT, bias, k_sz, OH, OW, apply_lrelu, out_dtype)
    return y[:, :OH, :, :Cout]                                   # drop row/lane pad


# ----------------------------------------------------------------------------
# NLayerDiscriminator: params + forward
# ----------------------------------------------------------------------------
def init_params(key, input_nc, ndf, n_layers):
    params = []

    def nxt():
        nonlocal key
        key, sub = jax.random.split(key)
        return sub

    # layer 0: Conv(input_nc -> ndf, stride 2, bias) + LeakyReLU
    params.append((jax.random.normal(nxt(), (ndf, input_nc, KW, KW), jnp.float32) * 0.05,
                   jax.random.normal(nxt(), (ndf,), jnp.float32) * 0.05))
    nf_mult = 1
    for n in range(1, n_layers):
        nf_prev, nf_mult = nf_mult, min(2 ** n, 8)
        params.append((jax.random.normal(nxt(), (ndf * nf_mult, ndf * nf_prev, KW, KW),
                                         jnp.float32) * 0.05, None))
    nf_prev, nf_mult = nf_mult, min(2 ** n_layers, 8)
    params.append((jax.random.normal(nxt(), (ndf * nf_mult, ndf * nf_prev, KW, KW),
                                     jnp.float32) * 0.05, None))
    # final: Conv(ndf*nf_mult -> 1, stride 1, bias), no activation (use_sigmoid=False)
    params.append((jax.random.normal(nxt(), (1, ndf * nf_mult, KW, KW), jnp.float32) * 0.05,
                   jax.random.normal(nxt(), (1,), jnp.float32) * 0.05))
    return params


def nlayer_discriminator_forward(x, params, n_layers=3):
    # NCHW -> NHWC once; carry activations in bf16.
    h = jnp.transpose(x, (0, 2, 3, 1)).astype(jnp.bfloat16)

    # layer 0: conv(stride 2, bias) + LeakyReLU
    w, b = params[0]
    h = conv_layer(h, w, b, stride=2, fuse_norm=False, apply_lrelu=True,
                   out_dtype=jnp.bfloat16)

    idx = 1
    # middle layers: conv(stride 2, no bias) + InstanceNorm + LeakyReLU (fused)
    for _ in range(1, n_layers):
        w, _ = params[idx]; idx += 1
        h = conv_layer(h, w, None, stride=2, fuse_norm=True, apply_lrelu=False,
                       out_dtype=jnp.bfloat16)

    # stride-1 layer: conv(no bias) + InstanceNorm + LeakyReLU (fused)
    w, _ = params[idx]; idx += 1
    h = conv_layer(h, w, None, stride=1, fuse_norm=True, apply_lrelu=False,
                   out_dtype=jnp.bfloat16)

    # final conv: stride 1, bias, no activation (use_sigmoid=False)
    w, b = params[idx]
    y = conv_layer(h, w, b, stride=1, fuse_norm=False, apply_lrelu=False,
                   out_dtype=jnp.float32)                        # (N, OH, OW, 1)

    return jnp.transpose(y, (0, 3, 1, 2))                        # back to NCHW


# ----------------------------------------------------------------------------
if __name__ == "__main__":
    key = jax.random.PRNGKey(0)
    k_in, k_par = jax.random.split(key)

    # small, module-consistent shapes: batch=2, input_nc=4, 16x16 spatial, ndf=8
    N, INPUT_NC, H, W = 2, 4, 16, 16
    NDF, N_LAYERS = 8, 3

    x = jax.random.normal(k_in, (N, INPUT_NC, H, W), jnp.float32)
    params = init_params(k_par, INPUT_NC, NDF, N_LAYERS)

    fwd = jax.jit(functools.partial(nlayer_discriminator_forward, n_layers=N_LAYERS))
    out = fwd(x, params)
    jax.block_until_ready(out)

    assert out.shape == (N, 1, 5, 5), out.shape   # 16 -> 9 -> 5 -> 3 -> 4 -> 5
    assert bool(jnp.all(jnp.isfinite(out)))
    print("KERNEL_OK")
</pallas_src>

<mosaic_0001>
module attributes {stable_mosaic.version = 11 : i64} {
  func.func @_conv_rows_kernel(%arg0: i32, %arg1: i32, %arg2: memref<1x10x10x16xbf16, #tpu.memory_space<vmem>>, %arg3: memref<4x16x128xbf16, #tpu.memory_space<vmem>>, %arg4: memref<1x128xf32, #tpu.memory_space<vmem>>, %arg5: memref<1x9x9x128xbf16, #tpu.memory_space<vmem>>) attributes {dimension_semantics = [#tpu.dimension_semantics<parallel>, #tpu.dimension_semantics<parallel>], iteration_bounds = array<i64: 2, 1>, scalar_prefetch = 0 : i64, scratch_operands = 0 : i64, tpu.core_type = #tpu.core_type<tc>, window_params = [{transform_indices = @transform_0, window_bounds = array<i64: 1, 10, 10, 16>}, {pipeline_mode = #tpu.pipeline_mode<synchronous>, transform_indices = @transform_1, window_bounds = array<i64: 4, 16, 128>}, {pipeline_mode = #tpu.pipeline_mode<synchronous>, transform_indices = @transform_2, window_bounds = array<i64: 1, 128>}, {transform_indices = @transform_3, window_bounds = array<i64: 1, 9, 9, 128>}]} {
    %c9_i32 = arith.constant 9 : i32
    %0 = arith.muli %arg1, %c9_i32 : i32
    %c0_i32 = arith.constant 0 : i32
    %c9_i32_0 = arith.constant 9 : i32
    %1 = arith.addi %c0_i32, %c9_i32_0 : i32
    %c1_i32 = arith.constant 1 : i32
    scf.for %arg6 = %c0_i32 to %1 step %c1_i32  : i32 {
      %2 = arith.addi %0, %arg6 : i32
      %cst = arith.constant 0.000000e+00 : f32
      %3 = vector.broadcast %cst : f32 to vector<9x128xf32>
      %c0_i32_2 = arith.constant 0 : i32
      %4 = arith.addi %2, %c0_i32_2 : i32
      %c0 = arith.constant 0 : index
      %5 = arith.index_cast %4 : i32 to index
      %c0_3 = arith.constant 0 : index
      %c0_4 = arith.constant 0 : index
      %6 = vector.load %arg2[%c0, %5, %c0_3, %c0_4] : memref<1x10x10x16xbf16, #tpu.memory_space<vmem>>, vector<1x1x9x16xbf16>
      %7 = vector.shape_cast %6 : vector<1x1x9x16xbf16> to vector<9x16xbf16>
      %c0_5 = arith.constant 0 : index
      %c0_6 = arith.constant 0 : index
      %c0_7 = arith.constant 0 : index
      %8 = vector.load %arg3[%c0_5, %c0_6, %c0_7] : memref<4x16x128xbf16, #tpu.memory_space<vmem>>, vector<1x16x128xbf16>
      %9 = vector.shape_cast %8 : vector<1x16x128xbf16> to vector<16x128xbf16>
      %cst_8 = arith.constant dense<0.000000e+00> : vector<9x128xf32>
      %10 = tpu.matmul %7, %9, %cst_8 {dimension_numbers = #tpu.dot_dimension_numbers<[1], [0], [0], [1], [0, 0, 1, 1], [], []>} : vector<9x16xbf16>, vector<16x128xbf16>, vector<9x128xf32> -> vector<9x128xf32>
      %11 = arith.addf %3, %10 : vector<9x128xf32>
      %c0_i32_9 = arith.constant 0 : i32
      %12 = arith.addi %2, %c0_i32_9 : i32
      %c0_10 = arith.constant 0 : index
      %13 = arith.index_cast %12 : i32 to index
      %c1 = arith.constant 1 : index
      %c0_11 = arith.constant 0 : index
      %14 = vector.load %arg2[%c0_10, %13, %c1, %c0_11] : memref<1x10x10x16xbf16, #tpu.memory_space<vmem>>, vector<1x1x9x16xbf16>
      %15 = vector.shape_cast %14 : vector<1x1x9x16xbf16> to vector<9x16xbf16>
      %c1_12 = arith.constant 1 : index
      %c0_13 = arith.constant 0 : index
      %c0_14 = arith.constant 0 : index
      %16 = vector.load %arg3[%c1_12, %c0_13, %c0_14] : memref<4x16x128xbf16, #tpu.memory_space<vmem>>, vector<1x16x128xbf16>
      %17 = vector.shape_cast %16 : vector<1x16x128xbf16> to vector<16x128xbf16>
      %cst_15 = arith.constant dense<0.000000e+00> : vector<9x128xf32>
      %18 = tpu.matmul %15, %17, %cst_15 {dimension_numbers = #tpu.dot_dimension_numbers<[1], [0], [0], [1], [0, 0, 1, 1], [], []>} : vector<9x16xbf16>, vector<16x128xbf16>, vector<9x128xf32> -> vector<9x128xf32>
      %19 = arith.addf %11, %18 : vector<9x128xf32>
      %c1_i32_16 = arith.constant 1 : i32
      %20 = arith.addi %2, %c1_i32_16 : i32
      %c0_17 = arith.constant 0 : index
      %21 = arith.index_cast %20 : i32 to index
      %c0_18 = arith.constant 0 : index
      %c0_19 = arith.constant 0 : index
      %22 = vector.load %arg2[%c0_17, %21, %c0_18, %c0_19] : memref<1x10x10x16xbf16, #tpu.memory_space<vmem>>, vector<1x1x9x16xbf16>
      %23 = vector.shape_cast %22 : vector<1x1x9x16xbf16> to vector<9x16xbf16>
      %c2 = arith.constant 2 : index
      %c0_20 = arith.constant 0 : index
      %c0_21 = arith.constant 0 : index
      %24 = vector.load %arg3[%c2, %c0_20, %c0_21] : memref<4x16x128xbf16, #tpu.memory_space<vmem>>, vector<1x16x128xbf16>
      %25 = vector.shape_cast %24 : vector<1x16x128xbf16> to vector<16x128xbf16>
      %cst_22 = arith.constant dense<0.000000e+00> : vector<9x128xf32>
      %26 = tpu.matmul %23, %25, %cst_22 {dimension_numbers = #tpu.dot_dimension_numbers<[1], [0], [0], [1], [0, 0, 1, 1], [], []>} : vector<9x16xbf16>, vector<16x128xbf16>, vector<9x128xf32> -> vector<9x128xf32>
      %27 = arith.addf %19, %26 : vector<9x128xf32>
      %c1_i32_23 = arith.constant 1 : i32
      %28 = arith.addi %2, %c1_i32_23 : i32
      %c0_24 = arith.constant 0 : index
      %29 = arith.index_cast %28 : i32 to index
      %c1_25 = arith.constant 1 : index
      %c0_26 = arith.constant 0 : index
      %30 = vector.load %arg2[%c0_24, %29, %c1_25, %c0_26] : memref<1x10x10x16xbf16, #tpu.memory_space<vmem>>, vector<1x1x9x16xbf16>
      %31 = vector.shape_cast %30 : vector<1x1x9x16xbf16> to vector<9x16xbf16>
      %c3 = arith.constant 3 : index
      %c0_27 = arith.constant 0 : index
      %c0_28 = arith.constant 0 : index
      %32 = vector.load %arg3[%c3, %c0_27, %c0_28] : memref<4x16x128xbf16, #tpu.memory_space<vmem>>, vector<1x16x128xbf16>
      %33 = vector.shape_cast %32 : vector<1x16x128xbf16> to vector<16x128xbf16>
      %cst_29 = arith.constant dense<0.000000e+00> : vector<9x128xf32>
      %34 = tpu.matmul %31, %33, %cst_29 {dimension_numbers = #tpu.dot_dimension_numbers<[1], [0], [0], [1], [0, 0, 1, 1], [], []>} : vector<9x16xbf16>, vector<16x128xbf16>, vector<9x128xf32> -> vector<9x128xf32>
      %35 = arith.addf %27, %34 : vector<9x128xf32>
      %c0_30 = arith.constant 0 : index
      %c0_31 = arith.constant 0 : index
      %36 = vector.load %arg4[%c0_30, %c0_31] : memref<1x128xf32, #tpu.memory_space<vmem>>, vector<1x128xf32>
      %37 = vector.broadcast %36 : vector<1x128xf32> to vector<9x128xf32>
      %38 = arith.addf %35, %37 : vector<9x128xf32>
      %cst_32 = arith.constant 2.000000e-01 : f32
      %39 = vector.broadcast %cst_32 : f32 to vector<9x128xf32>
      %40 = arith.mulf %39, %38 : vector<9x128xf32>
      %41 = arith.maximumf %38, %40 : vector<9x128xf32>
      %42 = arith.truncf %41 : vector<9x128xf32> to vector<9x128xbf16>
      %c0_33 = arith.constant 0 : index
      %43 = arith.index_cast %arg6 : i32 to index
      %c0_34 = arith.constant 0 : index
      %c0_35 = arith.constant 0 : index
      %44 = vector.load %arg5[%c0_33, %43, %c0_34, %c0_35] : memref<1x9x9x128xbf16, #tpu.memory_space<vmem>>, vector<1x1x9x128xbf16>
      %45 = vector.shape_cast %44 : vector<1x1x9x128xbf16> to vector<9x128xbf16>
      %46 = vector.shape_cast %42 : vector<9x128xbf16> to vector<1x1x9x128xbf16>
      tpu.vector_store %arg5[%c0_33, %43, %c0_34, %c0_35], %46 {strides = array<i32>} : memref<1x9x9x128xbf16, #tpu.memory_space<vmem>>, vector<1x1x9x128xbf16>,
    }
    %c9_i32_1 = arith.constant 9 : i32
    return
  }
  func.func @transform_0(%arg0: i32, %arg1: i32) -> (i32, i32, i32, i32) {
    %c0_i32 = arith.constant 0 : i32
    %c0_i32_0 = arith.constant 0 : i32
    %c0_i32_1 = arith.constant 0 : i32
    %c0_i32_2 = arith.constant 0 : i32
    return %arg0, %c0_i32, %c0_i32_0, %c0_i32_1 : i32, i32, i32, i32
  }
  func.func @transform_1(%arg0: i32, %arg1: i32) -> (i32, i32, i32) {
    %c0_i32 = arith.constant 0 : i32
    %c0_i32_0 = arith.constant 0 : i32
    %c0_i32_1 = arith.constant 0 : i32
    %c0_i32_2 = arith.constant 0 : i32
    return %c0_i32, %c0_i32_0, %c0_i32_1 : i32, i32, i32
  }
  func.func @transform_2(%arg0: i32, %arg1: i32) -> (i32, i32) {
    %c0_i32 = arith.constant 0 : i32
    %c0_i32_0 = arith.constant 0 : i32
    %c0_i32_1 = arith.constant 0 : i32
    return %c0_i32, %c0_i32_0 : i32, i32
  }
  func.func @transform_3(%arg0: i32, %arg1: i32) -> (i32, i32, i32, i32) {
    %c0_i32 = arith.constant 0 : i32
    %c0_i32_0 = arith.constant 0 : i32
    %c0_i32_1 = arith.constant 0 : i32
    return %arg0, %arg1, %c0_i32, %c0_i32_0 : i32, i32, i32, i32
  }
}

module attributes {stable_mosaic.version = 11 : i64} {
  func.func @_conv_inorm_kernel(%arg0: i32, %arg1: memref<1x6x6x32xbf16, #tpu.memory_space<vmem>>, %arg2: memref<4x32x128xbf16, #tpu.memory_space<vmem>>, %arg3: memref<1x5x5x128xbf16, #tpu.memory_space<vmem>>) attributes {dimension_semantics = [#tpu.dimension_semantics<parallel>], iteration_bounds = array<i64: 2>, scalar_prefetch = 0 : i64, scratch_operands = 0 : i64, tpu.core_type = #tpu.core_type<tc>, window_params = [{transform_indices = @transform_0, window_bounds = array<i64: 1, 6, 6, 32>}, {pipeline_mode = #tpu.pipeline_mode<synchronous>, transform_indices = @transform_1, window_bounds = array<i64: 4, 32, 128>}, {transform_indices = @transform_2, window_bounds = array<i64: 1, 5, 5, 128>}]} {
    %cst = arith.constant 0.000000e+00 : f32
    %0 = vector.broadcast %cst : f32 to vector<1x128xf32>
    %cst_0 = arith.constant 0.000000e+00 : f32
    %1 = vector.broadcast %cst_0 : f32 to vector<1x128xf32>
    %c0_i32 = arith.constant 0 : i32
    %c5_i32 = arith.constant 5 : i32
    %2 = arith.addi %c0_i32, %c5_i32 : i32
    %c1_i32 = arith.constant 1 : i32
    %3:2 = scf.for %arg4 = %c0_i32 to %2 step %c1_i32 iter_args(%arg5 = %0, %arg6 = %1) -> (vector<1x128xf32>, vector<1x128xf32>)  : i32 {
      %cst_10 = arith.constant 0.000000e+00 : f32
      %16 = vector.broadcast %cst_10 : f32 to vector<5x128xf32>
      %c0_i32_11 = arith.constant 0 : i32
      %17 = arith.addi %arg4, %c0_i32_11 : i32
      %c0 = arith.constant 0 : index
      %18 = arith.index_cast %17 : i32 to index
      %c0_12 = arith.constant 0 : index
      %c0_13 = arith.constant 0 : index
      %19 = vector.load %arg1[%c0, %18, %c0_12, %c0_13] : memref<1x6x6x32xbf16, #tpu.memory_space<vmem>>, vector<1x1x5x32xbf16>
      %20 = vector.shape_cast %19 : vector<1x1x5x32xbf16> to vector<5x32xbf16>
      %c0_14 = arith.constant 0 : index
      %c0_15 = arith.constant 0 : index
      %c0_16 = arith.constant 0 : index
      %21 = vector.load %arg2[%c0_14, %c0_15, %c0_16] : memref<4x32x128xbf16, #tpu.memory_space<vmem>>, vector<1x32x128xbf16>
      %22 = vector.shape_cast %21 : vector<1x32x128xbf16> to vector<32x128xbf16>
      %cst_17 = arith.constant dense<0.000000e+00> : vector<5x128xf32>
      %23 = tpu.matmul %20, %22, %cst_17 {dimension_numbers = #tpu.dot_dimension_numbers<[1], [0], [0], [1], [0, 0, 1, 1], [], []>} : vector<5x32xbf16>, vector<32x128xbf16>, vector<5x128xf32> -> vector<5x128xf32>
      %24 = arith.addf %16, %23 : vector<5x128xf32>
      %c0_i32_18 = arith.constant 0 : i32
      %25 = arith.addi %arg4, %c0_i32_18 : i32
      %c0_19 = arith.constant 0 : index
      %26 = arith.index_cast %25 : i32 to index
      %c1 = arith.constant 1 : index
      %c0_20 = arith.constant 0 : index
      %27 = vector.load %arg1[%c0_19, %26, %c1, %c0_20] : memref<1x6x6x32xbf16, #tpu.memory_space<vmem>>, vector<1x1x5x32xbf16>
      %28 = vector.shape_cast %27 : vector<1x1x5x32xbf16> to vector<5x32xbf16>
      %c1_21 = arith.constant 1 : index
      %c0_22 = arith.constant 0 : index
      %c0_23 = arith.constant 0 : index
      %29 = vector.load %arg2[%c1_21, %c0_22, %c0_23] : memref<4x32x128xbf16, #tpu.memory_space<vmem>>, vector<1x32x128xbf16>
      %30 = vector.shape_cast %29 : vector<1x32x128xbf16> to vector<32x128xbf16>
      %cst_24 = arith.constant dense<0.000000e+00> : vector<5x128xf32>
      %31 = tpu.matmul %28, %30, %cst_24 {dimension_numbers = #tpu.dot_dimension_numbers<[1], [0], [0], [1], [0, 0, 1, 1], [], []>} : vector<5x32xbf16>, vector<32x128xbf16>, vector<5x128xf32> -> vector<5x128xf32>
      %32 = arith.addf %24, %31 : vector<5x128xf32>
      %c1_i32_25 = arith.constant 1 : i32
      %33 = arith.addi %arg4, %c1_i32_25 : i32
      %c0_26 = arith.constant 0 : index
      %34 = arith.index_cast %33 : i32 to index
      %c0_27 = arith.constant 0 : index
      %c0_28 = arith.constant 0 : index
      %35 = vector.load %arg1[%c0_26, %34, %c0_27, %c0_28] : memref<1x6x6x32xbf16, #tpu.memory_space<vmem>>, vector<1x1x5x32xbf16>
      %36 = vector.shape_cast %35 : vector<1x1x5x32xbf16> to vector<5x32xbf16>
      %c2 = arith.constant 2 : index
      %c0_29 = arith.constant 0 : index
      %c0_30 = arith.constant 0 : index
      %37 = vector.load %arg2[%c2, %c0_29, %c0_30] : memref<4x32x128xbf16, #tpu.memory_space<vmem>>, vector<1x32x128xbf16>
      %38 = vector.shape_cast %37 : vector<1x32x128xbf16> to vector<32x128xbf16>
      %cst_31 = arith.constant dense<0.000000e+00> : vector<5x128xf32>
      %39 = tpu.matmul %36, %38, %cst_31 {dimension_numbers = #tpu.dot_dimension_numbers<[1], [0], [0], [1], [0, 0, 1, 1], [], []>} : vector<5x32xbf16>, vector<32x128xbf16>, vector<5x128xf32> -> vector<5x128xf32>
      %40 = arith.addf %32, %39 : vector<5x128xf32>
      %c1_i32_32 = arith.constant 1 : i32
      %41 = arith.addi %arg4, %c1_i32_32 : i32
      %c0_33 = arith.constant 0 : index
      %42 = arith.index_cast %41 : i32 to index
      %c1_34 = arith.constant 1 : index
      %c0_35 = arith.constant 0 : index
      %43 = vector.load %arg1[%c0_33, %42, %c1_34, %c0_35] : memref<1x6x6x32xbf16, #tpu.memory_space<vmem>>, vector<1x1x5x32xbf16>
      %44 = vector.shape_cast %43 : vector<1x1x5x32xbf16> to vector<5x32xbf16>
      %c3 = arith.constant 3 : index
      %c0_36 = arith.constant 0 : index
      %c0_37 = arith.constant 0 : index
      %45 = vector.load %arg2[%c3, %c0_36, %c0_37] : memref<4x32x128xbf16, #tpu.memory_space<vmem>>, vector<1x32x128xbf16>
      %46 = vector.shape_cast %45 : vector<1x32x128xbf16> to vector<32x128xbf16>
      %cst_38 = arith.constant dense<0.000000e+00> : vector<5x128xf32>
      %47 = tpu.matmul %44, %46, %cst_38 {dimension_numbers = #tpu.dot_dimension_numbers<[1], [0], [0], [1], [0, 0, 1, 1], [], []>} : vector<5x32xbf16>, vector<32x128xbf16>, vector<5x128xf32> -> vector<5x128xf32>
      %48 = arith.addf %40, %47 : vector<5x128xf32>
      %49 = arith.truncf %48 : vector<5x128xf32> to vector<5x128xbf16>
      %c0_39 = arith.constant 0 : index
      %50 = arith.index_cast %arg4 : i32 to index
      %c0_40 = arith.constant 0 : index
      %c0_41 = arith.constant 0 : index
      %51 = vector.load %arg3[%c0_39, %50, %c0_40, %c0_41] : memref<1x5x5x128xbf16, #tpu.memory_space<vmem>>, vector<1x1x5x128xbf16>
      %52 = vector.shape_cast %51 : vector<1x1x5x128xbf16> to vector<5x128xbf16>
      %53 = vector.shape_cast %49 : vector<5x128xbf16> to vector<1x1x5x128xbf16>
      tpu.vector_store %arg3[%c0_39, %50, %c0_40, %c0_41], %53 {strides = array<i32>} : memref<1x5x5x128xbf16, #tpu.memory_space<vmem>>, vector<1x1x5x128xbf16>,
      %cst_42 = arith.constant dense<0.000000e+00> : vector<128xf32>
      %54 = vector.multi_reduction <add>, %48, %cst_42 [0] : vector<5x128xf32> to vector<128xf32>
      %55 = vector.shape_cast %54 : vector<128xf32> to vector<1x128xf32>
      %56 = arith.addf %arg5, %55 : vector<1x128xf32>
      %57 = arith.mulf %48, %48 : vector<5x128xf32>
      %cst_43 = arith.constant dense<0.000000e+00> : vector<128xf32>
      %58 = vector.multi_reduction <add>, %57, %cst_43 [0] : vector<5x128xf32> to vector<128xf32>
      %59 = vector.shape_cast %58 : vector<128xf32> to vector<1x128xf32>
      %60 = arith.addf %arg6, %59 : vector<1x128xf32>
      scf.yield %56, %60 : vector<1x128xf32>, vector<1x128xf32>
    }
    %c5_i32_1 = arith.constant 5 : i32
    %cst_2 = arith.constant 4.000000e-02 : f32
    %4 = vector.broadcast %cst_2 : f32 to vector<1x128xf32>
    %5 = arith.mulf %3#0, %4 : vector<1x128xf32>
    %cst_3 = arith.constant 4.000000e-02 : f32
    %6 = vector.broadcast %cst_3 : f32 to vector<1x128xf32>
    %7 = arith.mulf %3#1, %6 : vector<1x128xf32>
    %8 = arith.mulf %5, %5 : vector<1x128xf32>
    %9 = arith.subf %7, %8 : vector<1x128xf32>
    %cst_4 = arith.constant 0.000000e+00 : f32
    %10 = vector.broadcast %cst_4 : f32 to vector<1x128xf32>
    %11 = arith.maximumf %9, %10 : vector<1x128xf32>
    %cst_5 = arith.constant 9.99999974E-6 : f32
    %12 = vector.broadcast %cst_5 : f32 to vector<1x128xf32>
    %13 = arith.addf %11, %12 : vector<1x128xf32>
    %14 = math.rsqrt %13 : vector<1x128xf32>
    %c0_i32_6 = arith.constant 0 : i32
    %c5_i32_7 = arith.constant 5 : i32
    %15 = arith.addi %c0_i32_6, %c5_i32_7 : i32
    %c1_i32_8 = arith.constant 1 : i32
    scf.for %arg4 = %c0_i32_6 to %15 step %c1_i32_8  : i32 {
      %c0 = arith.constant 0 : index
      %16 = arith.index_cast %arg4 : i32 to index
      %c0_10 = arith.constant 0 : index
      %c0_11 = arith.constant 0 : index
      %17 = vector.load %arg3[%c0, %16, %c0_10, %c0_11] : memref<1x5x5x128xbf16, #tpu.memory_space<vmem>>, vector<1x1x5x128xbf16>
      %18 = vector.shape_cast %17 : vector<1x1x5x128xbf16> to vector<5x128xbf16>
      %19 = arith.extf %18 : vector<5x128xbf16> to vector<5x128xf32>
      %20 = vector.broadcast %5 : vector<1x128xf32> to vector<5x128xf32>
      %21 = arith.subf %19, %20 : vector<5x128xf32>
      %22 = vector.broadcast %14 : vector<1x128xf32> to vector<5x128xf32>
      %23 = arith.mulf %21, %22 : vector<5x128xf32>
      %cst_12 = arith.constant 2.000000e-01 : f32
      %24 = vector.broadcast %cst_12 : f32 to vector<5x128xf32>
      %25 = arith.mulf %24, %23 : vector<5x128xf32>
      %26 = arith.maximumf %23, %25 : vector<5x128xf32>
      %27 = arith.truncf %26 : vector<5x128xf32> to vector<5x128xbf16>
      %c0_13 = arith.constant 0 : index
      %28 = arith.index_cast %arg4 : i32 to index
      %c0_14 = arith.constant 0 : index
      %c0_15 = arith.constant 0 : index
      %29 = vector.load %arg3[%c0_13, %28, %c0_14, %c0_15] : memref<1x5x5x128xbf16, #tpu.memory_space<vmem>>, vector<1x1x5x128xbf16>
      %30 = vector.shape_cast %29 : vector<1x1x5x128xbf16> to vector<5x128xbf16>
      %31 = vector.shape_cast %27 : vector<5x128xbf16> to vector<1x1x5x128xbf16>
      tpu.vector_store %arg3[%c0_13, %28, %c0_14, %c0_15], %31 {strides = array<i32>} : memref<1x5x5x128xbf16, #tpu.memory_space<vmem>>, vector<1x1x5x128xbf16>,
    }
    %c5_i32_9 = arith.constant 5 : i32
    return
  }
  func.func @transform_0(%arg0: i32) -> (i32, i32, i32, i32) {
    %c0_i32 = arith.constant 0 : i32
    %c0_i32_0 = arith.constant 0 : i32
    %c0_i32_1 = arith.constant 0 : i32
    %c0_i32_2 = arith.constant 0 : i32
    return %arg0, %c0_i32, %c0_i32_0, %c0_i32_1 : i32, i32, i32, i32
  }
  func.func @transform_1(%arg0: i32) -> (i32, i32, i32) {
    %c0_i32 = arith.constant 0 : i32
    %c0_i32_0 = arith.constant 0 : i32
    %c0_i32_1 = arith.constant 0 : i32
    %c0_i32_2 = arith.constant 0 : i32
    return %c0_i32, %c0_i32_0, %c0_i32_1 : i32, i32, i32
  }
  func.func @transform_2(%arg0: i32) -> (i32, i32, i32, i32) {
    %c0_i32 = arith.constant 0 : i32
    %c0_i32_0 = arith.constant 0 : i32
    %c0_i32_1 = arith.constant 0 : i32
    %c0_i32_2 = arith.constant 0 : i32
    return %arg0, %c0_i32, %c0_i32_0, %c0_i32_1 : i32, i32, i32, i32
  }
}

module attributes {stable_mosaic.version = 11 : i64} {
  func.func @_conv_inorm_kernel(%arg0: i32, %arg1: memref<1x4x4x64xbf16, #tpu.memory_space<vmem>>, %arg2: memref<4x64x128xbf16, #tpu.memory_space<vmem>>, %arg3: memref<1x3x3x128xbf16, #tpu.memory_space<vmem>>) attributes {dimension_semantics = [#tpu.dimension_semantics<parallel>], iteration_bounds = array<i64: 2>, scalar_prefetch = 0 : i64, scratch_operands = 0 : i64, tpu.core_type = #tpu.core_type<tc>, window_params = [{transform_indices = @transform_0, window_bounds = array<i64: 1, 4, 4, 64>}, {pipeline_mode = #tpu.pipeline_mode<synchronous>, transform_indices = @transform_1, window_bounds = array<i64: 4, 64, 128>}, {transform_indices = @transform_2, window_bounds = array<i64: 1, 3, 3, 128>}]} {
    %cst = arith.constant 0.000000e+00 : f32
    %0 = vector.broadcast %cst : f32 to vector<1x128xf32>
    %cst_0 = arith.constant 0.000000e+00 : f32
    %1 = vector.broadcast %cst_0 : f32 to vector<1x128xf32>
    %c0_i32 = arith.constant 0 : i32
    %c3_i32 = arith.constant 3 : i32
    %2 = arith.addi %c0_i32, %c3_i32 : i32
    %c1_i32 = arith.constant 1 : i32
    %3:2 = scf.for %arg4 = %c0_i32 to %2 step %c1_i32 iter_args(%arg5 = %0, %arg6 = %1) -> (vector<1x128xf32>, vector<1x128xf32>)  : i32 {
      %cst_10 = arith.constant 0.000000e+00 : f32
      %16 = vector.broadcast %cst_10 : f32 to vector<3x128xf32>
      %c0_i32_11 = arith.constant 0 : i32
      %17 = arith.addi %arg4, %c0_i32_11 : i32
      %c0 = arith.constant 0 : index
      %18 = arith.index_cast %17 : i32 to index
      %c0_12 = arith.constant 0 : index
      %c0_13 = arith.constant 0 : index
      %19 = vector.load %arg1[%c0, %18, %c0_12, %c0_13] : memref<1x4x4x64xbf16, #tpu.memory_space<vmem>>, vector<1x1x3x64xbf16>
      %20 = vector.shape_cast %19 : vector<1x1x3x64xbf16> to vector<3x64xbf16>
      %c0_14 = arith.constant 0 : index
      %c0_15 = arith.constant 0 : index
      %c0_16 = arith.constant 0 : index
      %21 = vector.load %arg2[%c0_14, %c0_15, %c0_16] : memref<4x64x128xbf16, #tpu.memory_space<vmem>>, vector<1x64x128xbf16>
      %22 = vector.shape_cast %21 : vector<1x64x128xbf16> to vector<64x128xbf16>
      %cst_17 = arith.constant dense<0.000000e+00> : vector<3x128xf32>
      %23 = tpu.matmul %20, %22, %cst_17 {dimension_numbers = #tpu.dot_dimension_numbers<[1], [0], [0], [1], [0, 0, 1, 1], [], []>} : vector<3x64xbf16>, vector<64x128xbf16>, vector<3x128xf32> -> vector<3x128xf32>
      %24 = arith.addf %16, %23 : vector<3x128xf32>
      %c0_i32_18 = arith.constant 0 : i32
      %25 = arith.addi %arg4, %c0_i32_18 : i32
      %c0_19 = arith.constant 0 : index
      %26 = arith.index_cast %25 : i32 to index
      %c1 = arith.constant 1 : index
      %c0_20 = arith.constant 0 : index
      %27 = vector.load %arg1[%c0_19, %26, %c1, %c0_20] : memref<1x4x4x64xbf16, #tpu.memory_space<vmem>>, vector<1x1x3x64xbf16>
      %28 = vector.shape_cast %27 : vector<1x1x3x64xbf16> to vector<3x64xbf16>
      %c1_21 = arith.constant 1 : index
      %c0_22 = arith.constant 0 : index
      %c0_23 = arith.constant 0 : index
      %29 = vector.load %arg2[%c1_21, %c0_22, %c0_23] : memref<4x64x128xbf16, #tpu.memory_space<vmem>>, vector<1x64x128xbf16>
      %30 = vector.shape_cast %29 : vector<1x64x128xbf16> to vector<64x128xbf16>
      %cst_24 = arith.constant dense<0.000000e+00> : vector<3x128xf32>
      %31 = tpu.matmul %28, %30, %cst_24 {dimension_numbers = #tpu.dot_dimension_numbers<[1], [0], [0], [1], [0, 0, 1, 1], [], []>} : vector<3x64xbf16>, vector<64x128xbf16>, vector<3x128xf32> -> vector<3x128xf32>
      %32 = arith.addf %24, %31 : vector<3x128xf32>
      %c1_i32_25 = arith.constant 1 : i32
      %33 = arith.addi %arg4, %c1_i32_25 : i32
      %c0_26 = arith.constant 0 : index
      %34 = arith.index_cast %33 : i32 to index
      %c0_27 = arith.constant 0 : index
      %c0_28 = arith.constant 0 : index
      %35 = vector.load %arg1[%c0_26, %34, %c0_27, %c0_28] : memref<1x4x4x64xbf16, #tpu.memory_space<vmem>>, vector<1x1x3x64xbf16>
      %36 = vector.shape_cast %35 : vector<1x1x3x64xbf16> to vector<3x64xbf16>
      %c2 = arith.constant 2 : index
      %c0_29 = arith.constant 0 : index
      %c0_30 = arith.constant 0 : index
      %37 = vector.load %arg2[%c2, %c0_29, %c0_30] : memref<4x64x128xbf16, #tpu.memory_space<vmem>>, vector<1x64x128xbf16>
      %38 = vector.shape_cast %37 : vector<1x64x128xbf16> to vector<64x128xbf16>
      %cst_31 = arith.constant dense<0.000000e+00> : vector<3x128xf32>
      %39 = tpu.matmul %36, %38, %cst_31 {dimension_numbers = #tpu.dot_dimension_numbers<[1], [0], [0], [1], [0, 0, 1, 1], [], []>} : vector<3x64xbf16>, vector<64x128xbf16>, vector<3x128xf32> -> vector<3x128xf32>
      %40 = arith.addf %32, %39 : vector<3x128xf32>
      %c1_i32_32 = arith.constant 1 : i32
      %41 = arith.addi %arg4, %c1_i32_32 : i32
      %c0_33 = arith.constant 0 : index
      %42 = arith.index_cast %41 : i32 to index
      %c1_34 = arith.constant 1 : index
      %c0_35 = arith.constant 0 : index
      %43 = vector.load %arg1[%c0_33, %42, %c1_34, %c0_35] : memref<1x4x4x64xbf16, #tpu.memory_space<vmem>>, vector<1x1x3x64xbf16>
      %44 = vector.shape_cast %43 : vector<1x1x3x64xbf16> to vector<3x64xbf16>
      %c3 = arith.constant 3 : index
      %c0_36 = arith.constant 0 : index
      %c0_37 = arith.constant 0 : index
      %45 = vector.load %arg2[%c3, %c0_36, %c0_37] : memref<4x64x128xbf16, #tpu.memory_space<vmem>>, vector<1x64x128xbf16>
      %46 = vector.shape_cast %45 : vector<1x64x128xbf16> to vector<64x128xbf16>
      %cst_38 = arith.constant dense<0.000000e+00> : vector<3x128xf32>
      %47 = tpu.matmul %44, %46, %cst_38 {dimension_numbers = #tpu.dot_dimension_numbers<[1], [0], [0], [1], [0, 0, 1, 1], [], []>} : vector<3x64xbf16>, vector<64x128xbf16>, vector<3x128xf32> -> vector<3x128xf32>
      %48 = arith.addf %40, %47 : vector<3x128xf32>
      %49 = arith.truncf %48 : vector<3x128xf32> to vector<3x128xbf16>
      %c0_39 = arith.constant 0 : index
      %50 = arith.index_cast %arg4 : i32 to index
      %c0_40 = arith.constant 0 : index
      %c0_41 = arith.constant 0 : index
      %51 = vector.load %arg3[%c0_39, %50, %c0_40, %c0_41] : memref<1x3x3x128xbf16, #tpu.memory_space<vmem>>, vector<1x1x3x128xbf16>
      %52 = vector.shape_cast %51 : vector<1x1x3x128xbf16> to vector<3x128xbf16>
      %53 = vector.shape_cast %49 : vector<3x128xbf16> to vector<1x1x3x128xbf16>
      tpu.vector_store %arg3[%c0_39, %50, %c0_40, %c0_41], %53 {strides = array<i32>} : memref<1x3x3x128xbf16, #tpu.memory_space<vmem>>, vector<1x1x3x128xbf16>,
      %cst_42 = arith.constant dense<0.000000e+00> : vector<128xf32>
      %54 = vector.multi_reduction <add>, %48, %cst_42 [0] : vector<3x128xf32> to vector<128xf32>
      %55 = vector.shape_cast %54 : vector<128xf32> to vector<1x128xf32>
      %56 = arith.addf %arg5, %55 : vector<1x128xf32>
      %57 = arith.mulf %48, %48 : vector<3x128xf32>
      %cst_43 = arith.constant dense<0.000000e+00> : vector<128xf32>
      %58 = vector.multi_reduction <add>, %57, %cst_43 [0] : vector<3x128xf32> to vector<128xf32>
      %59 = vector.shape_cast %58 : vector<128xf32> to vector<1x128xf32>
      %60 = arith.addf %arg6, %59 : vector<1x128xf32>
      scf.yield %56, %60 : vector<1x128xf32>, vector<1x128xf32>
    }
    %c3_i32_1 = arith.constant 3 : i32
    %cst_2 = arith.constant 0.111111112 : f32
    %4 = vector.broadcast %cst_2 : f32 to vector<1x128xf32>
    %5 = arith.mulf %3#0, %4 : vector<1x128xf32>
    %cst_3 = arith.constant 0.111111112 : f32
    %6 = vector.broadcast %cst_3 : f32 to vector<1x128xf32>
    %7 = arith.mulf %3#1, %6 : vector<1x128xf32>
    %8 = arith.mulf %5, %5 : vector<1x128xf32>
    %9 = arith.subf %7, %8 : vector<1x128xf32>
    %cst_4 = arith.constant 0.000000e+00 : f32
    %10 = vector.broadcast %cst_4 : f32 to vector<1x128xf32>
    %11 = arith.maximumf %9, %10 : vector<1x128xf32>
    %cst_5 = arith.constant 9.99999974E-6 : f32
    %12 = vector.broadcast %cst_5 : f32 to vector<1x128xf32>
    %13 = arith.addf %11, %12 : vector<1x128xf32>
    %14 = math.rsqrt %13 : vector<1x128xf32>
    %c0_i32_6 = arith.constant 0 : i32
    %c3_i32_7 = arith.constant 3 : i32
    %15 = arith.addi %c0_i32_6, %c3_i32_7 : i32
    %c1_i32_8 = arith.constant 1 : i32
    scf.for %arg4 = %c0_i32_6 to %15 step %c1_i32_8  : i32 {
      %c0 = arith.constant 0 : index
      %16 = arith.index_cast %arg4 : i32 to index
      %c0_10 = arith.constant 0 : index
      %c0_11 = arith.constant 0 : index
      %17 = vector.load %arg3[%c0, %16, %c0_10, %c0_11] : memref<1x3x3x128xbf16, #tpu.memory_space<vmem>>, vector<1x1x3x128xbf16>
      %18 = vector.shape_cast %17 : vector<1x1x3x128xbf16> to vector<3x128xbf16>
      %19 = arith.extf %18 : vector<3x128xbf16> to vector<3x128xf32>
      %20 = vector.broadcast %5 : vector<1x128xf32> to vector<3x128xf32>
      %21 = arith.subf %19, %20 : vector<3x128xf32>
      %22 = vector.broadcast %14 : vector<1x128xf32> to vector<3x128xf32>
      %23 = arith.mulf %21, %22 : vector<3x128xf32>
      %cst_12 = arith.constant 2.000000e-01 : f32
      %24 = vector.broadcast %cst_12 : f32 to vector<3x128xf32>
      %25 = arith.mulf %24, %23 : vector<3x128xf32>
      %26 = arith.maximumf %23, %25 : vector<3x128xf32>
      %27 = arith.truncf %26 : vector<3x128xf32> to vector<3x128xbf16>
      %c0_13 = arith.constant 0 : index
      %28 = arith.index_cast %arg4 : i32 to index
      %c0_14 = arith.constant 0 : index
      %c0_15 = arith.constant 0 : index
      %29 = vector.load %arg3[%c0_13, %28, %c0_14, %c0_15] : memref<1x3x3x128xbf16, #tpu.memory_space<vmem>>, vector<1x1x3x128xbf16>
      %30 = vector.shape_cast %29 : vector<1x1x3x128xbf16> to vector<3x128xbf16>
      %31 = vector.shape_cast %27 : vector<3x128xbf16> to vector<1x1x3x128xbf16>
      tpu.vector_store %arg3[%c0_13, %28, %c0_14, %c0_15], %31 {strides = array<i32>} : memref<1x3x3x128xbf16, #tpu.memory_space<vmem>>, vector<1x1x3x128xbf16>,
    }
    %c3_i32_9 = arith.constant 3 : i32
    return
  }
  func.func @transform_0(%arg0: i32) -> (i32, i32, i32, i32) {
    %c0_i32 = arith.constant 0 : i32
    %c0_i32_0 = arith.constant 0 : i32
    %c0_i32_1 = arith.constant 0 : i32
    %c0_i32_2 = arith.constant 0 : i32
    return %arg0, %c0_i32, %c0_i32_0, %c0_i32_1 : i32, i32, i32, i32
  }
  func.func @transform_1(%arg0: i32) -> (i32, i32, i32) {
    %c0_i32 = arith.constant 0 : i32
    %c0_i32_0 = arith.constant 0 : i32
    %c0_i32_1 = arith.constant 0 : i32
    %c0_i32_2 = arith.constant 0 : i32
    return %c0_i32, %c0_i32_0, %c0_i32_1 : i32, i32, i32
  }
  func.func @transform_2(%arg0: i32) -> (i32, i32, i32, i32) {
    %c0_i32 = arith.constant 0 : i32
    %c0_i32_0 = arith.constant 0 : i32
    %c0_i32_1 = arith.constant 0 : i32
    %c0_i32_2 = arith.constant 0 : i32
    return %arg0, %c0_i32, %c0_i32_0, %c0_i32_1 : i32, i32, i32, i32
  }
}

module attributes {stable_mosaic.version = 11 : i64} {
  func.func @_conv_inorm_kernel(%arg0: i32, %arg1: memref<1x7x7x32xbf16, #tpu.memory_space<vmem>>, %arg2: memref<16x32x128xbf16, #tpu.memory_space<vmem>>, %arg3: memref<1x4x4x128xbf16, #tpu.memory_space<vmem>>) attributes {dimension_semantics = [#tpu.dimension_semantics<parallel>], iteration_bounds = array<i64: 2>, scalar_prefetch = 0 : i64, scratch_operands = 0 : i64, tpu.core_type = #tpu.core_type<tc>, window_params = [{transform_indices = @transform_0, window_bounds = array<i64: 1, 7, 7, 32>}, {pipeline_mode = #tpu.pipeline_mode<synchronous>, transform_indices = @transform_1, window_bounds = array<i64: 16, 32, 128>}, {transform_indices = @transform_2, window_bounds = array<i64: 1, 4, 4, 128>}]} {
    %cst = arith.constant 0.000000e+00 : f32
    %0 = vector.broadcast %cst : f32 to vector<1x128xf32>
    %cst_0 = arith.constant 0.000000e+00 : f32
    %1 = vector.broadcast %cst_0 : f32 to vector<1x128xf32>
    %c0_i32 = arith.constant 0 : i32
    %c4_i32 = arith.constant 4 : i32
    %2 = arith.addi %c0_i32, %c4_i32 : i32
    %c1_i32 = arith.constant 1 : i32
    %3:2 = scf.for %arg4 = %c0_i32 to %2 step %c1_i32 iter_args(%arg5 = %0, %arg6 = %1) -> (vector<1x128xf32>, vector<1x128xf32>)  : i32 {
      %cst_10 = arith.constant 0.000000e+00 : f32
      %16 = vector.broadcast %cst_10 : f32 to vector<4x128xf32>
      %c0_i32_11 = arith.constant 0 : i32
      %17 = arith.addi %arg4, %c0_i32_11 : i32
      %c0 = arith.constant 0 : index
      %18 = arith.index_cast %17 : i32 to index
      %c0_12 = arith.constant 0 : index
      %c0_13 = arith.constant 0 : index
      %19 = vector.load %arg1[%c0, %18, %c0_12, %c0_13] : memref<1x7x7x32xbf16, #tpu.memory_space<vmem>>, vector<1x1x4x32xbf16>
      %20 = vector.shape_cast %19 : vector<1x1x4x32xbf16> to vector<4x32xbf16>
      %c0_14 = arith.constant 0 : index
      %c0_15 = arith.constant 0 : index
      %c0_16 = arith.constant 0 : index
      %21 = vector.load %arg2[%c0_14, %c0_15, %c0_16] : memref<16x32x128xbf16, #tpu.memory_space<vmem>>, vector<1x32x128xbf16>
      %22 = vector.shape_cast %21 : vector<1x32x128xbf16> to vector<32x128xbf16>
      %cst_17 = arith.constant dense<0.000000e+00> : vector<4x128xf32>
      %23 = tpu.matmul %20, %22, %cst_17 {dimension_numbers = #tpu.dot_dimension_numbers<[1], [0], [0], [1], [0, 0, 1, 1], [], []>} : vector<4x32xbf16>, vector<32x128xbf16>, vector<4x128xf32> -> vector<4x128xf32>
      %24 = arith.addf %16, %23 : vector<4x128xf32>
      %c0_i32_18 = arith.constant 0 : i32
      %25 = arith.addi %arg4, %c0_i32_18 : i32
      %c0_19 = arith.constant 0 : index
      %26 = arith.index_cast %25 : i32 to index
      %c1 = arith.constant 1 : index
      %c0_20 = arith.constant 0 : index
      %27 = vector.load %arg1[%c0_19, %26, %c1, %c0_20] : memref<1x7x7x32xbf16, #tpu.memory_space<vmem>>, vector<1x1x4x32xbf16>
      %28 = vector.shape_cast %27 : vector<1x1x4x32xbf16> to vector<4x32xbf16>
      %c1_21 = arith.constant 1 : index
      %c0_22 = arith.constant 0 : index
      %c0_23 = arith.constant 0 : index
      %29 = vector.load %arg2[%c1_21, %c0_22, %c0_23] : memref<16x32x128xbf16, #tpu.memory_space<vmem>>, vector<1x32x128xbf16>
      %30 = vector.shape_cast %29 : vector<1x32x128xbf16> to vector<32x128xbf16>
      %cst_24 = arith.constant dense<0.000000e+00> : vector<4x128xf32>
      %31 = tpu.matmul %28, %30, %cst_24 {dimension_numbers = #tpu.dot_dimension_numbers<[1], [0], [0], [1], [0, 0, 1, 1], [], []>} : vector<4x32xbf16>, vector<32x128xbf16>, vector<4x128xf32> -> vector<4x128xf32>
      %32 = arith.addf %24, %31 : vector<4x128xf32>
      %c0_i32_25 = arith.constant 0 : i32
      %33 = arith.addi %arg4, %c0_i32_25 : i32
      %c0_26 = arith.constant 0 : index
      %34 = arith.index_cast %33 : i32 to index
      %c2 = arith.constant 2 : index
      %c0_27 = arith.constant 0 : index
      %35 = vector.load %arg1[%c0_26, %34, %c2, %c0_27] : memref<1x7x7x32xbf16, #tpu.memory_space<vmem>>, vector<1x1x4x32xbf16>
      %36 = vector.shape_cast %35 : vector<1x1x4x32xbf16> to vector<4x32xbf16>
      %c2_28 = arith.constant 2 : index
      %c0_29 = arith.constant 0 : index
      %c0_30 = arith.constant 0 : index
      %37 = vector.load %arg2[%c2_28, %c0_29, %c0_30] : memref<16x32x128xbf16, #tpu.memory_space<vmem>>, vector<1x32x128xbf16>
      %38 = vector.shape_cast %37 : vector<1x32x128xbf16> to vector<32x128xbf16>
      %cst_31 = arith.constant dense<0.000000e+00> : vector<4x128xf32>
      %39 = tpu.matmul %36, %38, %cst_31 {dimension_numbers = #tpu.dot_dimension_numbers<[1], [0], [0], [1], [0, 0, 1, 1], [], []>} : vector<4x32xbf16>, vector<32x128xbf16>, vector<4x128xf32> -> vector<4x128xf32>
      %40 = arith.addf %32, %39 : vector<4x128xf32>
      %c0_i32_32 = arith.constant 0 : i32
      %41 = arith.addi %arg4, %c0_i32_32 : i32
      %c0_33 = arith.constant 0 : index
      %42 = arith.index_cast %41 : i32 to index
      %c3 = arith.constant 3 : index
      %c0_34 = arith.constant 0 : index
      %43 = vector.load %arg1[%c0_33, %42, %c3, %c0_34] : memref<1x7x7x32xbf16, #tpu.memory_space<vmem>>, vector<1x1x4x32xbf16>
      %44 = vector.shape_cast %43 : vector<1x1x4x32xbf16> to vector<4x32xbf16>
      %c3_35 = arith.constant 3 : index
      %c0_36 = arith.constant 0 : index
      %c0_37 = arith.constant 0 : index
      %45 = vector.load %arg2[%c3_35, %c0_36, %c0_37] : memref<16x32x128xbf16, #tpu.memory_space<vmem>>, vector<1x32x128xbf16>
      %46 = vector.shape_cast %45 : vector<1x32x128xbf16> to vector<32x128xbf16>
      %cst_38 = arith.constant dense<0.000000e+00> : vector<4x128xf32>
      %47 = tpu.matmul %44, %46, %cst_38 {dimension_numbers = #tpu.dot_dimension_numbers<[1], [0], [0], [1], [0, 0, 1, 1], [], []>} : vector<4x32xbf16>, vector<32x128xbf16>, vector<4x128xf32> -> vector<4x128xf32>
      %48 = arith.addf %40, %47 : vector<4x128xf32>
      %c1_i32_39 = arith.constant 1 : i32
      %49 = arith.addi %arg4, %c1_i32_39 : i32
      %c0_40 = arith.constant 0 : index
      %50 = arith.index_cast %49 : i32 to index
      %c0_41 = arith.constant 0 : index
      %c0_42 = arith.constant 0 : index
      %51 = vector.load %arg1[%c0_40, %50, %c0_41, %c0_42] : memref<1x7x7x32xbf16, #tpu.memory_space<vmem>>, vector<1x1x4x32xbf16>
      %52 = vector.shape_cast %51 : vector<1x1x4x32xbf16> to vector<4x32xbf16>
      %c4 = arith.constant 4 : index
      %c0_43 = arith.constant 0 : index
      %c0_44 = arith.constant 0 : index
      %53 = vector.load %arg2[%c4, %c0_43, %c0_44] : memref<16x32x128xbf16, #tpu.memory_space<vmem>>, vector<1x32x128xbf16>
      %54 = vector.shape_cast %53 : vector<1x32x128xbf16> to vector<32x128xbf16>
      %cst_45 = arith.constant dense<0.000000e+00> : vector<4x128xf32>
      %55 = tpu.matmul %52, %54, %cst_45 {dimension_numbers = #tpu.dot_dimension_numbers<[1], [0], [0], [1], [0, 0, 1, 1], [], []>} : vector<4x32xbf16>, vector<32x128xbf16>, vector<4x128xf32> -> vector<4x128xf32>
      %56 = arith.addf %48, %55 : vector<4x128xf32>
      %c1_i32_46 = arith.constant 1 : i32
      %57 = arith.addi %arg4, %c1_i32_46 : i32
      %c0_47 = arith.constant 0 : index
      %58 = arith.index_cast %57 : i32 to index
      %c1_48 = arith.constant 1 : index
      %c0_49 = arith.constant 0 : index
      %59 = vector.load %arg1[%c0_47, %58, %c1_48, %c0_49] : memref<1x7x7x32xbf16, #tpu.memory_space<vmem>>, vector<1x1x4x32xbf16>
      %60 = vector.shape_cast %59 : vector<1x1x4x32xbf16> to vector<4x32xbf16>
      %c5 = arith.constant 5 : index
      %c0_50 = arith.constant 0 : index
      %c0_51 = arith.constant 0 : index
      %61 = vector.load %arg2[%c5, %c0_50, %c0_51] : memref<16x32x128xbf16, #tpu.memory_space<vmem>>, vector<1x32x128xbf16>
      %62 = vector.shape_cast %61 : vector<1x32x128xbf16> to vector<32x128xbf16>
      %cst_52 = arith.constant dense<0.000000e+00> : vector<4x128xf32>
      %63 = tpu.matmul %60, %62, %cst_52 {dimension_numbers = #tpu.dot_dimension_numbers<[1], [0], [0], [1], [0, 0, 1, 1], [], []>} : vector<4x32xbf16>, vector<32x128xbf16>, vector<4x128xf32> -> vector<4x128xf32>
      %64 = arith.addf %56, %63 : vector<4x128xf32>
      %c1_i32_53 = arith.constant 1 : i32
      %65 = arith.addi %arg4, %c1_i32_53 : i32
      %c0_54 = arith.constant 0 : index
      %66 = arith.index_cast %65 : i32 to index
      %c2_55 = arith.constant 2 : index
      %c0_56 = arith.constant 0 : index
      %67 = vector.load %arg1[%c0_54, %66, %c2_55, %c0_56] : memref<1x7x7x32xbf16, #tpu.memory_space<vmem>>, vector<1x1x4x32xbf16>
      %68 = vector.shape_cast %67 : vector<1x1x4x32xbf16> to vector<4x32xbf16>
      %c6 = arith.constant 6 : index
      %c0_57 = arith.constant 0 : index
      %c0_58 = arith.constant 0 : index
      %69 = vector.load %arg2[%c6, %c0_57, %c0_58] : memref<16x32x128xbf16, #tpu.memory_space<vmem>>, vector<1x32x128xbf16>
      %70 = vector.shape_cast %69 : vector<1x32x128xbf16> to vector<32x128xbf16>
      %cst_59 = arith.constant dense<0.000000e+00> : vector<4x128xf32>
      %71 = tpu.matmul %68, %70, %cst_59 {dimension_numbers = #tpu.dot_dimension_numbers<[1], [0], [0], [1], [0, 0, 1, 1], [], []>} : vector<4x32xbf16>, vector<32x128xbf16>, vector<4x128xf32> -> vector<4x128xf32>
      %72 = arith.addf %64, %71 : vector<4x128xf32>
      %c1_i32_60 = arith.constant 1 : i32
      %73 = arith.addi %arg4, %c1_i32_60 : i32
      %c0_61 = arith.constant 0 : index
      %74 = arith.index_cast %73 : i32 to index
      %c3_62 = arith.constant 3 : index
      %c0_63 = arith.constant 0 : index
      %75 = vector.load %arg1[%c0_61, %74, %c3_62, %c0_63] : memref<1x7x7x32xbf16, #tpu.memory_space<vmem>>, vector<1x1x4x32xbf16>
      %76 = vector.shape_cast %75 : vector<1x1x4x32xbf16> to vector<4x32xbf16>
      %c7 = arith.constant 7 : index
      %c0_64 = arith.constant 0 : index
      %c0_65 = arith.constant 0 : index
      %77 = vector.load %arg2[%c7, %c0_64, %c0_65] : memref<16x32x128xbf16, #tpu.memory_space<vmem>>, vector<1x32x128xbf16>
      %78 = vector.shape_cast %77 : vector<1x32x128xbf16> to vector<32x128xbf16>
      %cst_66 = arith.constant dense<0.000000e+00> : vector<4x128xf32>
      %79 = tpu.matmul %76, %78, %cst_66 {dimension_numbers = #tpu.dot_dimension_numbers<[1], [0], [0], [1], [0, 0, 1, 1], [], []>} : vector<4x32xbf16>, vector<32x128xbf16>, vector<4x128xf32> -> vector<4x128xf32>
      %80 = arith.addf %72, %79 : vector<4x128xf32>
      %c2_i32 = arith.constant 2 : i32
      %81 = arith.addi %arg4, %c2_i32 : i32
      %c0_67 = arith.constant 0 : index
      %82 = arith.index_cast %81 : i32 to index
      %c0_68 = arith.constant 0 : index
      %c0_69 = arith.constant 0 : index
      %83 = vector.load %arg1[%c0_67, %82, %c0_68, %c0_69] : memref<1x7x7x32xbf16, #tpu.memory_space<vmem>>, vector<1x1x4x32xbf16>
      %84 = vector.shape_cast %83 : vector<1x1x4x32xbf16> to vector<4x32xbf16>
      %c8 = arith.constant 8 : index
      %c0_70 = arith.constant 0 : index
      %c0_71 = arith.constant 0 : index
      %85 = vector.load %arg2[%c8, %c0_70, %c0_71] : memref<16x32x128xbf16, #tpu.memory_space<vmem>>, vector<1x32x128xbf16>
      %86 = vector.shape_cast %85 : vector<1x32x128xbf16> to vector<32x128xbf16>
      %cst_72 = arith.constant dense<0.000000e+00> : vector<4x128xf32>
      %87 = tpu.matmul %84, %86, %cst_72 {dimension_numbers = #tpu.dot_dimension_numbers<[1], [0], [0], [1], [0, 0, 1, 1], [], []>} : vector<4x32xbf16>, vector<32x128xbf16>, vector<4x128xf32> -> vector<4x128xf32>
      %88 = arith.addf %80, %87 : vector<4x128xf32>
      %c2_i32_73 = arith.constant 2 : i32
      %89 = arith.addi %arg4, %c2_i32_73 : i32
      %c0_74 = arith.constant 0 : index
      %90 = arith.index_cast %89 : i32 to index
      %c1_75 = arith.constant 1 : index
      %c0_76 = arith.constant 0 : index
      %91 = vector.load %arg1[%c0_74, %90, %c1_75, %c0_76] : memref<1x7x7x32xbf16, #tpu.memory_space<vmem>>, vector<1x1x4x32xbf16>
      %92 = vector.shape_cast %91 : vector<1x1x4x32xbf16> to vector<4x32xbf16>
      %c9 = arith.constant 9 : index
      %c0_77 = arith.constant 0 : index
      %c0_78 = arith.constant 0 : index
      %93 = vector.load %arg2[%c9, %c0_77, %c0_78] : memref<16x32x128xbf16, #tpu.memory_space<vmem>>, vector<1x32x128xbf16>
      %94 = vector.shape_cast %93 : vector<1x32x128xbf16> to vector<32x128xbf16>
      %cst_79 = arith.constant dense<0.000000e+00> : vector<4x128xf32>
      %95 = tpu.matmul %92, %94, %cst_79 {dimension_numbers = #tpu.dot_dimension_numbers<[1], [0], [0], [1], [0, 0, 1, 1], [], []>} : vector<4x32xbf16>, vector<32x128xbf16>, vector<4x128xf32> -> vector<4x128xf32>
      %96 = arith.addf %88, %95 : vector<4x128xf32>
      %c2_i32_80 = arith.constant 2 : i32
      %97 = arith.addi %arg4, %c2_i32_80 : i32
      %c0_81 = arith.constant 0 : index
      %98 = arith.index_cast %97 : i32 to index
      %c2_82 = arith.constant 2 : index
      %c0_83 = arith.constant 0 : index
      %99 = vector.load %arg1[%c0_81, %98, %c2_82, %c0_83] : memref<1x7x7x32xbf16, #tpu.memory_space<vmem>>, vector<1x1x4x32xbf16>
      %100 = vector.shape_cast %99 : vector<1x1x4x32xbf16> to vector<4x32xbf16>
      %c10 = arith.constant 10 : index
      %c0_84 = arith.constant 0 : index
      %c0_85 = arith.constant 0 : index
      %101 = vector.load %arg2[%c10, %c0_84, %c0_85] : memref<16x32x128xbf16, #tpu.memory_space<vmem>>, vector<1x32x128xbf16>
      %102 = vector.shape_cast %101 : vector<1x32x128xbf16> to vector<32x128xbf16>
      %cst_86 = arith.constant dense<0.000000e+00> : vector<4x128xf32>
      %103 = tpu.matmul %100, %102, %cst_86 {dimension_numbers = #tpu.dot_dimension_numbers<[1], [0], [0], [1], [0, 0, 1, 1], [], []>} : vector<4x32xbf16>, vector<32x128xbf16>, vector<4x128xf32> -> vector<4x128xf32>
      %104 = arith.addf %96, %103 : vector<4x128xf32>
      %c2_i32_87 = arith.constant 2 : i32
      %105 = arith.addi %arg4, %c2_i32_87 : i32
      %c0_88 = arith.constant 0 : index
      %106 = arith.index_cast %105 : i32 to index
      %c3_89 = arith.constant 3 : index
      %c0_90 = arith.constant 0 : index
      %107 = vector.load %arg1[%c0_88, %106, %c3_89, %c0_90] : memref<1x7x7x32xbf16, #tpu.memory_space<vmem>>, vector<1x1x4x32xbf16>
      %108 = vector.shape_cast %107 : vector<1x1x4x32xbf16> to vector<4x32xbf16>
      %c11 = arith.constant 11 : index
      %c0_91 = arith.constant 0 : index
      %c0_92 = arith.constant 0 : index
      %109 = vector.load %arg2[%c11, %c0_91, %c0_92] : memref<16x32x128xbf16, #tpu.memory_space<vmem>>, vector<1x32x128xbf16>
      %110 = vector.shape_cast %109 : vector<1x32x128xbf16> to vector<32x128xbf16>
      %cst_93 = arith.constant dense<0.000000e+00> : vector<4x128xf32>
      %111 = tpu.matmul %108, %110, %cst_93 {dimension_numbers = #tpu.dot_dimension_numbers<[1], [0], [0], [1], [0, 0, 1, 1], [], []>} : vector<4x32xbf16>, vector<32x128xbf16>, vector<4x128xf32> -> vector<4x128xf32>
      %112 = arith.addf %104, %111 : vector<4x128xf32>
      %c3_i32 = arith.constant 3 : i32
      %113 = arith.addi %arg4, %c3_i32 : i32
      %c0_94 = arith.constant 0 : index
      %114 = arith.index_cast %113 : i32 to index
      %c0_95 = arith.constant 0 : index
      %c0_96 = arith.constant 0 : index
      %115 = vector.load %arg1[%c0_94, %114, %c0_95, %c0_96] : memref<1x7x7x32xbf16, #tpu.memory_space<vmem>>, vector<1x1x4x32xbf16>
      %116 = vector.shape_cast %115 : vector<1x1x4x32xbf16> to vector<4x32xbf16>
      %c12 = arith.constant 12 : index
      %c0_97 = arith.constant 0 : index
      %c0_98 = arith.constant 0 : index
      %117 = vector.load %arg2[%c12, %c0_97, %c0_98] : memref<16x32x128xbf16, #tpu.memory_space<vmem>>, vector<1x32x128xbf16>
      %118 = vector.shape_cast %117 : vector<1x32x128xbf16> to vector<32x128xbf16>
      %cst_99 = arith.constant dense<0.000000e+00> : vector<4x128xf32>
      %119 = tpu.matmul %116, %118, %cst_99 {dimension_numbers = #tpu.dot_dimension_numbers<[1], [0], [0], [1], [0, 0, 1, 1], [], []>} : vector<4x32xbf16>, vector<32x128xbf16>, vector<4x128xf32> -> vector<4x128xf32>
      %120 = arith.addf %112, %119 : vector<4x128xf32>
      %c3_i32_100 = arith.constant 3 : i32
      %121 = arith.addi %arg4, %c3_i32_100 : i32
      %c0_101 = arith.constant 0 : index
      %122 = arith.index_cast %121 : i32 to index
      %c1_102 = arith.constant 1 : index
      %c0_103 = arith.constant 0 : index
      %123 = vector.load %arg1[%c0_101, %122, %c1_102, %c0_103] : memref<1x7x7x32xbf16, #tpu.memory_space<vmem>>, vector<1x1x4x32xbf16>
      %124 = vector.shape_cast %123 : vector<1x1x4x32xbf16> to vector<4x32xbf16>
      %c13 = arith.constant 13 : index
      %c0_104 = arith.constant 0 : index
      %c0_105 = arith.constant 0 : index
      %125 = vector.load %arg2[%c13, %c0_104, %c0_105] : memref<16x32x128xbf16, #tpu.memory_space<vmem>>, vector<1x32x128xbf16>
      %126 = vector.shape_cast %125 : vector<1x32x128xbf16> to vector<32x128xbf16>
      %cst_106 = arith.constant dense<0.000000e+00> : vector<4x128xf32>
      %127 = tpu.matmul %124, %126, %cst_106 {dimension_numbers = #tpu.dot_dimension_numbers<[1], [0], [0], [1], [0, 0, 1, 1], [], []>} : vector<4x32xbf16>, vector<32x128xbf16>, vector<4x128xf32> -> vector<4x128xf32>
      %128 = arith.addf %120, %127 : vector<4x128xf32>
      %c3_i32_107 = arith.constant 3 : i32
      %129 = arith.addi %arg4, %c3_i32_107 : i32
      %c0_108 = arith.constant 0 : index
      %130 = arith.index_cast %129 : i32 to index
      %c2_109 = arith.constant 2 : index
      %c0_110 = arith.constant 0 : index
      %131 = vector.load %arg1[%c0_108, %130, %c2_109, %c0_110] : memref<1x7x7x32xbf16, #tpu.memory_space<vmem>>, vector<1x1x4x32xbf16>
      %132 = vector.shape_cast %131 : vector<1x1x4x32xbf16> to vector<4x32xbf16>
      %c14 = arith.constant 14 : index
      %c0_111 = arith.constant 0 : index
      %c0_112 = arith.constant 0 : index
      %133 = vector.load %arg2[%c14, %c0_111, %c0_112] : memref<16x32x128xbf16, #tpu.memory_space<vmem>>, vector<1x32x128xbf16>
      %134 = vector.shape_cast %133 : vector<1x32x128xbf16> to vector<32x128xbf16>
      %cst_113 = arith.constant dense<0.000000e+00> : vector<4x128xf32>
      %135 = tpu.matmul %132, %134, %cst_113 {dimension_numbers = #tpu.dot_dimension_numbers<[1], [0], [0], [1], [0, 0, 1, 1], [], []>} : vector<4x32xbf16>, vector<32x128xbf16>, vector<4x128xf32> -> vector<4x128xf32>
      %136 = arith.addf %128, %135 : vector<4x128xf32>
      %c3_i32_114 = arith.constant 3 : i32
      %137 = arith.addi %arg4, %c3_i32_114 : i32
      %c0_115 = arith.constant 0 : index
      %138 = arith.index_cast %137 : i32 to index
      %c3_116 = arith.constant 3 : index
      %c0_117 = arith.constant 0 : index
      %139 = vector.load %arg1[%c0_115, %138, %c3_116, %c0_117] : memref<1x7x7x32xbf16, #tpu.memory_space<vmem>>, vector<1x1x4x32xbf16>
      %140 = vector.shape_cast %139 : vector<1x1x4x32xbf16> to vector<4x32xbf16>
      %c15 = arith.constant 15 : index
      %c0_118 = arith.constant 0 : index
      %c0_119 = arith.constant 0 : index
      %141 = vector.load %arg2[%c15, %c0_118, %c0_119] : memref<16x32x128xbf16, #tpu.memory_space<vmem>>, vector<1x32x128xbf16>
      %142 = vector.shape_cast %141 : vector<1x32x128xbf16> to vector<32x128xbf16>
      %cst_120 = arith.constant dense<0.000000e+00> : vector<4x128xf32>
      %143 = tpu.matmul %140, %142, %cst_120 {dimension_numbers = #tpu.dot_dimension_numbers<[1], [0], [0], [1], [0, 0, 1, 1], [], []>} : vector<4x32xbf16>, vector<32x128xbf16>, vector<4x128xf32> -> vector<4x128xf32>
      %144 = arith.addf %136, %143 : vector<4x128xf32>
      %145 = arith.truncf %144 : vector<4x128xf32> to vector<4x128xbf16>
      %c0_121 = arith.constant 0 : index
      %146 = arith.index_cast %arg4 : i32 to index
      %c0_122 = arith.constant 0 : index
      %c0_123 = arith.constant 0 : index
      %147 = vector.load %arg3[%c0_121, %146, %c0_122, %c0_123] : memref<1x4x4x128xbf16, #tpu.memory_space<vmem>>, vector<1x1x4x128xbf16>
      %148 = vector.shape_cast %147 : vector<1x1x4x128xbf16> to vector<4x128xbf16>
      %149 = vector.shape_cast %145 : vector<4x128xbf16> to vector<1x1x4x128xbf16>
      tpu.vector_store %arg3[%c0_121, %146, %c0_122, %c0_123], %149 {strides = array<i32>} : memref<1x4x4x128xbf16, #tpu.memory_space<vmem>>, vector<1x1x4x128xbf16>,
      %cst_124 = arith.constant dense<0.000000e+00> : vector<128xf32>
      %150 = vector.multi_reduction <add>, %144, %cst_124 [0] : vector<4x128xf32> to vector<128xf32>
      %151 = vector.shape_cast %150 : vector<128xf32> to vector<1x128xf32>
      %152 = arith.addf %arg5, %151 : vector<1x128xf32>
      %153 = arith.mulf %144, %144 : vector<4x128xf32>
      %cst_125 = arith.constant dense<0.000000e+00> : vector<128xf32>
      %154 = vector.multi_reduction <add>, %153, %cst_125 [0] : vector<4x128xf32> to vector<128xf32>
      %155 = vector.shape_cast %154 : vector<128xf32> to vector<1x128xf32>
      %156 = arith.addf %arg6, %155 : vector<1x128xf32>
      scf.yield %152, %156 : vector<1x128xf32>, vector<1x128xf32>
    }
    %c4_i32_1 = arith.constant 4 : i32
    %cst_2 = arith.constant 6.250000e-02 : f32
    %4 = vector.broadcast %cst_2 : f32 to vector<1x128xf32>
    %5 = arith.mulf %3#0, %4 : vector<1x128xf32>
    %cst_3 = arith.constant 6.250000e-02 : f32
    %6 = vector.broadcast %cst_3 : f32 to vector<1x128xf32>
    %7 = arith.mulf %3#1, %6 : vector<1x128xf32>
    %8 = arith.mulf %5, %5 : vector<1x128xf32>
    %9 = arith.subf %7, %8 : vector<1x128xf32>
    %cst_4 = arith.constant 0.000000e+00 : f32
    %10 = vector.broadcast %cst_4 : f32 to vector<1x128xf32>
    %11 = arith.maximumf %9, %10 : vector<1x128xf32>
    %cst_5 = arith.constant 9.99999974E-6 : f32
    %12 = vector.broadcast %cst_5 : f32 to vector<1x128xf32>
    %13 = arith.addf %11, %12 : vector<1x128xf32>
    %14 = math.rsqrt %13 : vector<1x128xf32>
    %c0_i32_6 = arith.constant 0 : i32
    %c4_i32_7 = arith.constant 4 : i32
    %15 = arith.addi %c0_i32_6, %c4_i32_7 : i32
    %c1_i32_8 = arith.constant 1 : i32
    scf.for %arg4 = %c0_i32_6 to %15 step %c1_i32_8  : i32 {
      %c0 = arith.constant 0 : index
      %16 = arith.index_cast %arg4 : i32 to index
      %c0_10 = arith.constant 0 : index
      %c0_11 = arith.constant 0 : index
      %17 = vector.load %arg3[%c0, %16, %c0_10, %c0_11] : memref<1x4x4x128xbf16, #tpu.memory_space<vmem>>, vector<1x1x4x128xbf16>
      %18 = vector.shape_cast %17 : vector<1x1x4x128xbf16> to vector<4x128xbf16>
      %19 = arith.extf %18 : vector<4x128xbf16> to vector<4x128xf32>
      %20 = vector.broadcast %5 : vector<1x128xf32> to vector<4x128xf32>
      %21 = arith.subf %19, %20 : vector<4x128xf32>
      %22 = vector.broadcast %14 : vector<1x128xf32> to vector<4x128xf32>
      %23 = arith.mulf %21, %22 : vector<4x128xf32>
      %cst_12 = arith.constant 2.000000e-01 : f32
      %24 = vector.broadcast %cst_12 : f32 to vector<4x128xf32>
      %25 = arith.mulf %24, %23 : vector<4x128xf32>
      %26 = arith.maximumf %23, %25 : vector<4x128xf32>
      %27 = arith.truncf %26 : vector<4x128xf32> to vector<4x128xbf16>
      %c0_13 = arith.constant 0 : index
      %28 = arith.index_cast %arg4 : i32 to index
      %c0_14 = arith.constant 0 : index
      %c0_15 = arith.constant 0 : index
      %29 = vector.load %arg3[%c0_13, %28, %c0_14, %c0_15] : memref<1x4x4x128xbf16, #tpu.memory_space<vmem>>, vector<1x1x4x128xbf16>
      %30 = vector.shape_cast %29 : vector<1x1x4x128xbf16> to vector<4x128xbf16>
      %31 = vector.shape_cast %27 : vector<4x128xbf16> to vector<1x1x4x128xbf16>
      tpu.vector_store %arg3[%c0_13, %28, %c0_14, %c0_15], %31 {strides = array<i32>} : memref<1x4x4x128xbf16, #tpu.memory_space<vmem>>, vector<1x1x4x128xbf16>,
    }
    %c4_i32_9 = arith.constant 4 : i32
    return
  }
  func.func @transform_0(%arg0: i32) -> (i32, i32, i32, i32) {
    %c0_i32 = arith.constant 0 : i32
    %c0_i32_0 = arith.constant 0 : i32
    %c0_i32_1 = arith.constant 0 : i32
    %c0_i32_2 = arith.constant 0 : i32
    return %arg0, %c0_i32, %c0_i32_0, %c0_i32_1 : i32, i32, i32, i32
  }
  func.func @transform_1(%arg0: i32) -> (i32, i32, i32) {
    %c0_i32 = arith.constant 0 : i32
    %c0_i32_0 = arith.constant 0 : i32
    %c0_i32_1 = arith.constant 0 : i32
    %c0_i32_2 = arith.constant 0 : i32
    return %c0_i32, %c0_i32_0, %c0_i32_1 : i32, i32, i32
  }
  func.func @transform_2(%arg0: i32) -> (i32, i32, i32, i32) {
    %c0_i32 = arith.constant 0 : i32
    %c0_i32_0 = arith.constant 0 : i32
    %c0_i32_1 = arith.constant 0 : i32
    %c0_i32_2 = arith.constant 0 : i32
    return %arg0, %c0_i32, %c0_i32_0, %c0_i32_1 : i32, i32, i32, i32
  }
}

module attributes {stable_mosaic.version = 11 : i64} {
  func.func @_conv_rows_kernel(%arg0: i32, %arg1: i32, %arg2: memref<1x8x8x64xbf16, #tpu.memory_space<vmem>>, %arg3: memref<16x64x128xbf16, #tpu.memory_space<vmem>>, %arg4: memref<1x128xf32, #tpu.memory_space<vmem>>, %arg5: memref<1x5x5x128xf32, #tpu.memory_space<vmem>>) attributes {dimension_semantics = [#tpu.dimension_semantics<parallel>, #tpu.dimension_semantics<parallel>], iteration_bounds = array<i64: 2, 1>, scalar_prefetch = 0 : i64, scratch_operands = 0 : i64, tpu.core_type = #tpu.core_type<tc>, window_params = [{transform_indices = @transform_0, window_bounds = array<i64: 1, 8, 8, 64>}, {pipeline_mode = #tpu.pipeline_mode<synchronous>, transform_indices = @transform_1, window_bounds = array<i64: 16, 64, 128>}, {pipeline_mode = #tpu.pipeline_mode<synchronous>, transform_indices = @transform_2, window_bounds = array<i64: 1, 128>}, {transform_indices = @transform_3, window_bounds = array<i64: 1, 5, 5, 128>}]} {
    %c5_i32 = arith.constant 5 : i32
    %0 = arith.muli %arg1, %c5_i32 : i32
    %c0_i32 = arith.constant 0 : i32
    %c5_i32_0 = arith.constant 5 : i32
    %1 = arith.addi %c0_i32, %c5_i32_0 : i32
    %c1_i32 = arith.constant 1 : i32
    scf.for %arg6 = %c0_i32 to %1 step %c1_i32  : i32 {
      %2 = arith.addi %0, %arg6 : i32
      %cst = arith.constant 0.000000e+00 : f32
      %3 = vector.broadcast %cst : f32 to vector<5x128xf32>
      %c0_i32_2 = arith.constant 0 : i32
      %4 = arith.addi %2, %c0_i32_2 : i32
      %c0 = arith.constant 0 : index
      %5 = arith.index_cast %4 : i32 to index
      %c0_3 = arith.constant 0 : index
      %c0_4 = arith.constant 0 : index
      %6 = vector.load %arg2[%c0, %5, %c0_3, %c0_4] : memref<1x8x8x64xbf16, #tpu.memory_space<vmem>>, vector<1x1x5x64xbf16>
      %7 = vector.shape_cast %6 : vector<1x1x5x64xbf16> to vector<5x64xbf16>
      %c0_5 = arith.constant 0 : index
      %c0_6 = arith.constant 0 : index
      %c0_7 = arith.constant 0 : index
      %8 = vector.load %arg3[%c0_5, %c0_6, %c0_7] : memref<16x64x128xbf16, #tpu.memory_space<vmem>>, vector<1x64x128xbf16>
      %9 = vector.shape_cast %8 : vector<1x64x128xbf16> to vector<64x128xbf16>
      %cst_8 = arith.constant dense<0.000000e+00> : vector<5x128xf32>
      %10 = tpu.matmul %7, %9, %cst_8 {dimension_numbers = #tpu.dot_dimension_numbers<[1], [0], [0], [1], [0, 0, 1, 1], [], []>} : vector<5x64xbf16>, vector<64x128xbf16>, vector<5x128xf32> -> vector<5x128xf32>
      %11 = arith.addf %3, %10 : vector<5x128xf32>
      %c0_i32_9 = arith.constant 0 : i32
      %12 = arith.addi %2, %c0_i32_9 : i32
      %c0_10 = arith.constant 0 : index
      %13 = arith.index_cast %12 : i32 to index
      %c1 = arith.constant 1 : index
      %c0_11 = arith.constant 0 : index
      %14 = vector.load %arg2[%c0_10, %13, %c1, %c0_11] : memref<1x8x8x64xbf16, #tpu.memory_space<vmem>>, vector<1x1x5x64xbf16>
      %15 = vector.shape_cast %14 : vector<1x1x5x64xbf16> to vector<5x64xbf16>
      %c1_12 = arith.constant 1 : index
      %c0_13 = arith.constant 0 : index
      %c0_14 = arith.constant 0 : index
      %16 = vector.load %arg3[%c1_12, %c0_13, %c0_14] : memref<16x64x128xbf16, #tpu.memory_space<vmem>>, vector<1x64x128xbf16>
      %17 = vector.shape_cast %16 : vector<1x64x128xbf16> to vector<64x128xbf16>
      %cst_15 = arith.constant dense<0.000000e+00> : vector<5x128xf32>
      %18 = tpu.matmul %15, %17, %cst_15 {dimension_numbers = #tpu.dot_dimension_numbers<[1], [0], [0], [1], [0, 0, 1, 1], [], []>} : vector<5x64xbf16>, vector<64x128xbf16>, vector<5x128xf32> -> vector<5x128xf32>
      %19 = arith.addf %11, %18 : vector<5x128xf32>
      %c0_i32_16 = arith.constant 0 : i32
      %20 = arith.addi %2, %c0_i32_16 : i32
      %c0_17 = arith.constant 0 : index
      %21 = arith.index_cast %20 : i32 to index
      %c2 = arith.constant 2 : index
      %c0_18 = arith.constant 0 : index
      %22 = vector.load %arg2[%c0_17, %21, %c2, %c0_18] : memref<1x8x8x64xbf16, #tpu.memory_space<vmem>>, vector<1x1x5x64xbf16>
      %23 = vector.shape_cast %22 : vector<1x1x5x64xbf16> to vector<5x64xbf16>
      %c2_19 = arith.constant 2 : index
      %c0_20 = arith.constant 0 : index
      %c0_21 = arith.constant 0 : index
      %24 = vector.load %arg3[%c2_19, %c0_20, %c0_21] : memref<16x64x128xbf16, #tpu.memory_space<vmem>>, vector<1x64x128xbf16>
      %25 = vector.shape_cast %24 : vector<1x64x128xbf16> to vector<64x128xbf16>
      %cst_22 = arith.constant dense<0.000000e+00> : vector<5x128xf32>
      %26 = tpu.matmul %23, %25, %cst_22 {dimension_numbers = #tpu.dot_dimension_numbers<[1], [0], [0], [1], [0, 0, 1, 1], [], []>} : vector<5x64xbf16>, vector<64x128xbf16>, vector<5x128xf32> -> vector<5x128xf32>
      %27 = arith.addf %19, %26 : vector<5x128xf32>
      %c0_i32_23 = arith.constant 0 : i32
      %28 = arith.addi %2, %c0_i32_23 : i32
      %c0_24 = arith.constant 0 : index
      %29 = arith.index_cast %28 : i32 to index
      %c3 = arith.constant 3 : index
      %c0_25 = arith.constant 0 : index
      %30 = vector.load %arg2[%c0_24, %29, %c3, %c0_25] : memref<1x8x8x64xbf16, #tpu.memory_space<vmem>>, vector<1x1x5x64xbf16>
      %31 = vector.shape_cast %30 : vector<1x1x5x64xbf16> to vector<5x64xbf16>
      %c3_26 = arith.constant 3 : index
      %c0_27 = arith.constant 0 : index
      %c0_28 = arith.constant 0 : index
      %32 = vector.load %arg3[%c3_26, %c0_27, %c0_28] : memref<16x64x128xbf16, #tpu.memory_space<vmem>>, vector<1x64x128xbf16>
      %33 = vector.shape_cast %32 : vector<1x64x128xbf16> to vector<64x128xbf16>
      %cst_29 = arith.constant dense<0.000000e+00> : vector<5x128xf32>
      %34 = tpu.matmul %31, %33, %cst_29 {dimension_numbers = #tpu.dot_dimension_numbers<[1], [0], [0], [1], [0, 0, 1, 1], [], []>} : vector<5x64xbf16>, vector<64x128xbf16>, vector<5x128xf32> -> vector<5x128xf32>
      %35 = arith.addf %27, %34 : vector<5x128xf32>
      %c1_i32_30 = arith.constant 1 : i32
      %36 = arith.addi %2, %c1_i32_30 : i32
      %c0_31 = arith.constant 0 : index
      %37 = arith.index_cast %36 : i32 to index
      %c0_32 = arith.constant 0 : index
      %c0_33 = arith.constant 0 : index
      %38 = vector.load %arg2[%c0_31, %37, %c0_32, %c0_33] : memref<1x8x8x64xbf16, #tpu.memory_space<vmem>>, vector<1x1x5x64xbf16>
      %39 = vector.shape_cast %38 : vector<1x1x5x64xbf16> to vector<5x64xbf16>
      %c4 = arith.constant 4 : index
      %c0_34 = arith.constant 0 : index
      %c0_35 = arith.constant 0 : index
      %40 = vector.load %arg3[%c4, %c0_34, %c0_35] : memref<16x64x128xbf16, #tpu.memory_space<vmem>>, vector<1x64x128xbf16>
      %41 = vector.shape_cast %40 : vector<1x64x128xbf16> to vector<64x128xbf16>
      %cst_36 = arith.constant dense<0.000000e+00> : vector<5x128xf32>
      %42 = tpu.matmul %39, %41, %cst_36 {dimension_numbers = #tpu.dot_dimension_numbers<[1], [0], [0], [1], [0, 0, 1, 1], [], []>} : vector<5x64xbf16>, vector<64x128xbf16>, vector<5x128xf32> -> vector<5x128xf32>
      %43 = arith.addf %35, %42 : vector<5x128xf32>
      %c1_i32_37 = arith.constant 1 : i32
      %44 = arith.addi %2, %c1_i32_37 : i32
      %c0_38 = arith.constant 0 : index
      %45 = arith.index_cast %44 : i32 to index
      %c1_39 = arith.constant 1 : index
      %c0_40 = arith.constant 0 : index
      %46 = vector.load %arg2[%c0_38, %45, %c1_39, %c0_40] : memref<1x8x8x64xbf16, #tpu.memory_space<vmem>>, vector<1x1x5x64xbf16>
      %47 = vector.shape_cast %46 : vector<1x1x5x64xbf16> to vector<5x64xbf16>
      %c5 = arith.constant 5 : index
      %c0_41 = arith.constant 0 : index
      %c0_42 = arith.constant 0 : index
      %48 = vector.load %arg3[%c5, %c0_41, %c0_42] : memref<16x64x128xbf16, #tpu.memory_space<vmem>>, vector<1x64x128xbf16>
      %49 = vector.shape_cast %48 : vector<1x64x128xbf16> to vector<64x128xbf16>
      %cst_43 = arith.constant dense<0.000000e+00> : vector<5x128xf32>
      %50 = tpu.matmul %47, %49, %cst_43 {dimension_numbers = #tpu.dot_dimension_numbers<[1], [0], [0], [1], [0, 0, 1, 1], [], []>} : vector<5x64xbf16>, vector<64x128xbf16>, vector<5x128xf32> -> vector<5x128xf32>
      %51 = arith.addf %43, %50 : vector<5x128xf32>
      %c1_i32_44 = arith.constant 1 : i32
      %52 = arith.addi %2, %c1_i32_44 : i32
      %c0_45 = arith.constant 0 : index
      %53 = arith.index_cast %52 : i32 to index
      %c2_46 = arith.constant 2 : index
      %c0_47 = arith.constant 0 : index
      %54 = vector.load %arg2[%c0_45, %53, %c2_46, %c0_47] : memref<1x8x8x64xbf16, #tpu.memory_space<vmem>>, vector<1x1x5x64xbf16>
      %55 = vector.shape_cast %54 : vector<1x1x5x64xbf16> to vector<5x64xbf16>
      %c6 = arith.constant 6 : index
      %c0_48 = arith.constant 0 : index
      %c0_49 = arith.constant 0 : index
      %56 = vector.load %arg3[%c6, %c0_48, %c0_49] : memref<16x64x128xbf16, #tpu.memory_space<vmem>>, vector<1x64x128xbf16>
      %57 = vector.shape_cast %56 : vector<1x64x128xbf16> to vector<64x128xbf16>
      %cst_50 = arith.constant dense<0.000000e+00> : vector<5x128xf32>
      %58 = tpu.matmul %55, %57, %cst_50 {dimension_numbers = #tpu.dot_dimension_numbers<[1], [0], [0], [1], [0, 0, 1, 1], [], []>} : vector<5x64xbf16>, vector<64x128xbf16>, vector<5x128xf32> -> vector<5x128xf32>
      %59 = arith.addf %51, %58 : vector<5x128xf32>
      %c1_i32_51 = arith.constant 1 : i32
      %60 = arith.addi %2, %c1_i32_51 : i32
      %c0_52 = arith.constant 0 : index
      %61 = arith.index_cast %60 : i32 to index
      %c3_53 = arith.constant 3 : index
      %c0_54 = arith.constant 0 : index
      %62 = vector.load %arg2[%c0_52, %61, %c3_53, %c0_54] : memref<1x8x8x64xbf16, #tpu.memory_space<vmem>>, vector<1x1x5x64xbf16>
      %63 = vector.shape_cast %62 : vector<1x1x5x64xbf16> to vector<5x64xbf16>
      %c7 = arith.constant 7 : index
      %c0_55 = arith.constant 0 : index
      %c0_56 = arith.constant 0 : index
      %64 = vector.load %arg3[%c7, %c0_55, %c0_56] : memref<16x64x128xbf16, #tpu.memory_space<vmem>>, vector<1x64x128xbf16>
      %65 = vector.shape_cast %64 : vector<1x64x128xbf16> to vector<64x128xbf16>
      %cst_57 = arith.constant dense<0.000000e+00> : vector<5x128xf32>
      %66 = tpu.matmul %63, %65, %cst_57 {dimension_numbers = #tpu.dot_dimension_numbers<[1], [0], [0], [1], [0, 0, 1, 1], [], []>} : vector<5x64xbf16>, vector<64x128xbf16>, vector<5x128xf32> -> vector<5x128xf32>
      %67 = arith.addf %59, %66 : vector<5x128xf32>
      %c2_i32 = arith.constant 2 : i32
      %68 = arith.addi %2, %c2_i32 : i32
      %c0_58 = arith.constant 0 : index
      %69 = arith.index_cast %68 : i32 to index
      %c0_59 = arith.constant 0 : index
      %c0_60 = arith.constant 0 : index
      %70 = vector.load %arg2[%c0_58, %69, %c0_59, %c0_60] : memref<1x8x8x64xbf16, #tpu.memory_space<vmem>>, vector<1x1x5x64xbf16>
      %71 = vector.shape_cast %70 : vector<1x1x5x64xbf16> to vector<5x64xbf16>
      %c8 = arith.constant 8 : index
      %c0_61 = arith.constant 0 : index
      %c0_62 = arith.constant 0 : index
      %72 = vector.load %arg3[%c8, %c0_61, %c0_62] : memref<16x64x128xbf16, #tpu.memory_space<vmem>>, vector<1x64x128xbf16>
      %73 = vector.shape_cast %72 : vector<1x64x128xbf16> to vector<64x128xbf16>
      %cst_63 = arith.constant dense<0.000000e+00> : vector<5x128xf32>
      %74 = tpu.matmul %71, %73, %cst_63 {dimension_numbers = #tpu.dot_dimension_numbers<[1], [0], [0], [1], [0, 0, 1, 1], [], []>} : vector<5x64xbf16>, vector<64x128xbf16>, vector<5x128xf32> -> vector<5x128xf32>
      %75 = arith.addf %67, %74 : vector<5x128xf32>
      %c2_i32_64 = arith.constant 2 : i32
      %76 = arith.addi %2, %c2_i32_64 : i32
      %c0_65 = arith.constant 0 : index
      %77 = arith.index_cast %76 : i32 to index
      %c1_66 = arith.constant 1 : index
      %c0_67 = arith.constant 0 : index
      %78 = vector.load %arg2[%c0_65, %77, %c1_66, %c0_67] : memref<1x8x8x64xbf16, #tpu.memory_space<vmem>>, vector<1x1x5x64xbf16>
      %79 = vector.shape_cast %78 : vector<1x1x5x64xbf16> to vector<5x64xbf16>
      %c9 = arith.constant 9 : index
      %c0_68 = arith.constant 0 : index
      %c0_69 = arith.constant 0 : index
      %80 = vector.load %arg3[%c9, %c0_68, %c0_69] : memref<16x64x128xbf16, #tpu.memory_space<vmem>>, vector<1x64x128xbf16>
      %81 = vector.shape_cast %80 : vector<1x64x128xbf16> to vector<64x128xbf16>
      %cst_70 = arith.constant dense<0.000000e+00> : vector<5x128xf32>
      %82 = tpu.matmul %79, %81, %cst_70 {dimension_numbers = #tpu.dot_dimension_numbers<[1], [0], [0], [1], [0, 0, 1, 1], [], []>} : vector<5x64xbf16>, vector<64x128xbf16>, vector<5x128xf32> -> vector<5x128xf32>
      %83 = arith.addf %75, %82 : vector<5x128xf32>
      %c2_i32_71 = arith.constant 2 : i32
      %84 = arith.addi %2, %c2_i32_71 : i32
      %c0_72 = arith.constant 0 : index
      %85 = arith.index_cast %84 : i32 to index
      %c2_73 = arith.constant 2 : index
      %c0_74 = arith.constant 0 : index
      %86 = vector.load %arg2[%c0_72, %85, %c2_73, %c0_74] : memref<1x8x8x64xbf16, #tpu.memory_space<vmem>>, vector<1x1x5x64xbf16>
      %87 = vector.shape_cast %86 : vector<1x1x5x64xbf16> to vector<5x64xbf16>
      %c10 = arith.constant 10 : index
      %c0_75 = arith.constant 0 : index
      %c0_76 = arith.constant 0 : index
      %88 = vector.load %arg3[%c10, %c0_75, %c0_76] : memref<16x64x128xbf16, #tpu.memory_space<vmem>>, vector<1x64x128xbf16>
      %89 = vector.shape_cast %88 : vector<1x64x128xbf16> to vector<64x128xbf16>
      %cst_77 = arith.constant dense<0.000000e+00> : vector<5x128xf32>
      %90 = tpu.matmul %87, %89, %cst_77 {dimension_numbers = #tpu.dot_dimension_numbers<[1], [0], [0], [1], [0, 0, 1, 1], [], []>} : vector<5x64xbf16>, vector<64x128xbf16>, vector<5x128xf32> -> vector<5x128xf32>
      %91 = arith.addf %83, %90 : vector<5x128xf32>
      %c2_i32_78 = arith.constant 2 : i32
      %92 = arith.addi %2, %c2_i32_78 : i32
      %c0_79 = arith.constant 0 : index
      %93 = arith.index_cast %92 : i32 to index
      %c3_80 = arith.constant 3 : index
      %c0_81 = arith.constant 0 : index
      %94 = vector.load %arg2[%c0_79, %93, %c3_80, %c0_81] : memref<1x8x8x64xbf16, #tpu.memory_space<vmem>>, vector<1x1x5x64xbf16>
      %95 = vector.shape_cast %94 : vector<1x1x5x64xbf16> to vector<5x64xbf16>
      %c11 = arith.constant 11 : index
      %c0_82 = arith.constant 0 : index
      %c0_83 = arith.constant 0 : index
      %96 = vector.load %arg3[%c11, %c0_82, %c0_83] : memref<16x64x128xbf16, #tpu.memory_space<vmem>>, vector<1x64x128xbf16>
      %97 = vector.shape_cast %96 : vector<1x64x128xbf16> to vector<64x128xbf16>
      %cst_84 = arith.constant dense<0.000000e+00> : vector<5x128xf32>
      %98 = tpu.matmul %95, %97, %cst_84 {dimension_numbers = #tpu.dot_dimension_numbers<[1], [0], [0], [1], [0, 0, 1, 1], [], []>} : vector<5x64xbf16>, vector<64x128xbf16>, vector<5x128xf32> -> vector<5x128xf32>
      %99 = arith.addf %91, %98 : vector<5x128xf32>
      %c3_i32 = arith.constant 3 : i32
      %100 = arith.addi %2, %c3_i32 : i32
      %c0_85 = arith.constant 0 : index
      %101 = arith.index_cast %100 : i32 to index
      %c0_86 = arith.constant 0 : index
      %c0_87 = arith.constant 0 : index
      %102 = vector.load %arg2[%c0_85, %101, %c0_86, %c0_87] : memref<1x8x8x64xbf16, #tpu.memory_space<vmem>>, vector<1x1x5x64xbf16>
      %103 = vector.shape_cast %102 : vector<1x1x5x64xbf16> to vector<5x64xbf16>
      %c12 = arith.constant 12 : index
      %c0_88 = arith.constant 0 : index
      %c0_89 = arith.constant 0 : index
      %104 = vector.load %arg3[%c12, %c0_88, %c0_89] : memref<16x64x128xbf16, #tpu.memory_space<vmem>>, vector<1x64x128xbf16>
      %105 = vector.shape_cast %104 : vector<1x64x128xbf16> to vector<64x128xbf16>
      %cst_90 = arith.constant dense<0.000000e+00> : vector<5x128xf32>
      %106 = tpu.matmul %103, %105, %cst_90 {dimension_numbers = #tpu.dot_dimension_numbers<[1], [0], [0], [1], [0, 0, 1, 1], [], []>} : vector<5x64xbf16>, vector<64x128xbf16>, vector<5x128xf32> -> vector<5x128xf32>
      %107 = arith.addf %99, %106 : vector<5x128xf32>
      %c3_i32_91 = arith.constant 3 : i32
      %108 = arith.addi %2, %c3_i32_91 : i32
      %c0_92 = arith.constant 0 : index
      %109 = arith.index_cast %108 : i32 to index
      %c1_93 = arith.constant 1 : index
      %c0_94 = arith.constant 0 : index
      %110 = vector.load %arg2[%c0_92, %109, %c1_93, %c0_94] : memref<1x8x8x64xbf16, #tpu.memory_space<vmem>>, vector<1x1x5x64xbf16>
      %111 = vector.shape_cast %110 : vector<1x1x5x64xbf16> to vector<5x64xbf16>
      %c13 = arith.constant 13 : index
      %c0_95 = arith.constant 0 : index
      %c0_96 = arith.constant 0 : index
      %112 = vector.load %arg3[%c13, %c0_95, %c0_96] : memref<16x64x128xbf16, #tpu.memory_space<vmem>>, vector<1x64x128xbf16>
      %113 = vector.shape_cast %112 : vector<1x64x128xbf16> to vector<64x128xbf16>
      %cst_97 = arith.constant dense<0.000000e+00> : vector<5x128xf32>
      %114 = tpu.matmul %111, %113, %cst_97 {dimension_numbers = #tpu.dot_dimension_numbers<[1], [0], [0], [1], [0, 0, 1, 1], [], []>} : vector<5x64xbf16>, vector<64x128xbf16>, vector<5x128xf32> -> vector<5x128xf32>
      %115 = arith.addf %107, %114 : vector<5x128xf32>
      %c3_i32_98 = arith.constant 3 : i32
      %116 = arith.addi %2, %c3_i32_98 : i32
      %c0_99 = arith.constant 0 : index
      %117 = arith.index_cast %116 : i32 to index
      %c2_100 = arith.constant 2 : index
      %c0_101 = arith.constant 0 : index
      %118 = vector.load %arg2[%c0_99, %117, %c2_100, %c0_101] : memref<1x8x8x64xbf16, #tpu.memory_space<vmem>>, vector<1x1x5x64xbf16>
      %119 = vector.shape_cast %118 : vector<1x1x5x64xbf16> to vector<5x64xbf16>
      %c14 = arith.constant 14 : index
      %c0_102 = arith.constant 0 : index
      %c0_103 = arith.constant 0 : index
      %120 = vector.load %arg3[%c14, %c0_102, %c0_103] : memref<16x64x128xbf16, #tpu.memory_space<vmem>>, vector<1x64x128xbf16>
      %121 = vector.shape_cast %120 : vector<1x64x128xbf16> to vector<64x128xbf16>
      %cst_104 = arith.constant dense<0.000000e+00> : vector<5x128xf32>
      %122 = tpu.matmul %119, %121, %cst_104 {dimension_numbers = #tpu.dot_dimension_numbers<[1], [0], [0], [1], [0, 0, 1, 1], [], []>} : vector<5x64xbf16>, vector<64x128xbf16>, vector<5x128xf32> -> vector<5x128xf32>
      %123 = arith.addf %115, %122 : vector<5x128xf32>
      %c3_i32_105 = arith.constant 3 : i32
      %124 = arith.addi %2, %c3_i32_105 : i32
      %c0_106 = arith.constant 0 : index
      %125 = arith.index_cast %124 : i32 to index
      %c3_107 = arith.constant 3 : index
      %c0_108 = arith.constant 0 : index
      %126 = vector.load %arg2[%c0_106, %125, %c3_107, %c0_108] : memref<1x8x8x64xbf16, #tpu.memory_space<vmem>>, vector<1x1x5x64xbf16>
      %127 = vector.shape_cast %126 : vector<1x1x5x64xbf16> to vector<5x64xbf16>
      %c15 = arith.constant 15 : index
      %c0_109 = arith.constant 0 : index
      %c0_110 = arith.constant 0 : index
      %128 = vector.load %arg3[%c15, %c0_109, %c0_110] : memref<16x64x128xbf16, #tpu.memory_space<vmem>>, vector<1x64x128xbf16>
      %129 = vector.shape_cast %128 : vector<1x64x128xbf16> to vector<64x128xbf16>
      %cst_111 = arith.constant dense<0.000000e+00> : vector<5x128xf32>
      %130 = tpu.matmul %127, %129, %cst_111 {dimension_numbers = #tpu.dot_dimension_numbers<[1], [0], [0], [1], [0, 0, 1, 1], [], []>} : vector<5x64xbf16>, vector<64x128xbf16>, vector<5x128xf32> -> vector<5x128xf32>
      %131 = arith.addf %123, %130 : vector<5x128xf32>
      %c0_112 = arith.constant 0 : index
      %c0_113 = arith.constant 0 : index
      %132 = vector.load %arg4[%c0_112, %c0_113] : memref<1x128xf32, #tpu.memory_space<vmem>>, vector<1x128xf32>
      %133 = vector.broadcast %132 : vector<1x128xf32> to vector<5x128xf32>
      %134 = arith.addf %131, %133 : vector<5x128xf32>
      %c0_114 = arith.constant 0 : index
      %135 = arith.index_cast %arg6 : i32 to index
      %c0_115 = arith.constant 0 : index
      %c0_116 = arith.constant 0 : index
      %136 = vector.load %arg5[%c0_114, %135, %c0_115, %c0_116] : memref<1x5x5x128xf32, #tpu.memory_space<vmem>>, vector<1x1x5x128xf32>
      %137 = vector.shape_cast %136 : vector<1x1x5x128xf32> to vector<5x128xf32>
      %138 = vector.shape_cast %134 : vector<5x128xf32> to vector<1x1x5x128xf32>
      tpu.vector_store %arg5[%c0_114, %135, %c0_115, %c0_116], %138 {strides = array<i32>} : memref<1x5x5x128xf32, #tpu.memory_space<vmem>>, vector<1x1x5x128xf32>,
    }
    %c5_i32_1 = arith.constant 5 : i32
    return
  }
  func.func @transform_0(%arg0: i32, %arg1: i32) -> (i32, i32, i32, i32) {
    %c0_i32 = arith.constant 0 : i32
    %c0_i32_0 = arith.constant 0 : i32
    %c0_i32_1 = arith.constant 0 : i32
    %c0_i32_2 = arith.constant 0 : i32
    return %arg0, %c0_i32, %c0_i32_0, %c0_i32_1 : i32, i32, i32, i32
  }
  func.func @transform_1(%arg0: i32, %arg1: i32) -> (i32, i32, i32) {
    %c0_i32 = arith.constant 0 : i32
    %c0_i32_0 = arith.constant 0 : i32
    %c0_i32_1 = arith.constant 0 : i32
    %c0_i32_2 = arith.constant 0 : i32
    return %c0_i32, %c0_i32_0, %c0_i32_1 : i32, i32, i32
  }
  func.func @transform_2(%arg0: i32, %arg1: i32) -> (i32, i32) {
    %c0_i32 = arith.constant 0 : i32
    %c0_i32_0 = arith.constant 0 : i32
    %c0_i32_1 = arith.constant 0 : i32
    return %c0_i32, %c0_i32_0 : i32, i32
  }
  func.func @transform_3(%arg0: i32, %arg1: i32) -> (i32, i32, i32, i32) {
    %c0_i32 = arith.constant 0 : i32
    %c0_i32_0 = arith.constant 0 : i32
    %c0_i32_1 = arith.constant 0 : i32
    return %arg0, %arg1, %c0_i32, %c0_i32_0 : i32, i32, i32, i32
  }
}

</mosaic_0001>

<bundles_post_ra>
// kernel: nlayer_discriminator_forward.5
= control target key start
LH: loop header
LB: loop body
LE: loop exit
PB: predicated region body
PF: predicated region fallthrough
CT: control target
= control target key end

     0   :  { %s755_s12 = smov 0   ;;  %s757_s13 = smov 0   ;;  %s830_s0 = inlined_call_operand.vmem [shape: bf16[2,10,10,16], index: 0, kind: input, shape index: {}]   ;;  %s831_s1 = inlined_call_operand.vmem [shape: bf16[4,16,128], index: 1, kind: input, shape index: {}]   ;;  %s832_s2 = inlined_call_operand.vmem [shape: f32[1,128], index: 2, kind: input, shape index: {}]   ;;  %s833_s3 = inlined_call_operand.vmem [shape: bf16[2,9,9,128], index: 3, kind: output, shape index: {}]  }
   0x1   :  { %s759_s14 = smov 0  }
   0x2 LB: > { %s25_s15 = sadd.s32 1, %s723_s13  ;;  %p592_p0 = scmp.ge.s32.totalorder %s727_s14, 1  ;;  %s727_s14 = sphi %s759_s14, %s13_s14   ;;  %s723_s13 = sphi %s757_s13, %s835_s13   ;;  %s719_s12 = sphi %s755_s12, %s834_s12  }
   0x3   : > { %p27_p1 = scmp.ge.s32.totalorder %s25_s15, 2  ;;  %p151_p2 = scmp.lt.s32.totalorder %s727_s14, 3 }
   0x5   : > { %s837_s15 = smov (%p27_p1, %s25_s15), 0  ;;  %p152_p3 = pnand %p592_p0, %p151_p2 }
   0x6   : > { %p180_p4 = scmp.lt.s32.totalorder (!%p152_p3), %s719_s12, 1  ;;  %s783_s24 = smov (!%p152_p3), 0  }
   0x7   : > { %155 = sbr.rel (%p152_p3) target bundleno = 264 (0x108), region = 32 }
   0xe   : > { %s839_s12 = smov (!%p180_p4, %s719_s12), 1 }
   0xf   : > { %s659_s16 = smul.u32 80, %s839_s12 }
  0x10   : > { %s660_s17 = smul.u32 72, %s839_s12 }
  0x11   : > { %s776_s20 = scalar_lea.vmem %s830_s0, %s659_s16 }
  0x12   : > { %s781_s23 = scalar_lea.vmem %s833_s3, %s660_s17 }
  0x13 LB: >> { %v695_v0 = vld [vmem:[%s831_s1 + $0x8] sm:$0xff]   ;;  %v733_v1 = vmov 0.0   ;;  %v696_v2 = vld [vmem:[%s831_s1] sm:$0xff]   ;;  %vm734_vm0 = vmmov 0   ;;  %s623_s29 = sshll.u32 %s731_s24, 3  ;;  %vm233_vm1 = vcmask 130048   ;;  %s731_s24 = sphi %s783_s24, %s203_s24  }
  0x14   : >> { %635 = vmatprep.subr.bf16.mxu0 %v733_v1  ;;  %641 = vmatprep.subr.bf16.mxu1 %v733_v1  ;;  %s207_s30 = scalar_lea.vmem %s776_s20, %s623_s29  ;;  %v700_v7 = vld [vmem:[%s831_s1 + $0x18] sm:$0xff]   ;;  %v699_v11 = vld [vmem:[%s831_s1 + $0x10] sm:$0xff]   ;;  %v616_v32 = vld [vmem:[%s832_s2] ss:$0 sm:$0xff]  ;;  %s477_s10 = scalar_lea.vmem %s781_s23, %s623_s29  ;;  %vm479_vm2 = vcmask 1040384  }
  0x15   : >> { %636 = vmatpush3.bf16.msra.mxu0 %v695_v0  ;;  %643 = vmatprep.mubr.msk.bf16.mxu1 %vm734_vm0, %v733_v1  ;;  %v697_v3 = vld [vmem:[%s207_s30] sm:$0x1f]   ;;  %v698_v4 = vld [vmem:[%s207_s30 + $0x8] sm:$0x1f]   ;;  %vm480_vm3 = vsmask.f32 256 }
  0x16   : >> { %642 = vmatpush3.bf16.msra.mxu1 %v696_v2  ;;  %637 = vmatprep.mubr.msk.bf16.mxu0 %vm734_vm0, %v733_v1  ;;  %v221_v5 = vshrl.u32 %v697_v3, 16  ;;  %v223_v6 = vshll.u32 %v697_v3, 16  ;;  %v396_v8 = vshrl.u32 %v698_v4, 16  ;;  %v398_v9 = vshll.u32 %v698_v4, 16  ;;  %v482_v45 = vld [vmem:[%s477_s10 + $0x4] sm:$0x1]  ;;  %vm481_vm4 = vmand %vm479_vm2, %vm480_vm3 }
  0x17   : >> { %647 = vmatprep.subr.bf16.mxu0 %v733_v1  ;;  %653 = vmatprep.subr.bf16.mxu1 %v733_v1  ;;  %s203_s24 = sadd.s32 1, %s731_s24  }
  0x18   : >> { %v225_v10 = vrot.slane %v223_v6, 1  ;;  %v400_v12 = vrot.slane %v398_v9, 1  ;;  %p200_p5 = scmp.ge.s32.totalorder %s203_s24, 9  }
  0x19   : >> { %644 = vmatmul.mubr.msk.bf16.vlgmr.msra.gmra.mrb[0].mxu1 %vm233_vm1, %v697_v3 }
  0x1a   : >> { %655 = vmatprep.mubr.msk.bf16.mxu1 %vm734_vm0, %v733_v1  ;;  %654 = vmatpush3.bf16.msra.mxu1 %v700_v7  ;;  %v226_v13 = vor.u32 %v225_v10, %v221_v5  ;;  %v401_v14 = vor.u32 %v400_v12, %v396_v8 }
  0x1c   : >> { %638 = vmatmul.mubr.msk.bf16.vlgmr.msra.gmra.mrb[0].mxu0 %vm233_vm1, %v226_v13 }
  0x1d   : >> { %648 = vmatpush3.bf16.msra.mxu0 %v699_v11  ;;  %649 = vmatprep.mubr.msk.bf16.mxu0 %vm734_vm0, %v733_v1 }
  0x21   : >> { %656 = vmatmul.mubr.msk.bf16.vlgmr.msra.gmra.mrb[4].mxu1 %vm233_vm1, %v401_v14 }
  0x24   : >> { %650 = vmatmul.mubr.msk.bf16.vlgmr.msra.gmra.mrb[4].mxu0 %vm233_vm1, %v698_v4 }
  0xec   : >> { %v320_v15 = vpop.f32.mrb[0].mxu1 }
  0xed   : >> { %v645_v16 = vpop.f32.mrb[1].mxu1 }
  0xee   : >> { %v323_v17 = vpop.f32.mrb[2].mxu1 }
  0xef   : >> { %v646_v18 = vpop.f32.mrb[3].mxu1  ;;  %v271_v19 = vpop.f32.mrb[0].mxu0 }
  0xf0   : >> { %v321_v20 = vadd.f32 %v320_v15, %v271_v19  ;;  %v639_v21 = vpop.f32.mrb[1].mxu0 }
  0xf1   : >> { %v274_v22 = vpop.f32.mrb[2].mxu0 }
  0xf2   : >> { %v324_v24 = vadd.f32 %v323_v17, %v274_v22  ;;  %v640_v25 = vpop.f32.mrb[3].mxu0 }
  0xf4   : >> { %v445_v23 = vpop.f32.mrb[4].mxu1 }
  0xf5   : >> { %v657_v26 = vpop.f32.mrb[5].mxu1 }
  0xf6   : >> { %v448_v27 = vpop.f32.mrb[6].mxu1 }
  0xf7   : >> { %v658_v28 = vpop.f32.mrb[7].mxu1  ;;  %v384_v29 = vpop.f32.mrb[4].mxu0 }
  0xf8   : >> { %v391_v30 = vadd.f32 %v384_v29, %v321_v20  ;;  %v651_v31 = vpop.f32.mrb[5].mxu0 }
  0xf9   : >> { %v387_v33 = vpop.f32.mrb[6].mxu0 }
  0xfa   : >> { %v452_v34 = vadd.f32 %v445_v23, %v391_v30  ;;  %v392_v35 = vadd.f32 %v387_v33, %v324_v24  ;;  %v652_v36 = vpop.f32.mrb[7].mxu0 }
  0xfc   : >> { %v461_v37 = vadd.f32 %v616_v32, %v452_v34  ;;  %v453_v38 = vadd.f32 %v448_v27, %v392_v35 }
  0xfe   : >> { %v463_v39 = vmul.f32 0.2, %v461_v37  ;;  %v462_v40 = vadd.f32 %v616_v32, %v453_v38 }
 0x100   : >> { %v465_v41 = vmax.f32 %v461_v37, %v463_v39  ;;  %v464_v42 = vmul.f32 0.2, %v462_v40 }
 0x101   : > { %202 = sbr.rel (!%p200_p5) target bundleno = 19 (0x13), region = 75 }
 0x102   : >> { %v624_v43 = vpack.c.bf16 %v465_v41, %v465_v41  ;;  %v466_v44 = vmax.f32 %v462_v40, %v464_v42 }
 0x104   : >> { %478 = vst [vmem:[%s477_s10] sm:$0xf] %v624_v43  ;;  %v625_v46 = vpack.c.bf16 %v466_v44, %v466_v44 }
 0x106   : >> { %v483_v47 = vsel %vm481_vm4, %v625_v46, %v482_v45 }
 0x107   : >> { %484 = vst [vmem:[%s477_s10 + $0x4] sm:$0x1] %v483_v47 }
 0x108 PF: > { %s13_s14 = sadd.s32 1, %s727_s14   ;;  %s834_s12 = smov %s723_s13 }
 0x109   : > { %p10_p6 = scmp.ge.s32.totalorder %s13_s14, 4   ;;  %s835_s13 = smov %s837_s15 }
 0x10b   :  { %12 = sbr.rel (!%p10_p6) target bundleno = 2 (0x2), region = 86 }

// kernel: nlayer_discriminator_forward.6
= control target key start
LH: loop header
LB: loop body
LE: loop exit
PB: predicated region body
PF: predicated region fallthrough
CT: control target
= control target key end

     0   :  { %s762_s9 = smov 0   ;;  %s855_s0 = inlined_call_operand.vmem [shape: bf16[2,6,6,32], index: 0, kind: input, shape index: {}]   ;;  %s856_s1 = inlined_call_operand.vmem [shape: bf16[4,32,128], index: 1, kind: input, shape index: {}]   ;;  %s857_s2 = inlined_call_operand.vmem [shape: bf16[2,5,5,128], index: 2, kind: output, shape index: {}]  }
   0x1 LB: > { %s556_s10 = sadd.s32 4294967295, %s727_s9   ;;  %p560_p0 = scmp.ge.s32.totalorder %s727_s9, 1  ;;  %s727_s9 = sphi %s762_s9, %s12_s9  }
   0x2   : > { %p112_p1 = scmp.lt.s32.totalorder %s727_s9, 3 }
   0x4   : > { %p113_p2 = pnand %p560_p0, %p112_p1 }
   0x5   : > { %p134_p3 = scmp.lt.s32.totalorder (!%p113_p2), %s556_s10, 1  ;;  %v780_v0 = vmov (!%p113_p2), 0.0   ;;  %v782_v1 = vmov (!%p113_p2), 0.0   ;;  %s784_s19 = smov (!%p113_p2), 0  }
   0x6   : > { %116 = sbr.rel (%p113_p2) target bundleno = 308 (0x134), region = 28 }
   0xd   : > { %s863_s10 = smov (!%p134_p3, %s556_s10), 1 }
   0xe   : > { %s649_s11 = smul.u32 24, %s863_s10 }
   0xf   : > { %s650_s12 = smul.u32 20, %s863_s10 }
  0x10   : > { %s773_s15 = scalar_lea.vmem %s855_s0, %s649_s11 }
  0x11   : > { %s778_s18 = scalar_lea.vmem %s857_s2, %s650_s12 }
  0x12 LB: >> { %v693_v2 = vld [vmem:[%s856_s1 + $0x20] sm:$0xff]   ;;  %v745_v3 = vmov 0.0   ;;  %v694_v4 = vld [vmem:[%s856_s1 + $0x10] sm:$0xff]   ;;  %v695_v5 = vld [vmem:[%s856_s1 + $0x28] sm:$0xff]   ;;  %vm746_vm0 = vmmov 0   ;;  %s563_s26 = sshll.u32 %s739_s19, 2  ;;  %s739_s19 = sphi %s784_s19, %s150_s19   ;;  %v735_v1 = vphi %v782_v1, %v861_v1   ;;  %v731_v0 = vphi %v780_v0, %v860_v0  }
  0x13   : >> { %624 = vmatprep.subr.bf16.mxu0 %v745_v3  ;;  %608 = vmatprep.subr.bf16.mxu1 %v745_v3  ;;  %v696_v6 = vld [vmem:[%s856_s1 + $0x18] sm:$0xff]   ;;  %s154_s29 = scalar_lea.vmem %s773_s15, %s563_s26  ;;  %vm187_vm1 = vcmask 261120   ;;  %v700_v11 = vld [vmem:[%s856_s1 + $0x30] sm:$0xff]   ;;  %v699_v16 = vld [vmem:[%s856_s1] sm:$0xff]   ;;  %s424_s11 = scalar_lea.vmem %s778_s18, %s563_s26  ;;  %vm425_vm2 = vcmask 1042432   ;;  %vm431_vm4 = vcmask 1044480  }
  0x14   : >> { %625 = vmatpush3.bf16.msra.mxu0 %v693_v2  ;;  %628 = vmatprep.mubr.msk.bf16.mxu0 %vm746_vm0, %v745_v3  ;;  %v155_v7 = vld [vmem:[%s154_s29] sm:$0x7]  ;;  %v576_v8 = vld [vmem:[%s154_s29 + $0x4] sm:$0x7]  ;;  %v702_v17 = vld [vmem:[%s856_s1 + $0x38] sm:$0xff]   ;;  %s150_s19 = sadd.s32 1, %s739_s19  }
  0x15   : >> { %609 = vmatpush3.bf16.msra.mxu1 %v694_v4  ;;  %626 = vmatprep.subr.bf16.mxu0 %v745_v3  ;;  %v568_v9 = vcombine.low %v155_v7, %v155_v7  ;;  %v588_v10 = vcombine.low %v576_v8, %v576_v8  ;;  %v701_v21 = vld [vmem:[%s856_s1 + $0x8] sm:$0xff]   ;;  %vm426_vm3 = vsmask.f32 2304  ;;  %v428_v30 = vld [vmem:[%s424_s11] sm:$0x7]  ;;  %p147_p4 = scmp.ge.s32.totalorder %s150_s19, 5  }
  0x16   : >> { %610 = vmatprep.subr.bf16.mxu1 %v745_v3  ;;  %612 = vmatprep.mubr.msk.bf16.mxu1 %vm746_vm0, %v745_v3  ;;  %vm834_vm5 = vmand %vm425_vm2, %vm426_vm3  ;;  %s741_s12 = smov (%p147_p4), 0  }
  0x17   : >> { %v169_v12 = vshrl.u32 %v568_v9, 16  ;;  %v171_v13 = vshll.u32 %v568_v9, 16  ;;  %v362_v15 = vshll.u32 %v588_v10, 16  ;;  %v360_v19 = vshrl.u32 %v588_v10, 16 }
  0x18   : >> { %627 = vmatpush3.bf16.msra.mxu0 %v695_v5 }
  0x19   : >> { %611 = vmatpush3.bf16.msra.mxu1 %v696_v6  ;;  %632 = vmatprep.subr.bf16.mxu0 %v745_v3  ;;  %v173_v14 = vrot.slane %v171_v13, 1  ;;  %v364_v20 = vrot.slane %v362_v15, 1 }
  0x1a   : >> { %616 = vmatprep.subr.bf16.mxu1 %v745_v3 }
  0x1b   : >> { %629 = vmatmul.mubr.msk.bf16.vlgmr.msra.gmra.mrb[0].mxu0 %vm187_vm1, %v576_v8  ;;  %v174_v18 = vor.u32 %v173_v14, %v169_v12  ;;  %v365_v22 = vor.u32 %v364_v20, %v360_v19 }
  0x1c   : >> { %633 = vmatpush3.bf16.msra.mxu0 %v700_v11  ;;  %636 = vmatprep.mubr.msk.bf16.mxu0 %vm746_vm0, %v745_v3 }
  0x1d   : >> { %634 = vmatprep.subr.bf16.mxu0 %v745_v3  ;;  %613 = vmatmul.mubr.msk.bf16.vlgmr.msra.gmra.mrb[0].mxu1 %vm187_vm1, %v174_v18 }
  0x1e   : >> { %617 = vmatpush3.bf16.msra.mxu1 %v699_v16  ;;  %620 = vmatprep.mubr.msk.bf16.mxu1 %vm746_vm0, %v745_v3 }
  0x1f   : >> { %618 = vmatprep.subr.bf16.mxu1 %v745_v3 }
  0x20   : >> { %635 = vmatpush3.bf16.msra.mxu0 %v702_v17 }
  0x22   : >> { %619 = vmatpush3.bf16.msra.mxu1 %v701_v21 }
  0x27   : >> { %637 = vmatmul.mubr.msk.bf16.vlgmr.msra.gmra.mrb[0].mxu0 %vm187_vm1, %v365_v22 }
  0x29   : >> { %621 = vmatmul.mubr.msk.bf16.vlgmr.msra.gmra.mrb[0].mxu1 %vm187_vm1, %v155_v7 }
  0xfa   : >> { %v415_v23 = vpop.f32.mrb[0].mxu0 }
  0xfb   : >> { %v638_v24 = vpop.f32.mrb[1].mxu0 }
  0xfc   : >> { %v418_v25 = vpop.f32.mrb[2].mxu0  ;;  %v280_v27 = vpop.f32.mrb[0].mxu1 }
  0xfd   : >> { %v639_v26 = vpop.f32.mrb[3].mxu0  ;;  %v640_v28 = vadd.f32 %v415_v23, %v280_v27  ;;  %v622_v29 = vpop.f32.mrb[1].mxu1 }
  0xfe   : >> { %v283_v32 = vpop.f32.mrb[2].mxu1 }
  0xff   : >> { %v422_v33 = vpack.c.bf16 %v640_v28, %v640_v28  ;;  %v432_v34 = vsel %vm431_vm4, %v640_v28, 0.0  ;;  %v440_v35 = vmul.f32 %v640_v28, %v640_v28  ;;  %v623_v36 = vpop.f32.mrb[3].mxu1 }
 0x100   : >> { %v433_v37 = vrot.slane %v432_v34, 4 }
 0x101   : >> { %v429_v38 = vsel %vm834_vm5, %v422_v33, %v428_v30  ;;  %v441_v39 = vsel %vm431_vm4, %v440_v35, 0.0 }
 0x102   : >> { %430 = vst [vmem:[%s424_s11] sm:$0x7] %v429_v38  ;;  %v434_v40 = vadd.f32 %v433_v37, %v432_v34  ;;  %v442_v41 = vrot.slane %v441_v39, 4 }
 0x104   : >> { %v435_v42 = vrot.slane %v434_v40, 2  ;;  %v443_v43 = vadd.f32 %v442_v41, %v441_v39 }
 0x106   : >> { %v436_v44 = vadd.f32 %v435_v42, %v434_v40  ;;  %v444_v45 = vrot.slane %v443_v43, 2 }
 0x108   : >> { %v437_v46 = vrot.slane %v436_v44, 1  ;;  %v445_v47 = vadd.f32 %v444_v45, %v443_v43 }
 0x10a   : >> { %v438_v48 = vadd.f32 %v437_v46, %v436_v44  ;;  %v446_v49 = vrot.slane %v445_v47, 1  ;;  %149 = sbr.rel (!%p147_p4) target bundleno = 18 (0x12), region = 79 }
 0x10c   : >> { %v439_v50 = vadd.f32 %v735_v1, %v438_v48   ;;  %v447_v51 = vadd.f32 %v446_v49, %v445_v47 }
 0x10e   : >> { %v448_v52 = vadd.f32 %v731_v0, %v447_v51   ;;  %v861_v1 = vmov %v439_v50  ;;  %v449_v53 = vmul.f32 (%p147_p4), 0.04, %v439_v50 }
 0x110   : >> { %v860_v0 = vmov %v448_v52  ;;  %v450_v54 = vmul.f32 (%p147_p4), 0.04, %v448_v52  ;;  %v451_v55 = vmul.f32 (%p147_p4), %v449_v53, %v449_v53 }
 0x112   : > { %v452_v56 = vsub.f32 %v450_v54, %v451_v55 }
 0x114   : > { %v453_v57 = vmax.f32 %v452_v56, 0.0 }
 0x116   : > { %v454_v58 = vadd.f32 1e-05, %v453_v57 }
 0x118   : > { %703 = vrsqrt.f32 %v454_v58 }
 0x122   : > { %v704_v59 = vpop.eup %703 }
 0x123 LB: >> { %s593_s13 = sshll.u32 %s743_s12, 2  ;;  %s461_s12 = sadd.s32 1, %s743_s12   ;;  %s743_s12 = sphi %s741_s12, %s461_s12  }
 0x124   : >> { %s463_s14 = scalar_lea.vmem %s778_s18, %s593_s13  ;;  %p458_p5 = scmp.ge.s32.totalorder %s461_s12, 5  }
 0x125   : >> { %v464_v60 = vld [vmem:[%s463_s14] sm:$0x7] }
 0x126   : >> { %v465_v61 = vunpack.c.l.bf16 %v464_v60 }
 0x128   : >> { %v466_v62 = vsub.f32 %v465_v61, %v449_v53 }
 0x12a   : >> { %v467_v63 = vmul.f32 %v704_v59, %v466_v62 }
 0x12c   : >> { %v468_v1 = vmul.f32 0.2, %v467_v63 }
 0x12d   : > { %460 = sbr.rel (!%p458_p5) target bundleno = 291 (0x123), region = 90 }
 0x12e   : >> { %v469_v0 = vmax.f32 %v467_v63, %v468_v1 }
 0x130   : >> { %v470_v2 = vpack.c.bf16 %v469_v0, %v469_v0 }
 0x132   : >> { %v474_v3 = vsel %vm834_vm5, %v470_v2, %v464_v60 }
 0x133   : >> { %475 = vst [vmem:[%s463_s14] sm:$0x7] %v474_v3 }
 0x134 PF: > { %s12_s9 = sadd.s32 1, %s727_s9  }
 0x135   : > { %p9_p6 = scmp.ge.s32.totalorder %s12_s9, 4  }
 0x137   :  { %11 = sbr.rel (!%p9_p6) target bundleno = 1 (0x1), region = 101 }

// kernel: nlayer_discriminator_forward.7
= control target key start
LH: loop header
LB: loop body
LE: loop exit
PB: predicated region body
PF: predicated region fallthrough
CT: control target
= control target key end

     0   :  { %s887_s9 = smov 0   ;;  %s1024_s0 = inlined_call_operand.vmem [shape: bf16[2,4,4,64], index: 0, kind: input, shape index: {}]   ;;  %s1025_s1 = inlined_call_operand.vmem [shape: bf16[4,64,128], index: 1, kind: input, shape index: {}]   ;;  %s1026_s2 = inlined_call_operand.vmem [shape: bf16[2,3,3,128], index: 2, kind: output, shape index: {}]  }
   0x1 LB: > { %s630_s10 = sadd.s32 4294967295, %s851_s9   ;;  %p634_p0 = scmp.ge.s32.totalorder %s851_s9, 1  ;;  %s851_s9 = sphi %s887_s9, %s12_s9  }
   0x2   : > { %p112_p1 = scmp.lt.s32.totalorder %s851_s9, 3 }
   0x4   : > { %p113_p2 = pnand %p634_p0, %p112_p1 }
   0x5   : > { %p134_p3 = scmp.lt.s32.totalorder (!%p113_p2), %s630_s10, 1  ;;  %v905_v0 = vmov (!%p113_p2), 0.0   ;;  %v907_v1 = vmov (!%p113_p2), 0.0   ;;  %s909_s19 = smov (!%p113_p2), 0  }
   0x6   : > { %116 = sbr.rel (%p113_p2) target bundleno = 318 (0x13e), region = 28 }
   0xd   : > { %s1032_s10 = smov (!%p134_p3, %s630_s10), 1 }
   0xe   : > { %s689_s11 = sshll.u32 %s1032_s10, 3  ;;  %s767_s12 = smul.u32 6, %s1032_s10 }
   0xf   : > { %s898_s15 = scalar_lea.vmem %s1024_s0, %s689_s11 }
  0x10   : > { %s903_s18 = scalar_lea.vmem %s1026_s2, %s767_s12 }
  0x11 LB: >> { %v811_v2 = vld [vmem:[%s1025_s1 + $0x20] sm:$0xff]   ;;  %v869_v3 = vmov 0.0   ;;  %v813_v5 = vld [vmem:[%s1025_s1 + $0x28] sm:$0xff]   ;;  %vm870_vm0 = vmmov 0   ;;  %v177_v7 = vlaneseq  ;;  %v815_v8 = vld [vmem:[%s1025_s1 + $0x30] sm:$0xff]   ;;  %s638_s30 = sshll.u32 %s863_s19, 1  ;;  %s863_s19 = sphi %s909_s19, %s150_s19   ;;  %v859_v1 = vphi %v907_v1, %v1030_v1   ;;  %v855_v0 = vphi %v905_v0, %v1029_v0  }
  0x12   : >> { %710 = vmatprep.subr.bf16.mxu1 %v869_v3  ;;  %734 = vmatprep.subr.bf16.mxu0 %v869_v3  ;;  %v812_v4 = vld [vmem:[%s1025_s1 + $0x40] sm:$0xff]   ;;  %v814_v6 = vld [vmem:[%s1025_s1 + $0x48] sm:$0xff]   ;;  %v816_v9 = vld [vmem:[%s1025_s1 + $0x50] sm:$0xff]   ;;  %s154_s5 = scalar_lea.vmem %s898_s15, %s638_s30  ;;  %v871_v10 = vmov 1983009808   ;;  %vm212_vm1 = vcmask 523264   ;;  %s498_s3 = scalar_lea.vmem %s903_s18, %s638_s30 }
  0x13   : >> { %711 = vmatpush3.bf16.msra.mxu1 %v811_v2  ;;  %718 = vmatprep.mubr.msk.bf16.mxu1 %vm870_vm0, %v869_v3  ;;  %v175_v11 = vunpack.c.l.s4 %v871_v10  ;;  %v178_v12 = vshrl.u32 %v177_v7, 7  ;;  %v817_v13 = vld [vmem:[%s1025_s1 + $0x38] sm:$0xff]   ;;  %v155_v16 = vld [vmem:[%s154_s5] sm:$0x3]  ;;  %v658_v18 = vld [vmem:[%s154_s5 + $0x2] sm:$0x3] }
  0x14   : >> { %735 = vmatpush3.bf16.msra.mxu0 %v812_v4  ;;  %712 = vmatprep.subr.bf16.mxu1 %v869_v3  ;;  %v818_v14 = vld [vmem:[%s1025_s1 + $0x58] sm:$0xff]   ;;  %v820_v20 = vld [vmem:[%s1025_s1 + $0x60] sm:$0xff]   ;;  %v822_v25 = vld [vmem:[%s1025_s1 + $0x68] sm:$0xff]   ;;  %vm499_vm2 = vcmask 1041408   ;;  %vm500_vm3 = vsmask.f32 1280 }
  0x15   : >> { %736 = vmatprep.subr.bf16.mxu0 %v869_v3  ;;  %742 = vmatprep.mubr.msk.bf16.mxu0 %vm870_vm0, %v869_v3  ;;  %v176_v15 = vunpack.c.0.s8 %v175_v11  ;;  %v819_v26 = vld [vmem:[%s1025_s1] sm:$0xff]   ;;  %v824_v29 = vld [vmem:[%s1025_s1 + $0x70] sm:$0xff]   ;;  %v821_v30 = vld [vmem:[%s1025_s1 + $0x8] sm:$0xff]   ;;  %vm505_vm4 = vcmask 1042432   ;;  %s150_s19 = sadd.s32 1, %s863_s19  }
  0x16   : >> { %v826_v33 = vld [vmem:[%s1025_s1 + $0x78] sm:$0xff]   ;;  %v823_v34 = vld [vmem:[%s1025_s1 + $0x10] sm:$0xff]   ;;  %vm1003_vm5 = vmand %vm499_vm2, %vm500_vm3  ;;  %p147_p4 = scmp.ge.s32.totalorder %s150_s19, 3  }
  0x17   : >> { %713 = vmatpush3.bf16.msra.mxu1 %v813_v5  ;;  %v179_v17 = vsub.s32 %v176_v15, %v178_v12  ;;  %v825_v36 = vld [vmem:[%s1025_s1 + $0x18] sm:$0xff]   ;;  %v502_v45 = vld [vmem:[%s498_s3] sm:$0x3]  ;;  %s865_s30 = smov (%p147_p4), 0  }
  0x18   : >> { %737 = vmatpush3.bf16.msra.mxu0 %v814_v6  ;;  %714 = vmatprep.subr.bf16.mxu1 %v869_v3 }
  0x19   : >> { %738 = vmatprep.subr.bf16.mxu0 %v869_v3  ;;  %v180_v19 = vrot.slane %v155_v16, %v179_v17  ;;  %v420_v23 = vrot.slane %v658_v18, %v179_v17 }
  0x1b   : >> { %715 = vmatpush3.bf16.msra.mxu1 %v815_v8  ;;  %v182_v21 = vshrl.u32 %v180_v19, 16  ;;  %v184_v22 = vshll.u32 %v180_v19, 16  ;;  %v424_v28 = vshll.u32 %v420_v23, 16  ;;  %v422_v31 = vshrl.u32 %v420_v23, 16 }
  0x1c   : >> { %739 = vmatpush3.bf16.msra.mxu0 %v816_v9  ;;  %716 = vmatprep.subr.bf16.mxu1 %v869_v3 }
  0x1d   : >> { %740 = vmatprep.subr.bf16.mxu0 %v869_v3  ;;  %v186_v24 = vrot.slane %v184_v22, 1  ;;  %v426_v32 = vrot.slane %v424_v28, 1 }
  0x1f   : >> { %717 = vmatpush3.bf16.msra.mxu1 %v817_v13  ;;  %v187_v27 = vor.u32 %v186_v24, %v182_v21  ;;  %v427_v35 = vor.u32 %v426_v32, %v422_v31 }
  0x20   : >> { %741 = vmatpush3.bf16.msra.mxu0 %v818_v14  ;;  %722 = vmatprep.subr.bf16.mxu1 %v869_v3 }
  0x21   : >> { %746 = vmatprep.subr.bf16.mxu0 %v869_v3 }
  0x22   : >> { %719 = vmatmul.mubr.msk.bf16.vlgmr.msra.gmra.mrb[0].mxu1 %vm212_vm1, %v187_v27 }
  0x23   : >> { %743 = vmatmul.mubr.msk.bf16.vlgmr.msra.gmra.mrb[0].mxu0 %vm212_vm1, %v658_v18  ;;  %723 = vmatpush3.bf16.msra.mxu1 %v819_v26 }
  0x24   : >> { %747 = vmatpush3.bf16.msra.mxu0 %v820_v20  ;;  %754 = vmatprep.mubr.msk.bf16.mxu0 %vm870_vm0, %v869_v3 }
  0x25   : >> { %748 = vmatprep.subr.bf16.mxu0 %v869_v3  ;;  %724 = vmatprep.subr.bf16.mxu1 %v869_v3 }
  0x26   : >> { %730 = vmatprep.mubr.msk.bf16.mxu1 %vm870_vm0, %v869_v3 }
  0x27   : >> { %725 = vmatpush3.bf16.msra.mxu1 %v821_v30 }
  0x28   : >> { %749 = vmatpush3.bf16.msra.mxu0 %v822_v25  ;;  %726 = vmatprep.subr.bf16.mxu1 %v869_v3 }
  0x29   : >> { %750 = vmatprep.subr.bf16.mxu0 %v869_v3 }
  0x2b   : >> { %727 = vmatpush3.bf16.msra.mxu1 %v823_v34 }
  0x2c   : >> { %751 = vmatpush3.bf16.msra.mxu0 %v824_v29  ;;  %728 = vmatprep.subr.bf16.mxu1 %v869_v3 }
  0x2d   : >> { %752 = vmatprep.subr.bf16.mxu0 %v869_v3 }
  0x2f   : >> { %729 = vmatpush3.bf16.msra.mxu1 %v825_v36 }
  0x30   : >> { %753 = vmatpush3.bf16.msra.mxu0 %v826_v33 }
  0x32   : >> { %731 = vmatmul.mubr.msk.bf16.vlgmr.msra.gmra.mrb[0].mxu1 %vm212_vm1, %v155_v16 }
  0x33   : >> { %755 = vmatmul.mubr.msk.bf16.vlgmr.msra.gmra.mrb[0].mxu0 %vm212_vm1, %v427_v35 }
 0x105   : >> { %v317_v41 = vpop.f32.mrb[0].mxu1 }
 0x106   : >> { %v489_v37 = vpop.f32.mrb[0].mxu0  ;;  %v732_v43 = vpop.f32.mrb[1].mxu1 }
 0x107   : >> { %v756_v38 = vpop.f32.mrb[1].mxu0  ;;  %v758_v42 = vadd.f32 %v489_v37, %v317_v41  ;;  %v320_v46 = vpop.f32.mrb[2].mxu1 }
 0x108   : >> { %v492_v39 = vpop.f32.mrb[2].mxu0  ;;  %v733_v50 = vpop.f32.mrb[3].mxu1 }
 0x109   : >> { %v757_v40 = vpop.f32.mrb[3].mxu0  ;;  %v496_v47 = vpack.c.bf16 %v758_v42, %v758_v42  ;;  %v506_v48 = vsel %vm505_vm4, %v758_v42, 0.0  ;;  %v514_v49 = vmul.f32 %v758_v42, %v758_v42 }
 0x10a   : >> { %v507_v51 = vrot.slane %v506_v48, 4 }
 0x10b   : >> { %v503_v52 = vsel %vm1003_vm5, %v496_v47, %v502_v45  ;;  %v515_v53 = vsel %vm505_vm4, %v514_v49, 0.0 }
 0x10c   : >> { %504 = vst [vmem:[%s498_s3] sm:$0x3] %v503_v52  ;;  %v508_v54 = vadd.f32 %v507_v51, %v506_v48  ;;  %v516_v55 = vrot.slane %v515_v53, 4 }
 0x10e   : >> { %v509_v56 = vrot.slane %v508_v54, 2  ;;  %v517_v57 = vadd.f32 %v516_v55, %v515_v53 }
 0x110   : >> { %v510_v58 = vadd.f32 %v509_v56, %v508_v54  ;;  %v518_v59 = vrot.slane %v517_v57, 2 }
 0x112   : >> { %v511_v60 = vrot.slane %v510_v58, 1  ;;  %v519_v61 = vadd.f32 %v518_v59, %v517_v57 }
 0x114   : >> { %v512_v62 = vadd.f32 %v511_v60, %v510_v58  ;;  %v520_v63 = vrot.slane %v519_v61, 1  ;;  %149 = sbr.rel (!%p147_p4) target bundleno = 17 (0x11), region = 79 }
 0x116   : >> { %v513_v2 = vadd.f32 %v859_v1, %v512_v62   ;;  %v521_v3 = vadd.f32 %v520_v63, %v519_v61 }
 0x118   : >> { %v522_v4 = vadd.f32 %v855_v0, %v521_v3   ;;  %v1030_v1 = vmov %v513_v2  ;;  %v523_v5 = vmul.f32 (%p147_p4), 0.11111111, %v513_v2 }
 0x11a   : >> { %v1029_v0 = vmov %v522_v4  ;;  %v524_v6 = vmul.f32 (%p147_p4), 0.11111111, %v522_v4  ;;  %v525_v7 = vmul.f32 (%p147_p4), %v523_v5, %v523_v5 }
 0x11c   : > { %v526_v8 = vsub.f32 %v524_v6, %v525_v7 }
 0x11e   : > { %v527_v9 = vmax.f32 %v526_v8, 0.0 }
 0x120   : > { %v528_v10 = vadd.f32 1e-05, %v527_v9 }
 0x122   : > { %827 = vrsqrt.f32 %v528_v10 }
 0x12c   : > { %v828_v1 = vpop.eup %827 }
 0x12d LB: >> { %s686_s4 = sshll.u32 %s867_s30, 1  ;;  %s535_s30 = sadd.s32 1, %s867_s30   ;;  %s867_s30 = sphi %s865_s30, %s535_s30  }
 0x12e   : >> { %s537_s5 = scalar_lea.vmem %s903_s18, %s686_s4  ;;  %p532_p5 = scmp.ge.s32.totalorder %s535_s30, 3  }
 0x12f   : >> { %v538_v11 = vld [vmem:[%s537_s5] sm:$0x3] }
 0x130   : >> { %v539_v12 = vunpack.c.l.bf16 %v538_v11 }
 0x132   : >> { %v540_v13 = vsub.f32 %v539_v12, %v523_v5 }
 0x134   : >> { %v541_v14 = vmul.f32 %v828_v1, %v540_v13 }
 0x136   : >> { %v542_v15 = vmul.f32 0.2, %v541_v14 }
 0x137   : > { %534 = sbr.rel (!%p532_p5) target bundleno = 301 (0x12d), region = 90 }
 0x138   : >> { %v543_v0 = vmax.f32 %v541_v14, %v542_v15 }
 0x13a   : >> { %v544_v16 = vpack.c.bf16 %v543_v0, %v543_v0 }
 0x13c   : >> { %v548_v17 = vsel %vm1003_vm5, %v544_v16, %v538_v11 }
 0x13d   : >> { %549 = vst [vmem:[%s537_s5] sm:$0x3] %v548_v17 }
 0x13e PF: > { %s12_s9 = sadd.s32 1, %s851_s9  }
 0x13f   : > { %p9_p6 = scmp.ge.s32.totalorder %s12_s9, 4  }
 0x141   :  { %11 = sbr.rel (!%p9_p6) target bundleno = 1 (0x1), region = 101 }

// kernel: nlayer_discriminator_forward.8
= control target key start
LH: loop header
LB: loop body
LE: loop exit
PB: predicated region body
PF: predicated region fallthrough
CT: control target
= control target key end

     0   :  { %s1913_s9 = smov 0   ;;  %s2157_s0 = inlined_call_operand.vmem [shape: bf16[2,7,7,32], index: 0, kind: input, shape index: {}]   ;;  %s2158_s1 = inlined_call_operand.vmem [shape: bf16[16,32,128], index: 1, kind: input, shape index: {}]   ;;  %s2159_s2 = inlined_call_operand.vmem [shape: bf16[2,4,4,128], index: 2, kind: output, shape index: {}]  }
   0x1 LB: > { %s1385_s10 = sadd.s32 4294967295, %s1878_s9   ;;  %p1389_p0 = scmp.ge.s32.totalorder %s1878_s9, 1  ;;  %s1878_s9 = sphi %s1913_s9, %s12_s9  }
   0x2   : > { %p112_p1 = scmp.lt.s32.totalorder %s1878_s9, 3 }
   0x4   : > { %p113_p2 = pnand %p1389_p0, %p112_p1 }
   0x5   : > { %p134_p3 = scmp.lt.s32.totalorder (!%p113_p2), %s1385_s10, 1  ;;  %v1931_v0 = vmov (!%p113_p2), 0.0   ;;  %v1933_v1 = vmov (!%p113_p2), 0.0   ;;  %s1935_s19 = smov (!%p113_p2), 0  }
   0x6   : > { %116 = sbr.rel (%p113_p2) target bundleno = 378 (0x17a), region = 28 }
   0xd   : > { %s2163_s10 = smov (!%p134_p3, %s1385_s10), 1 }
   0xe   : > { %s1767_s11 = smul.u32 28, %s2163_s10  ;;  %s1533_s12 = sshll.u32 %s2163_s10, 3 }
   0xf   : > { %s1924_s15 = scalar_lea.vmem %s2159_s2, %s1533_s12 }
  0x10   : > { %s1929_s18 = scalar_lea.vmem %s2157_s0, %s1767_s11 }
  0x11 LB: >> { %v1810_v2 = vld [vmem:[%s2158_s1 + $0x80] sm:$0xff]   ;;  %v1896_v3 = vmov 0.0   ;;  %v1811_v4 = vld [vmem:[%s2158_s1 + $0x10] sm:$0xff]   ;;  %v1812_v5 = vld [vmem:[%s2158_s1 + $0x88] sm:$0xff]   ;;  %vm1897_vm0 = vmmov 0   ;;  %s1393_s26 = sshll.u32 %s1890_s19, 2  ;;  %s1890_s19 = sphi %s1935_s19, %s150_s19   ;;  %v1886_v1 = vphi %v1933_v1, %v2161_v1   ;;  %v1882_v0 = vphi %v1931_v0, %v2160_v0  }
  0x12   : >> { %1646 = vmatprep.subr.bf16.mxu0 %v1896_v3  ;;  %1582 = vmatprep.subr.bf16.mxu1 %v1896_v3  ;;  %v1813_v6 = vld [vmem:[%s2158_s1 + $0x18] sm:$0xff]   ;;  %s1965_s29 = scalar_lea.vmem %s1929_s18, %s1393_s26  ;;  %vm188_vm1 = vcmask 261120   ;;  %v1816_v9 = vld [vmem:[%s2158_s1 + $0x90] sm:$0xff]   ;;  %v1815_v13 = vld [vmem:[%s2158_s1] sm:$0xff]   ;;  %s1529_s12 = sshll.u32 %s1890_s19, 1  ;;  %vm1258_vm2 = vcmask 1043456  }
  0x13   : >> { %1647 = vmatpush3.bf16.msra.mxu0 %v1810_v2  ;;  %1650 = vmatprep.mubr.msk.bf16.mxu0 %vm1897_vm0, %v1896_v3  ;;  %v1458_v7 = vld [vmem:[%s1965_s29 + $0x8] sm:$0x3]  ;;  %v1814_v8 = vld [vmem:[%s1965_s29] ss:$0 sps:$4 sm:$0x77]   ;;  %v1818_v14 = vld [vmem:[%s2158_s1 + $0x98] sm:$0xff]   ;;  %s1256_s13 = scalar_lea.vmem %s1924_s15, %s1529_s12 }
  0x14   : >> { %1583 = vmatpush3.bf16.msra.mxu1 %v1811_v4  ;;  %1648 = vmatprep.subr.bf16.mxu0 %v1896_v3  ;;  %v170_v10 = vshrl.u32 %v1814_v8, 16  ;;  %v172_v11 = vshll.u32 %v1814_v8, 16  ;;  %v1819_v15 = vld [vmem:[%s1965_s29 + $0x8] ss:$0 sps:$4 sm:$0x77]   ;;  %v1821_v22 = vld [vmem:[%s2158_s1 + $0xa0] sm:$0xff]  }
  0x15   : >> { %1584 = vmatprep.subr.bf16.mxu1 %v1896_v3  ;;  %1586 = vmatprep.mubr.msk.bf16.mxu1 %vm1897_vm0, %v1896_v3  ;;  %v777_v17 = vshrl.u32 %v1819_v15, 16  ;;  %v779_v18 = vshll.u32 %v1819_v15, 16  ;;  %v1817_v19 = vld [vmem:[%s2158_s1 + $0x8] sm:$0xff]   ;;  %v155_v23 = vld [vmem:[%s1965_s29] sm:$0x3]  ;;  %v1827_v31 = vld [vmem:[%s2158_s1 + $0xb0] sm:$0xff]  }
  0x16   : >> { %v174_v12 = vrot.slane %v172_v11, 1  ;;  %v1820_v24 = vld [vmem:[%s2158_s1 + $0x20] sm:$0xff]   ;;  %v1823_v25 = vld [vmem:[%s2158_s1 + $0xa8] sm:$0xff]   ;;  %v1826_v33 = vld [vmem:[%s2158_s1 + $0x30] sm:$0xff]   ;;  %s150_s19 = sadd.s32 1, %s1890_s19  }
  0x17   : >> { %1649 = vmatpush3.bf16.msra.mxu0 %v1812_v5  ;;  %v781_v20 = vrot.slane %v779_v18, 1  ;;  %v1824_v26 = vld [vmem:[%s1965_s29 + $0x8] ss:$0 sps:$4 sm:$0x66]   ;;  %v1829_v37 = vld [vmem:[%s2158_s1 + $0xb8] sm:$0xff]   ;;  %v1833_v46 = vld [vmem:[%s2158_s1 + $0xc0] sm:$0xff]  }
  0x18   : >> { %1585 = vmatpush3.bf16.msra.mxu1 %v1813_v6  ;;  %1654 = vmatprep.subr.bf16.mxu0 %v1896_v3  ;;  %v175_v16 = vor.u32 %v174_v12, %v170_v10  ;;  %v1822_v27 = vld [vmem:[%s2158_s1 + $0x28] sm:$0xff]   ;;  %v1825_v28 = vld [vmem:[%s1965_s29] ss:$0 sps:$4 sm:$0x66]   ;;  %v848_v30 = vrot.slane %v1824_v26, 1  ;;  %v1828_v42 = vld [vmem:[%s2158_s1 + $0x38] sm:$0xff]  }
  0x19   : >> { %1590 = vmatprep.subr.bf16.mxu1 %v1896_v3  ;;  %v782_v21 = vor.u32 %v781_v20, %v777_v17  ;;  %v1830_v29 = vld [vmem:[%s1965_s29 + $0x8] ss:$0 sps:$4 sm:$0xee]   ;;  %v296_v32 = vrot.slane %v1825_v28, 1  ;;  %v1832_v48 = vld [vmem:[%s2158_s1 + $0x40] sm:$0xff]   ;;  %v1837_v53 = vld [vmem:[%s2158_s1 + $0xd0] sm:$0xff]  }
  0x1a   : >> { %1651 = vmatmul.mubr.msk.bf16.vlgmr.msra.gmra.mrb[0].mxu0 %vm188_vm1, %v1458_v7  ;;  %v1831_v34 = vld [vmem:[%s1965_s29] ss:$0 sps:$4 sm:$0xee]   ;;  %v915_v35 = vshrl.u32 %v1830_v29, 16  ;;  %v918_v36 = vshll.u32 %v1830_v29, 16  ;;  %v1835_v49 = vld [vmem:[%s2158_s1 + $0xc8] sm:$0xff]  }
  0x1b   : >> { %1655 = vmatpush3.bf16.msra.mxu0 %v1816_v9  ;;  %1658 = vmatprep.mubr.msk.bf16.mxu0 %vm1897_vm0, %v1896_v3  ;;  %v363_v38 = vshrl.u32 %v1831_v34, 16  ;;  %v366_v39 = vshll.u32 %v1831_v34, 16  ;;  %v1834_v50 = vld [vmem:[%s2158_s1 + $0x48] sm:$0xff]   ;;  %v1841_v55 = vld [vmem:[%s1965_s29 + $0x4] ss:$0 sps:$4 sm:$0x77]  }
  0x1c   : >> { %1656 = vmatprep.subr.bf16.mxu0 %v1896_v3  ;;  %1587 = vmatmul.mubr.msk.bf16.vlgmr.msra.gmra.mrb[0].mxu1 %vm188_vm1, %v175_v16  ;;  %v917_v40 = vrot.slane %v915_v35, 1  ;;  %v920_v41 = vrot.slane %v918_v36, 2  ;;  %v1840_v51 = vld [vmem:[%s1965_s29 + $0xc] ss:$0 sps:$4 sm:$0x77]   ;;  %v1836_v57 = vld [vmem:[%s2158_s1 + $0x50] sm:$0xff]  }
  0x1d   : >> { %1591 = vmatpush3.bf16.msra.mxu1 %v1815_v13  ;;  %1594 = vmatprep.mubr.msk.bf16.mxu1 %vm1897_vm0, %v1896_v3  ;;  %v365_v43 = vrot.slane %v363_v38, 1  ;;  %v368_v44 = vrot.slane %v366_v39, 2  ;;  %v1494_v52 = vld [vmem:[%s1965_s29 + $0xc] sm:$0x3]  ;;  %v1055_v54 = vshll.u32 %v1840_v51, 16  ;;  %v1839_v58 = vld [vmem:[%s2158_s1 + $0xd8] sm:$0xff]  }
  0x1e   : >> { %1592 = vmatprep.subr.bf16.mxu1 %v1896_v3  ;;  %v921_v45 = vor.u32 %v920_v41, %v917_v40  ;;  %v1422_v56 = vld [vmem:[%s1965_s29 + $0x4] sm:$0x3]  ;;  %v1053_v59 = vshrl.u32 %v1840_v51, 16  ;;  %v503_v61 = vshll.u32 %v1841_v55, 16  ;;  %v1838_v62 = vld [vmem:[%s2158_s1 + $0x58] sm:$0xff]   ;;  %v501_v2 = vshrl.u32 %v1841_v55, 16 }
  0x1f   : >> { %1657 = vmatpush3.bf16.msra.mxu0 %v1818_v14  ;;  %v369_v47 = vor.u32 %v368_v44, %v365_v43  ;;  %v1057_v60 = vrot.slane %v1055_v54, 1  ;;  %v1843_v5 = vld [vmem:[%s2158_s1 + $0xe0] sm:$0xff]   ;;  %v1845_v8 = vld [vmem:[%s2158_s1 + $0xe8] sm:$0xff]   ;;  %v1849_v14 = vld [vmem:[%s2158_s1 + $0xf0] sm:$0xff]   ;;  %p147_p4 = scmp.ge.s32.totalorder %s150_s19, 4  }
  0x20   : >> { %1662 = vmatprep.subr.bf16.mxu0 %v1896_v3  ;;  %v505_v4 = vrot.slane %v503_v61, 1  ;;  %v1842_v7 = vld [vmem:[%s2158_s1 + $0x60] sm:$0xff]   ;;  %v1846_v9 = vld [vmem:[%s1965_s29 + $0xc] ss:$0 sps:$4 sm:$0x66]   ;;  %v1851_v20 = vld [vmem:[%s2158_s1 + $0xf8] sm:$0xff]  }
  0x21   : >> { %1593 = vmatpush3.bf16.msra.mxu1 %v1817_v19  ;;  %v1058_v63 = vor.u32 %v1057_v60, %v1053_v59  ;;  %v1844_v10 = vld [vmem:[%s2158_s1 + $0x68] sm:$0xff]   ;;  %v1847_v11 = vld [vmem:[%s1965_s29 + $0x4] ss:$0 sps:$4 sm:$0x66]   ;;  %v1124_v12 = vrot.slane %v1846_v9, 1  ;;  %v1848_v19 = vld [vmem:[%s2158_s1 + $0x70] sm:$0xff]  }
  0x22   : >> { %1598 = vmatprep.subr.bf16.mxu1 %v1896_v3  ;;  %v506_v6 = vor.u32 %v505_v4, %v501_v2  ;;  %v1852_v13 = vld [vmem:[%s1965_s29 + $0xc] ss:$0 sps:$4 sm:$0xee]   ;;  %v572_v15 = vrot.slane %v1847_v11, 1  ;;  %s1892_s14 = smov (%p147_p4), 0  }
  0x23   : >> { %v1191_v16 = vshrl.u32 %v1852_v13, 16  ;;  %v1194_v17 = vshll.u32 %v1852_v13, 16  ;;  %v1853_v18 = vld [vmem:[%s1965_s29 + $0x4] ss:$0 sps:$4 sm:$0xee]  }
  0x26   : >> { %1659 = vmatmul.mubr.msk.bf16.vlgmr.msra.gmra.mrb[0].mxu0 %vm188_vm1, %v782_v21  ;;  %v1193_v21 = vrot.slane %v1191_v16, 1 }
  0x27   : >> { %1663 = vmatpush3.bf16.msra.mxu0 %v1821_v22  ;;  %1666 = vmatprep.mubr.msk.bf16.mxu0 %vm1897_vm0, %v1896_v3  ;;  %v1196_v22 = vrot.slane %v1194_v17, 2 }
  0x28   : >> { %1664 = vmatprep.subr.bf16.mxu0 %v1896_v3  ;;  %1595 = vmatmul.mubr.msk.bf16.vlgmr.msra.gmra.mrb[0].mxu1 %vm188_vm1, %v155_v23  ;;  %v639_v23 = vshrl.u32 %v1853_v18, 16 }
  0x29   : >> { %1599 = vmatpush3.bf16.msra.mxu1 %v1820_v24  ;;  %1602 = vmatprep.mubr.msk.bf16.mxu1 %vm1897_vm0, %v1896_v3  ;;  %v642_v24 = vshll.u32 %v1853_v18, 16  ;;  %v1197_v26 = vor.u32 %v1196_v22, %v1193_v21 }
  0x2a   : >> { %1600 = vmatprep.subr.bf16.mxu1 %v1896_v3 }
  0x2b   : >> { %1665 = vmatpush3.bf16.msra.mxu0 %v1823_v25  ;;  %v1850_v25 = vld [vmem:[%s2158_s1 + $0x78] sm:$0xff]   ;;  %v644_v28 = vrot.slane %v642_v24, 2 }
  0x2c   : >> { %1670 = vmatprep.subr.bf16.mxu0 %v1896_v3 }
  0x2d   : >> { %1601 = vmatpush3.bf16.msra.mxu1 %v1822_v27  ;;  %v641_v27 = vrot.slane %v639_v23, 1 }
  0x2e   : >> { %1606 = vmatprep.subr.bf16.mxu1 %v1896_v3 }
  0x2f   : >> { %v645_v29 = vor.u32 %v644_v28, %v641_v27 }
  0x32   : >> { %1667 = vmatmul.mubr.msk.bf16.vlgmr.msra.gmra.mrb[0].mxu0 %vm188_vm1, %v848_v30 }
  0x33   : >> { %1671 = vmatpush3.bf16.msra.mxu0 %v1827_v31  ;;  %1674 = vmatprep.mubr.msk.bf16.mxu0 %vm1897_vm0, %v1896_v3 }
  0x34   : >> { %1672 = vmatprep.subr.bf16.mxu0 %v1896_v3  ;;  %1603 = vmatmul.mubr.msk.bf16.vlgmr.msra.gmra.mrb[0].mxu1 %vm188_vm1, %v296_v32 }
  0x35   : >> { %1607 = vmatpush3.bf16.msra.mxu1 %v1826_v33  ;;  %1610 = vmatprep.mubr.msk.bf16.mxu1 %vm1897_vm0, %v1896_v3 }
  0x36   : >> { %1608 = vmatprep.subr.bf16.mxu1 %v1896_v3 }
  0x37   : >> { %1673 = vmatpush3.bf16.msra.mxu0 %v1829_v37 }
  0x38   : >> { %1678 = vmatprep.subr.bf16.mxu0 %v1896_v3 }
  0x39   : >> { %1609 = vmatpush3.bf16.msra.mxu1 %v1828_v42 }
  0x3a   : >> { %1614 = vmatprep.subr.bf16.mxu1 %v1896_v3 }
  0x3e   : >> { %1675 = vmatmul.mubr.msk.bf16.vlgmr.msra.gmra.mrb[0].mxu0 %vm188_vm1, %v921_v45 }
  0x3f   : >> { %1679 = vmatpush3.bf16.msra.mxu0 %v1833_v46  ;;  %1682 = vmatprep.mubr.msk.bf16.mxu0 %vm1897_vm0, %v1896_v3 }
  0x40   : >> { %1680 = vmatprep.subr.bf16.mxu0 %v1896_v3  ;;  %1611 = vmatmul.mubr.msk.bf16.vlgmr.msra.gmra.mrb[0].mxu1 %vm188_vm1, %v369_v47 }
  0x41   : >> { %1615 = vmatpush3.bf16.msra.mxu1 %v1832_v48  ;;  %1618 = vmatprep.mubr.msk.bf16.mxu1 %vm1897_vm0, %v1896_v3 }
  0x42   : >> { %1616 = vmatprep.subr.bf16.mxu1 %v1896_v3 }
  0x43   : >> { %1681 = vmatpush3.bf16.msra.mxu0 %v1835_v49 }
  0x44   : >> { %1686 = vmatprep.subr.bf16.mxu0 %v1896_v3 }
  0x45   : >> { %1617 = vmatpush3.bf16.msra.mxu1 %v1834_v50 }
  0x46   : >> { %1622 = vmatprep.subr.bf16.mxu1 %v1896_v3 }
  0x4a   : >> { %1683 = vmatmul.mubr.msk.bf16.vlgmr.msra.gmra.mrb[0].mxu0 %vm188_vm1, %v1494_v52 }
  0x4b   : >> { %1687 = vmatpush3.bf16.msra.mxu0 %v1837_v53  ;;  %1690 = vmatprep.mubr.msk.bf16.mxu0 %vm1897_vm0, %v1896_v3 }
  0x4c   : >> { %1688 = vmatprep.subr.bf16.mxu0 %v1896_v3  ;;  %1619 = vmatmul.mubr.msk.bf16.vlgmr.msra.gmra.mrb[0].mxu1 %vm188_vm1, %v1422_v56 }
  0x4d   : >> { %1623 = vmatpush3.bf16.msra.mxu1 %v1836_v57  ;;  %1626 = vmatprep.mubr.msk.bf16.mxu1 %vm1897_vm0, %v1896_v3 }
  0x4e   : >> { %1624 = vmatprep.subr.bf16.mxu1 %v1896_v3 }
  0x4f   : >> { %1689 = vmatpush3.bf16.msra.mxu0 %v1839_v58 }
  0x50   : >> { %1694 = vmatprep.subr.bf16.mxu0 %v1896_v3 }
  0x51   : >> { %1625 = vmatpush3.bf16.msra.mxu1 %v1838_v62 }
  0x52   : >> { %1630 = vmatprep.subr.bf16.mxu1 %v1896_v3 }
  0x56   : >> { %1691 = vmatmul.mubr.msk.bf16.vlgmr.msra.gmra.mrb[0].mxu0 %vm188_vm1, %v1058_v63 }
  0x57   : >> { %1695 = vmatpush3.bf16.msra.mxu0 %v1843_v5  ;;  %1698 = vmatprep.mubr.msk.bf16.mxu0 %vm1897_vm0, %v1896_v3 }
  0x58   : >> { %1696 = vmatprep.subr.bf16.mxu0 %v1896_v3  ;;  %1627 = vmatmul.mubr.msk.bf16.vlgmr.msra.gmra.mrb[0].mxu1 %vm188_vm1, %v506_v6 }
  0x59   : >> { %1631 = vmatpush3.bf16.msra.mxu1 %v1842_v7  ;;  %1634 = vmatprep.mubr.msk.bf16.mxu1 %vm1897_vm0, %v1896_v3 }
  0x5a   : >> { %1632 = vmatprep.subr.bf16.mxu1 %v1896_v3 }
  0x5b   : >> { %1697 = vmatpush3.bf16.msra.mxu0 %v1845_v8 }
  0x5c   : >> { %1702 = vmatprep.subr.bf16.mxu0 %v1896_v3 }
  0x5d   : >> { %1633 = vmatpush3.bf16.msra.mxu1 %v1844_v10 }
  0x5e   : >> { %1638 = vmatprep.subr.bf16.mxu1 %v1896_v3 }
  0x62   : >> { %1699 = vmatmul.mubr.msk.bf16.vlgmr.msra.gmra.mrb[0].mxu0 %vm188_vm1, %v1124_v12 }
  0x63   : >> { %1703 = vmatpush3.bf16.msra.mxu0 %v1849_v14  ;;  %1706 = vmatprep.mubr.msk.bf16.mxu0 %vm1897_vm0, %v1896_v3 }
  0x64   : >> { %1704 = vmatprep.subr.bf16.mxu0 %v1896_v3  ;;  %1635 = vmatmul.mubr.msk.bf16.vlgmr.msra.gmra.mrb[0].mxu1 %vm188_vm1, %v572_v15 }
  0x65   : >> { %1639 = vmatpush3.bf16.msra.mxu1 %v1848_v19  ;;  %1642 = vmatprep.mubr.msk.bf16.mxu1 %vm1897_vm0, %v1896_v3 }
  0x66   : >> { %1640 = vmatprep.subr.bf16.mxu1 %v1896_v3 }
  0x67   : >> { %1705 = vmatpush3.bf16.msra.mxu0 %v1851_v20 }
  0x69   : >> { %1641 = vmatpush3.bf16.msra.mxu1 %v1850_v25 }
  0x6e   : >> { %1707 = vmatmul.mubr.msk.bf16.vlgmr.msra.gmra.mrb[0].mxu0 %vm188_vm1, %v1197_v26 }
  0x70   : >> { %1643 = vmatmul.mubr.msk.bf16.vlgmr.msra.gmra.mrb[0].mxu1 %vm188_vm1, %v645_v29 }
 0x141   : >> { %v1247_v30 = vpop.f32.mrb[0].mxu0 }
 0x142   : >> { %v1708_v31 = vpop.f32.mrb[1].mxu0 }
 0x143   : >> { %v1250_v32 = vpop.f32.mrb[2].mxu0  ;;  %v695_v34 = vpop.f32.mrb[0].mxu1 }
 0x144   : >> { %v1709_v33 = vpop.f32.mrb[3].mxu0  ;;  %v1710_v35 = vadd.f32 %v1247_v30, %v695_v34  ;;  %v1644_v36 = vpop.f32.mrb[1].mxu1 }
 0x145   : >> { %v698_v3 = vpop.f32.mrb[2].mxu1 }
 0x146   : >> { %v1254_v37 = vpack.c.bf16 %v1710_v35, %v1710_v35  ;;  %v1259_v38 = vsel %vm1258_vm2, %v1710_v35, 0.0  ;;  %v1267_v39 = vmul.f32 %v1710_v35, %v1710_v35  ;;  %v1645_v40 = vpop.f32.mrb[3].mxu1 }
 0x147   : >> { %v1260_v41 = vrot.slane %v1259_v38, 4 }
 0x148   : >> { %1257 = vst [vmem:[%s1256_s13] sm:$0x3] %v1254_v37  ;;  %v1268_v42 = vsel %vm1258_vm2, %v1267_v39, 0.0 }
 0x149   : >> { %v1261_v43 = vadd.f32 %v1260_v41, %v1259_v38  ;;  %v1269_v44 = vrot.slane %v1268_v42, 4 }
 0x14b   : >> { %v1262_v45 = vrot.slane %v1261_v43, 2  ;;  %v1270_v46 = vadd.f32 %v1269_v44, %v1268_v42 }
 0x14d   : >> { %v1263_v47 = vadd.f32 %v1262_v45, %v1261_v43  ;;  %v1271_v48 = vrot.slane %v1270_v46, 2 }
 0x14f   : >> { %v1264_v49 = vrot.slane %v1263_v47, 1  ;;  %v1272_v50 = vadd.f32 %v1271_v48, %v1270_v46 }
 0x151   : >> { %v1265_v51 = vadd.f32 %v1264_v49, %v1263_v47  ;;  %v1273_v52 = vrot.slane %v1272_v50, 1  ;;  %149 = sbr.rel (!%p147_p4) target bundleno = 17 (0x11), region = 93 }
 0x153   : >> { %v1266_v53 = vadd.f32 %v1886_v1, %v1265_v51   ;;  %v1274_v54 = vadd.f32 %v1273_v52, %v1272_v50 }
 0x155   : >> { %v1275_v55 = vadd.f32 %v1882_v0, %v1274_v54   ;;  %v2161_v1 = vmov %v1266_v53  ;;  %v1276_v56 = vmul.f32 (%p147_p4), 0.0625, %v1266_v53 }
 0x157   : >> { %v2160_v0 = vmov %v1275_v55  ;;  %v1277_v57 = vmul.f32 (%p147_p4), 0.0625, %v1275_v55  ;;  %v1278_v58 = vmul.f32 (%p147_p4), %v1276_v56, %v1276_v56 }
 0x159   : > { %v1279_v59 = vsub.f32 %v1277_v57, %v1278_v58 }
 0x15b   : > { %v1280_v60 = vmax.f32 %v1279_v59, 0.0 }
 0x15d   : > { %v1281_v61 = vadd.f32 1e-05, %v1280_v60 }
 0x15f   : > { %1854 = vrsqrt.f32 %v1281_v61 }
 0x169   : > { %v1855_v1 = vpop.eup %1854 }
 0x16a LB: >> { %s1530_s16 = sshll.u32 %s1894_s14, 1  ;;  %s1288_s14 = sadd.s32 1, %s1894_s14   ;;  %s1894_s14 = sphi %s1892_s14, %s1288_s14  }
 0x16b   : >> { %s1290_s17 = scalar_lea.vmem %s1924_s15, %s1530_s16  ;;  %p1285_p5 = scmp.ge.s32.totalorder %s1288_s14, 4  }
 0x16c   : >> { %v1291_v62 = vld [vmem:[%s1290_s17] sm:$0x3] }
 0x16d   : >> { %v1292_v63 = vunpack.c.l.bf16 %v1291_v62 }
 0x16f   : >> { %v1293_v2 = vsub.f32 %v1292_v63, %v1276_v56 }
 0x171   : >> { %v1294_v4 = vmul.f32 %v1855_v1, %v1293_v2 }
 0x173   : >> { %v1295_v5 = vmul.f32 0.2, %v1294_v4  ;;  %1287 = sbr.rel (!%p1285_p5) target bundleno = 362 (0x16a), region = 104 }
 0x175   : >> { %v1296_v0 = vmax.f32 %v1294_v4, %v1295_v5 }
 0x177   : >> { %v1297_v6 = vpack.c.bf16 %v1296_v0, %v1296_v0 }
 0x179   : >> { %1298 = vst [vmem:[%s1290_s17] sm:$0x3] %v1297_v6 }
 0x17a PF: > { %s12_s9 = sadd.s32 1, %s1878_s9  }
 0x17b   : > { %p9_p6 = scmp.ge.s32.totalorder %s12_s9, 4  }
 0x17d   :  { %11 = sbr.rel (!%p9_p6) target bundleno = 1 (0x1), region = 115 }

// kernel: nlayer_discriminator_forward.9
= control target key start
LH: loop header
LB: loop body
LE: loop exit
PB: predicated region body
PF: predicated region fallthrough
CT: control target
= control target key end

     0   :  { %s2322_s12 = smov 0   ;;  %s2324_s13 = smov 0   ;;  %s2688_s0 = inlined_call_operand.vmem [shape: bf16[2,8,8,64], index: 0, kind: input, shape index: {}]   ;;  %s2689_s1 = inlined_call_operand.vmem [shape: bf16[16,64,128], index: 1, kind: input, shape index: {}]   ;;  %s2690_s2 = inlined_call_operand.vmem [shape: f32[1,128], index: 2, kind: input, shape index: {}]   ;;  %s2691_s3 = inlined_call_operand.vmem [shape: f32[2,5,5,128], index: 3, kind: output, shape index: {}]  }
   0x1   :  { %s2326_s14 = smov 0  }
   0x2 LB: > { %s25_s15 = sadd.s32 1, %s2290_s13  ;;  %p1662_p0 = scmp.ge.s32.totalorder %s2294_s14, 1  ;;  %s2294_s14 = sphi %s2326_s14, %s13_s14   ;;  %s2290_s13 = sphi %s2324_s13, %s2693_s13   ;;  %s2286_s12 = sphi %s2322_s12, %s2692_s12  }
   0x3   : > { %p27_p1 = scmp.ge.s32.totalorder %s25_s15, 2  ;;  %p151_p2 = scmp.lt.s32.totalorder %s2294_s14, 3 }
   0x5   : > { %s2695_s15 = smov (%p27_p1, %s25_s15), 0  ;;  %p152_p3 = pnand %p1662_p0, %p151_p2 }
   0x6   : > { %p179_p4 = scmp.lt.s32.totalorder (!%p152_p3), %s2286_s12, 1  ;;  %s2350_s24 = smov (!%p152_p3), 0  }
   0x7   : > { %155 = sbr.rel (%p152_p3) target bundleno = 366 (0x16e), region = 32 }
   0xe   : > { %s2697_s12 = smov (!%p179_p4, %s2286_s12), 1 }
   0xf   : > { %s1888_s16 = sshll.u32 %s2697_s12, 5  ;;  %s2161_s17 = smul.u32 40, %s2697_s12 }
  0x10   : > { %s2343_s20 = scalar_lea.vmem %s2688_s0, %s1888_s16 }
  0x11   : > { %s2348_s23 = scalar_lea.vmem %s2691_s3, %s2161_s17 }
  0x12 LB: >> { %v2196_v0 = vld [vmem:[%s2689_s1 + $0x20] sm:$0xff]   ;;  %v2300_v1 = vmov 0.0   ;;  %v2198_v3 = vld [vmem:[%s2689_s1 + $0x28] sm:$0xff]   ;;  %vm2301_vm0 = vmmov 0   ;;  %s1666_s4 = sshll.u32 %s2298_s24, 2  ;;  %v2200_v5 = vld [vmem:[%s2689_s1 + $0x30] sm:$0xff]   ;;  %s2298_s24 = sphi %s2350_s24, %s201_s24  }
  0x13   : >> { %1969 = vmatprep.subr.bf16.mxu0 %v2300_v1  ;;  %1981 = vmatprep.subr.bf16.mxu1 %v2300_v1  ;;  %v2197_v2 = vld [vmem:[%s2689_s1] sm:$0xff]   ;;  %v2199_v4 = vld [vmem:[%s2689_s1 + $0x8] sm:$0xff]   ;;  %s2377_s7 = scalar_lea.vmem %s2343_s20, %s1666_s4  ;;  %v2201_v6 = vld [vmem:[%s2689_s1 + $0x10] sm:$0xff]   ;;  %vm257_vm1 = vcmask 523264   ;;  %s1885_s6 = sshll.u32 %s2298_s24, 3 }
  0x14   : >> { %1970 = vmatpush3.bf16.msra.mxu0 %v2196_v0  ;;  %1977 = vmatprep.mubr.msk.bf16.mxu0 %vm2301_vm0, %v2300_v1  ;;  %v205_v7 = vld [vmem:[%s2377_s7] sm:$0x7]  ;;  %v2202_v9 = vld [vmem:[%s2689_s1 + $0x38] sm:$0xff]   ;;  %v2207_v17 = vld [vmem:[%s2689_s1 + $0x48] sm:$0xff]   ;;  %s1549_s10 = scalar_lea.vmem %s2348_s23, %s1885_s6  ;;  %s201_s24 = sadd.s32 1, %s2298_s24  }
  0x15   : >> { %1982 = vmatpush3.bf16.msra.mxu1 %v2197_v2  ;;  %1971 = vmatprep.subr.bf16.mxu0 %v2300_v1  ;;  %v1675_v8 = vcombine.low %v205_v7, %v205_v7  ;;  %v2203_v10 = vld [vmem:[%s2689_s1 + $0x18] sm:$0xff]   ;;  %v2205_v14 = vld [vmem:[%s2689_s1 + $0x40] sm:$0xff]   ;;  %v2208_v18 = vld [vmem:[%s2689_s1 + $0x68] sm:$0xff]   ;;  %p198_p5 = scmp.ge.s32.totalorder %s201_s24, 5  }
  0x16   : >> { %1983 = vmatprep.subr.bf16.mxu1 %v2300_v1  ;;  %1989 = vmatprep.mubr.msk.bf16.mxu1 %vm2301_vm0, %v2300_v1  ;;  %v2206_v16 = vld [vmem:[%s2689_s1 + $0x60] sm:$0xff]   ;;  %v2209_v20 = vld [vmem:[%s2689_s1 + $0x50] sm:$0xff]   ;;  %v2211_v24 = vld [vmem:[%s2689_s1 + $0x58] sm:$0xff]  }
  0x17   : >> { %v227_v11 = vshrl.u32 %v1675_v8, 16  ;;  %v229_v12 = vshll.u32 %v1675_v8, 16  ;;  %v2213_v19 = vld [vmem:[%s2377_s7] ss:$0 sps:$4 sm:$0xee]   ;;  %v2210_v23 = vld [vmem:[%s2689_s1 + $0x70] sm:$0xff]  }
  0x18   : >> { %1972 = vmatpush3.bf16.msra.mxu0 %v2198_v3  ;;  %v460_v21 = vshrl.u32 %v2213_v19, 16  ;;  %v463_v22 = vshll.u32 %v2213_v19, 16  ;;  %v2212_v27 = vld [vmem:[%s2689_s1 + $0x78] sm:$0xff]   ;;  %v381_v28 = vrot.slane %v2213_v19, 1  ;;  %v2214_v29 = vld [vmem:[%s2689_s1 + $0x80] sm:$0xff]   ;;  %v2216_v33 = vld [vmem:[%s2689_s1 + $0x88] sm:$0xff]  }
  0x19   : >> { %1984 = vmatpush3.bf16.msra.mxu1 %v2199_v4  ;;  %1973 = vmatprep.subr.bf16.mxu0 %v2300_v1  ;;  %v231_v13 = vrot.slane %v229_v12, 1  ;;  %v2215_v31 = vld [vmem:[%s2689_s1 + $0xa0] sm:$0xff]   ;;  %v2217_v34 = vld [vmem:[%s2689_s1 + $0xa8] sm:$0xff]   ;;  %v2218_v36 = vld [vmem:[%s2689_s1 + $0x90] sm:$0xff]  }
  0x1a   : >> { %1985 = vmatprep.subr.bf16.mxu1 %v2300_v1  ;;  %v462_v25 = vrot.slane %v460_v21, 1  ;;  %v465_v26 = vrot.slane %v463_v22, 2  ;;  %v1714_v32 = vld [vmem:[%s2377_s7 + $0x4] sm:$0x7]  ;;  %v2219_v37 = vld [vmem:[%s2689_s1 + $0xb0] sm:$0xff]   ;;  %v2220_v39 = vld [vmem:[%s2689_s1 + $0x98] sm:$0xff]  }
  0x1b   : >> { %v232_v15 = vor.u32 %v231_v13, %v227_v11  ;;  %v1736_v35 = vcombine.low %v1714_v32, %v1714_v32  ;;  %v2221_v42 = vld [vmem:[%s2689_s1 + $0xb8] sm:$0xff]   ;;  %v2223_v44 = vld [vmem:[%s2689_s1 + $0xc0] sm:$0xff]   ;;  %v2225_v47 = vld [vmem:[%s2689_s1 + $0xc8] sm:$0xff]  }
  0x1c   : >> { %1974 = vmatpush3.bf16.msra.mxu0 %v2200_v5  ;;  %v466_v30 = vor.u32 %v465_v26, %v462_v25  ;;  %v2224_v45 = vld [vmem:[%s2689_s1 + $0xe0] sm:$0xff]   ;;  %v2226_v48 = vld [vmem:[%s2689_s1 + $0xe8] sm:$0xff]   ;;  %v2227_v49 = vld [vmem:[%s2689_s1 + $0xd0] sm:$0xff]  }
  0x1d   : >> { %1986 = vmatpush3.bf16.msra.mxu1 %v2201_v6  ;;  %1975 = vmatprep.subr.bf16.mxu0 %v2300_v1  ;;  %v631_v38 = vshll.u32 %v1736_v35, 16  ;;  %v629_v40 = vshrl.u32 %v1736_v35, 16  ;;  %v2231_v46 = vld [vmem:[%s2377_s7 + $0x4] ss:$0 sps:$4 sm:$0xee]   ;;  %v2228_v52 = vld [vmem:[%s2689_s1 + $0xf0] sm:$0xff]  }
  0x1e   : >> { %1987 = vmatprep.subr.bf16.mxu1 %v2300_v1  ;;  %v795_v50 = vshrl.u32 %v2231_v46, 16  ;;  %v798_v51 = vshll.u32 %v2231_v46, 16  ;;  %v2229_v53 = vld [vmem:[%s2689_s1 + $0xd8] sm:$0xff]   ;;  %v716_v57 = vrot.slane %v2231_v46, 1  ;;  %v2232_v59 = vld [vmem:[%s2689_s1 + $0x100] sm:$0xff]   ;;  %v2234_v62 = vld [vmem:[%s2689_s1 + $0x108] sm:$0xff]  }
  0x1f   : >> { %v633_v41 = vrot.slane %v631_v38, 1  ;;  %v2230_v56 = vld [vmem:[%s2689_s1 + $0xf8] sm:$0xff]   ;;  %v2233_v60 = vld [vmem:[%s2689_s1 + $0x120] sm:$0xff]   ;;  %v1771_v61 = vld [vmem:[%s2377_s7 + $0x8] sm:$0x7] }
  0x20   : >> { %1976 = vmatpush3.bf16.msra.mxu0 %v2202_v9  ;;  %v797_v54 = vrot.slane %v795_v50, 1  ;;  %v800_v55 = vrot.slane %v798_v51, 2  ;;  %v1793_v63 = vcombine.low %v1771_v61, %v1771_v61  ;;  %v2235_v0 = vld [vmem:[%s2689_s1 + $0x128] sm:$0xff]   ;;  %v2236_v2 = vld [vmem:[%s2689_s1 + $0x110] sm:$0xff]   ;;  %v2238_v5 = vld [vmem:[%s2689_s1 + $0x118] sm:$0xff]  }
  0x21   : >> { %1988 = vmatpush3.bf16.msra.mxu1 %v2203_v10  ;;  %1993 = vmatprep.subr.bf16.mxu0 %v2300_v1  ;;  %v634_v43 = vor.u32 %v633_v41, %v629_v40  ;;  %v2237_v4 = vld [vmem:[%s2689_s1 + $0x130] sm:$0xff]   ;;  %v2239_v8 = vld [vmem:[%s2689_s1 + $0x138] sm:$0xff]   ;;  %v2241_v10 = vld [vmem:[%s2689_s1 + $0x140] sm:$0xff]  }
  0x22   : >> { %2005 = vmatprep.subr.bf16.mxu1 %v2300_v1  ;;  %v801_v58 = vor.u32 %v800_v55, %v797_v54  ;;  %v966_v3 = vshll.u32 %v1793_v63, 16  ;;  %v964_v6 = vshrl.u32 %v1793_v63, 16  ;;  %v2242_v11 = vld [vmem:[%s2689_s1 + $0x160] sm:$0xff]   ;;  %v2243_v12 = vld [vmem:[%s2689_s1 + $0x148] sm:$0xff]   ;;  %v2247_v19 = vld [vmem:[%s2689_s1 + $0x158] sm:$0xff]  }
  0x23   : >> { %1978 = vmatmul.mubr.msk.bf16.vlgmr.msra.gmra.mrb[0].mxu0 %vm257_vm1, %v232_v15  ;;  %v2249_v13 = vld [vmem:[%s2377_s7 + $0x8] ss:$0 sps:$4 sm:$0xee]   ;;  %v2245_v15 = vld [vmem:[%s2689_s1 + $0x150] sm:$0xff]   ;;  %v2248_v22 = vld [vmem:[%s2689_s1 + $0x178] sm:$0xff]  }
  0x24   : >> { %1990 = vmatmul.mubr.msk.bf16.vlgmr.msra.gmra.mrb[0].mxu1 %vm257_vm1, %v205_v7  ;;  %1994 = vmatpush3.bf16.msra.mxu0 %v2205_v14  ;;  %v968_v7 = vrot.slane %v966_v3, 1  ;;  %v2244_v14 = vld [vmem:[%s2689_s1 + $0x168] sm:$0xff]   ;;  %v2250_v25 = vld [vmem:[%s2689_s1 + $0x180] sm:$0xff]   ;;  %v2266_v51 = vld [vmem:[%s2689_s1 + $0x1f8] sm:$0xff]  }
  0x25   : >> { %2006 = vmatpush3.bf16.msra.mxu1 %v2206_v16  ;;  %1995 = vmatprep.subr.bf16.mxu0 %v2300_v1  ;;  %v1130_v16 = vshrl.u32 %v2249_v13, 16  ;;  %v2251_v26 = vld [vmem:[%s2689_s1 + $0x1a0] sm:$0xff]   ;;  %v2261_v41 = vld [vmem:[%s2689_s1 + $0x1c8] sm:$0xff]  }
  0x26   : >> { %2007 = vmatprep.subr.bf16.mxu1 %v2300_v1  ;;  %2001 = vmatprep.mubr.msk.bf16.mxu0 %vm2301_vm0, %v2300_v1  ;;  %v969_v9 = vor.u32 %v968_v7, %v964_v6  ;;  %v2260_v40 = vld [vmem:[%s2689_s1 + $0x1e0] sm:$0xff]  }
  0x27   : >> { %2013 = vmatprep.mubr.msk.bf16.mxu1 %vm2301_vm0, %v2300_v1 }
  0x28   : >> { %1996 = vmatpush3.bf16.msra.mxu0 %v2207_v17  ;;  %v1133_v17 = vshll.u32 %v2249_v13, 16 }
  0x29   : >> { %2008 = vmatpush3.bf16.msra.mxu1 %v2208_v18  ;;  %1997 = vmatprep.subr.bf16.mxu0 %v2300_v1  ;;  %v2246_v18 = vld [vmem:[%s2689_s1 + $0x170] sm:$0xff]  }
  0x2a   : >> { %2009 = vmatprep.subr.bf16.mxu1 %v2300_v1  ;;  %v1135_v21 = vrot.slane %v1133_v17, 2 }
  0x2c   : >> { %1998 = vmatpush3.bf16.msra.mxu0 %v2209_v20  ;;  %v1132_v20 = vrot.slane %v1130_v16, 1 }
  0x2d   : >> { %2010 = vmatpush3.bf16.msra.mxu1 %v2210_v23  ;;  %1999 = vmatprep.subr.bf16.mxu0 %v2300_v1  ;;  %v1051_v23 = vrot.slane %v2249_v13, 1 }
  0x2e   : >> { %2011 = vmatprep.subr.bf16.mxu1 %v2300_v1 }
  0x30   : >> { %2000 = vmatpush3.bf16.msra.mxu0 %v2211_v24  ;;  %v1136_v24 = vor.u32 %v1135_v21, %v1132_v20 }
  0x31   : >> { %2012 = vmatpush3.bf16.msra.mxu1 %v2212_v27  ;;  %2017 = vmatprep.subr.bf16.mxu0 %v2300_v1  ;;  %v1828_v27 = vld [vmem:[%s2377_s7 + $0xc] sm:$0x7] }
  0x32   : >> { %2029 = vmatprep.subr.bf16.mxu1 %v2300_v1 }
  0x33   : >> { %2002 = vmatmul.mubr.msk.bf16.vlgmr.msra.gmra.mrb[4].mxu0 %vm257_vm1, %v381_v28  ;;  %v2252_v28 = vld [vmem:[%s2689_s1 + $0x188] sm:$0xff]  }
  0x34   : >> { %2014 = vmatmul.mubr.msk.bf16.vlgmr.msra.gmra.mrb[4].mxu1 %vm257_vm1, %v466_v30  ;;  %2018 = vmatpush3.bf16.msra.mxu0 %v2214_v29  ;;  %v1850_v29 = vcombine.low %v1828_v27, %v1828_v27  ;;  %v2253_v30 = vld [vmem:[%s2689_s1 + $0x1a8] sm:$0xff]  }
  0x35   : >> { %2030 = vmatpush3.bf16.msra.mxu1 %v2215_v31  ;;  %2019 = vmatprep.subr.bf16.mxu0 %v2300_v1  ;;  %v2254_v31 = vld [vmem:[%s2689_s1 + $0x190] sm:$0xff]  }
  0x36   : >> { %2031 = vmatprep.subr.bf16.mxu1 %v2300_v1  ;;  %2025 = vmatprep.mubr.msk.bf16.mxu0 %vm2301_vm0, %v2300_v1  ;;  %v1299_v35 = vshrl.u32 %v1850_v29, 16 }
  0x37   : >> { %2037 = vmatprep.mubr.msk.bf16.mxu1 %vm2301_vm0, %v2300_v1 }
  0x38   : >> { %2020 = vmatpush3.bf16.msra.mxu0 %v2216_v33  ;;  %v2255_v33 = vld [vmem:[%s2689_s1 + $0x1b0] sm:$0xff]  }
  0x39   : >> { %2032 = vmatpush3.bf16.msra.mxu1 %v2217_v34  ;;  %2021 = vmatprep.subr.bf16.mxu0 %v2300_v1  ;;  %v2256_v34 = vld [vmem:[%s2689_s1 + $0x198] sm:$0xff]  }
  0x3a   : >> { %2033 = vmatprep.subr.bf16.mxu1 %v2300_v1 }
  0x3c   : >> { %2022 = vmatpush3.bf16.msra.mxu0 %v2218_v36 }
  0x3d   : >> { %2034 = vmatpush3.bf16.msra.mxu1 %v2219_v37  ;;  %2023 = vmatprep.subr.bf16.mxu0 %v2300_v1  ;;  %v2257_v37 = vld [vmem:[%s2689_s1 + $0x1b8] sm:$0xff]  }
  0x3e   : >> { %2035 = vmatprep.subr.bf16.mxu1 %v2300_v1 }
  0x40   : >> { %2024 = vmatpush3.bf16.msra.mxu0 %v2220_v39  ;;  %v2259_v39 = vld [vmem:[%s2689_s1 + $0x1c0] sm:$0xff]  }
  0x41   : >> { %2036 = vmatpush3.bf16.msra.mxu1 %v2221_v42  ;;  %2041 = vmatprep.subr.bf16.mxu0 %v2300_v1  ;;  %v2267_v42 = vld [vmem:[%s2377_s7 + $0xc] ss:$0 sps:$4 sm:$0xee]  }
  0x42   : >> { %2053 = vmatprep.subr.bf16.mxu1 %v2300_v1  ;;  %v1468_v46 = vshll.u32 %v2267_v42, 16 }
  0x43   : >> { %2026 = vmatmul.mubr.msk.bf16.vlgmr.msra.gmra.mrb[8].mxu0 %vm257_vm1, %v1714_v32  ;;  %v1301_v32 = vshll.u32 %v1850_v29, 16 }
  0x44   : >> { %2038 = vmatmul.mubr.msk.bf16.vlgmr.msra.gmra.mrb[8].mxu1 %vm257_vm1, %v634_v43  ;;  %2042 = vmatpush3.bf16.msra.mxu0 %v2223_v44  ;;  %v2262_v43 = vld [vmem:[%s2689_s1 + $0x1e8] sm:$0xff]   ;;  %v2263_v44 = vld [vmem:[%s2689_s1 + $0x1d0] sm:$0xff]   ;;  %v1470_v50 = vrot.slane %v1468_v46, 2 }
  0x45   : >> { %2054 = vmatpush3.bf16.msra.mxu1 %v2224_v45  ;;  %2043 = vmatprep.subr.bf16.mxu0 %v2300_v1  ;;  %v1303_v36 = vrot.slane %v1301_v32, 1  ;;  %v1465_v45 = vshrl.u32 %v2267_v42, 16 }
  0x46   : >> { %2055 = vmatprep.subr.bf16.mxu1 %v2300_v1  ;;  %2049 = vmatprep.mubr.msk.bf16.mxu0 %vm2301_vm0, %v2300_v1 }
  0x47   : >> { %2061 = vmatprep.mubr.msk.bf16.mxu1 %vm2301_vm0, %v2300_v1  ;;  %v1304_v38 = vor.u32 %v1303_v36, %v1299_v35 }
  0x48   : >> { %2044 = vmatpush3.bf16.msra.mxu0 %v2225_v47  ;;  %v2264_v47 = vld [vmem:[%s2689_s1 + $0x1f0] sm:$0xff]  }
  0x49   : >> { %2056 = vmatpush3.bf16.msra.mxu1 %v2226_v48  ;;  %2045 = vmatprep.subr.bf16.mxu0 %v2300_v1  ;;  %v2265_v48 = vld [vmem:[%s2689_s1 + $0x1d8] sm:$0xff]  }
  0x4a   : >> { %2057 = vmatprep.subr.bf16.mxu1 %v2300_v1 }
  0x4c   : >> { %2046 = vmatpush3.bf16.msra.mxu0 %v2227_v49  ;;  %v1467_v49 = vrot.slane %v1465_v45, 1 }
  0x4d   : >> { %2058 = vmatpush3.bf16.msra.mxu1 %v2228_v52  ;;  %2047 = vmatprep.subr.bf16.mxu0 %v2300_v1  ;;  %v1386_v52 = vrot.slane %v2267_v42, 1 }
  0x4e   : >> { %2059 = vmatprep.subr.bf16.mxu1 %v2300_v1 }
  0x50   : >> { %2048 = vmatpush3.bf16.msra.mxu0 %v2229_v53  ;;  %v1471_v53 = vor.u32 %v1470_v50, %v1467_v49 }
  0x51   : >> { %2060 = vmatpush3.bf16.msra.mxu1 %v2230_v56  ;;  %2065 = vmatprep.subr.bf16.mxu0 %v2300_v1 }
  0x52   : >> { %2077 = vmatprep.subr.bf16.mxu1 %v2300_v1 }
  0x53   : >> { %2050 = vmatmul.mubr.msk.bf16.vlgmr.msra.gmra.mrb[12].mxu0 %vm257_vm1, %v716_v57 }
  0x54   : >> { %2062 = vmatmul.mubr.msk.bf16.vlgmr.msra.gmra.mrb[12].mxu1 %vm257_vm1, %v801_v58  ;;  %2066 = vmatpush3.bf16.msra.mxu0 %v2232_v59 }
  0x55   : >> { %2078 = vmatpush3.bf16.msra.mxu1 %v2233_v60  ;;  %2067 = vmatprep.subr.bf16.mxu0 %v2300_v1 }
  0x56   : >> { %2079 = vmatprep.subr.bf16.mxu1 %v2300_v1  ;;  %2073 = vmatprep.mubr.msk.bf16.mxu0 %vm2301_vm0, %v2300_v1 }
  0x57   : >> { %2085 = vmatprep.mubr.msk.bf16.mxu1 %vm2301_vm0, %v2300_v1 }
  0x58   : >> { %2068 = vmatpush3.bf16.msra.mxu0 %v2234_v62 }
  0x59   : >> { %2080 = vmatpush3.bf16.msra.mxu1 %v2235_v0  ;;  %2069 = vmatprep.subr.bf16.mxu0 %v2300_v1 }
  0x5a   : >> { %2081 = vmatprep.subr.bf16.mxu1 %v2300_v1 }
  0x5c   : >> { %2070 = vmatpush3.bf16.msra.mxu0 %v2236_v2 }
  0x5d   : >> { %2082 = vmatpush3.bf16.msra.mxu1 %v2237_v4  ;;  %2071 = vmatprep.subr.bf16.mxu0 %v2300_v1 }
  0x5e   : >> { %2083 = vmatprep.subr.bf16.mxu1 %v2300_v1 }
  0x60   : >> { %2072 = vmatpush3.bf16.msra.mxu0 %v2238_v5 }
  0x61   : >> { %2084 = vmatpush3.bf16.msra.mxu1 %v2239_v8  ;;  %2089 = vmatprep.subr.bf16.mxu0 %v2300_v1 }
  0x62   : >> { %2101 = vmatprep.subr.bf16.mxu1 %v2300_v1 }
  0x63   : >> { %2074 = vmatmul.mubr.msk.bf16.vlgmr.msra.gmra.mrb[16].mxu0 %vm257_vm1, %v1771_v61 }
  0x64   : >> { %2086 = vmatmul.mubr.msk.bf16.vlgmr.msra.gmra.mrb[16].mxu1 %vm257_vm1, %v969_v9  ;;  %2090 = vmatpush3.bf16.msra.mxu0 %v2241_v10 }
  0x65   : >> { %2102 = vmatpush3.bf16.msra.mxu1 %v2242_v11  ;;  %2091 = vmatprep.subr.bf16.mxu0 %v2300_v1 }
  0x66   : >> { %2103 = vmatprep.subr.bf16.mxu1 %v2300_v1  ;;  %2097 = vmatprep.mubr.msk.bf16.mxu0 %vm2301_vm0, %v2300_v1 }
  0x67   : >> { %2109 = vmatprep.mubr.msk.bf16.mxu1 %vm2301_vm0, %v2300_v1 }
  0x68   : >> { %2092 = vmatpush3.bf16.msra.mxu0 %v2243_v12 }
  0x69   : >> { %2104 = vmatpush3.bf16.msra.mxu1 %v2244_v14  ;;  %2093 = vmatprep.subr.bf16.mxu0 %v2300_v1 }
  0x6a   : >> { %2105 = vmatprep.subr.bf16.mxu1 %v2300_v1 }
  0x6c   : >> { %2094 = vmatpush3.bf16.msra.mxu0 %v2245_v15 }
  0x6d   : >> { %2106 = vmatpush3.bf16.msra.mxu1 %v2246_v18  ;;  %2095 = vmatprep.subr.bf16.mxu0 %v2300_v1 }
  0x6e   : >> { %2107 = vmatprep.subr.bf16.mxu1 %v2300_v1 }
  0x70   : >> { %2096 = vmatpush3.bf16.msra.mxu0 %v2247_v19 }
  0x71   : >> { %2108 = vmatpush3.bf16.msra.mxu1 %v2248_v22  ;;  %2113 = vmatprep.subr.bf16.mxu0 %v2300_v1 }
  0x72   : >> { %2125 = vmatprep.subr.bf16.mxu1 %v2300_v1 }
  0x73   : >> { %2098 = vmatmul.mubr.msk.bf16.vlgmr.msra.gmra.mrb[20].mxu0 %vm257_vm1, %v1051_v23 }
  0x74   : >> { %2110 = vmatmul.mubr.msk.bf16.vlgmr.msra.gmra.mrb[20].mxu1 %vm257_vm1, %v1136_v24  ;;  %2114 = vmatpush3.bf16.msra.mxu0 %v2250_v25 }
  0x75   : >> { %2126 = vmatpush3.bf16.msra.mxu1 %v2251_v26  ;;  %2115 = vmatprep.subr.bf16.mxu0 %v2300_v1 }
  0x76   : >> { %2127 = vmatprep.subr.bf16.mxu1 %v2300_v1  ;;  %2121 = vmatprep.mubr.msk.bf16.mxu0 %vm2301_vm0, %v2300_v1 }
  0x77   : >> { %2133 = vmatprep.mubr.msk.bf16.mxu1 %vm2301_vm0, %v2300_v1 }
  0x78   : >> { %2116 = vmatpush3.bf16.msra.mxu0 %v2252_v28 }
  0x79   : >> { %2128 = vmatpush3.bf16.msra.mxu1 %v2253_v30  ;;  %2117 = vmatprep.subr.bf16.mxu0 %v2300_v1 }
  0x7a   : >> { %2129 = vmatprep.subr.bf16.mxu1 %v2300_v1 }
  0x7c   : >> { %2118 = vmatpush3.bf16.msra.mxu0 %v2254_v31 }
  0x7d   : >> { %2130 = vmatpush3.bf16.msra.mxu1 %v2255_v33  ;;  %2119 = vmatprep.subr.bf16.mxu0 %v2300_v1 }
  0x7e   : >> { %2131 = vmatprep.subr.bf16.mxu1 %v2300_v1 }
  0x80   : >> { %2120 = vmatpush3.bf16.msra.mxu0 %v2256_v34 }
  0x81   : >> { %2132 = vmatpush3.bf16.msra.mxu1 %v2257_v37  ;;  %2137 = vmatprep.subr.bf16.mxu0 %v2300_v1 }
  0x82   : >> { %2149 = vmatprep.subr.bf16.mxu1 %v2300_v1 }
  0x83   : >> { %2122 = vmatmul.mubr.msk.bf16.vlgmr.msra.gmra.mrb[24].mxu0 %vm257_vm1, %v1828_v27 }
  0x84   : >> { %2134 = vmatmul.mubr.msk.bf16.vlgmr.msra.gmra.mrb[24].mxu1 %vm257_vm1, %v1304_v38  ;;  %2138 = vmatpush3.bf16.msra.mxu0 %v2259_v39 }
  0x85   : >> { %2150 = vmatpush3.bf16.msra.mxu1 %v2260_v40  ;;  %2139 = vmatprep.subr.bf16.mxu0 %v2300_v1 }
  0x86   : >> { %2151 = vmatprep.subr.bf16.mxu1 %v2300_v1  ;;  %2145 = vmatprep.mubr.msk.bf16.mxu0 %vm2301_vm0, %v2300_v1 }
  0x87   : >> { %2157 = vmatprep.mubr.msk.bf16.mxu1 %vm2301_vm0, %v2300_v1 }
  0x88   : >> { %2140 = vmatpush3.bf16.msra.mxu0 %v2261_v41 }
  0x89   : >> { %2152 = vmatpush3.bf16.msra.mxu1 %v2262_v43  ;;  %2141 = vmatprep.subr.bf16.mxu0 %v2300_v1 }
  0x8a   : >> { %2153 = vmatprep.subr.bf16.mxu1 %v2300_v1 }
  0x8c   : >> { %2142 = vmatpush3.bf16.msra.mxu0 %v2263_v44 }
  0x8d   : >> { %2154 = vmatpush3.bf16.msra.mxu1 %v2264_v47  ;;  %2143 = vmatprep.subr.bf16.mxu0 %v2300_v1 }
  0x8e   : >> { %2155 = vmatprep.subr.bf16.mxu1 %v2300_v1 }
  0x90   : >> { %2144 = vmatpush3.bf16.msra.mxu0 %v2265_v48 }
  0x91   : >> { %2156 = vmatpush3.bf16.msra.mxu1 %v2266_v51 }
  0x93   : >> { %2146 = vmatmul.mubr.msk.bf16.vlgmr.msra.gmra.mrb[28].mxu0 %vm257_vm1, %v1386_v52 }
  0x94   : >> { %2158 = vmatmul.mubr.msk.bf16.vlgmr.msra.gmra.mrb[28].mxu1 %vm257_vm1, %v1471_v53 }
  0xf6   : >> { %v295_v54 = vpop.f32.mrb[0].mxu0 }
  0xf7   : >> { %v362_v55 = vpop.f32.mrb[0].mxu1  ;;  %v1979_v56 = vpop.f32.mrb[1].mxu0 }
  0xf8   : >> { %v363_v57 = vadd.f32 %v362_v55, %v295_v54  ;;  %v1991_v58 = vpop.f32.mrb[1].mxu1  ;;  %v298_v59 = vpop.f32.mrb[2].mxu0 }
  0xf9   : >> { %v365_v60 = vpop.f32.mrb[2].mxu1  ;;  %v1980_v61 = vpop.f32.mrb[3].mxu0 }
  0xfa   : >> { %v1992_v62 = vpop.f32.mrb[3].mxu1 }
 0x106   : >> { %v443_v63 = vpop.f32.mrb[4].mxu0 }
 0x107   : >> { %v449_v0 = vadd.f32 %v443_v63, %v363_v57  ;;  %v528_v1 = vpop.f32.mrb[4].mxu1  ;;  %v2003_v2 = vpop.f32.mrb[5].mxu0  ;;  %v1884_v63 = vld [vmem:[%s2690_s2] ss:$0 sm:$0xff] }
 0x108   : >> { %v2015_v3 = vpop.f32.mrb[5].mxu1  ;;  %v446_v4 = vpop.f32.mrb[6].mxu0 }
 0x109   : >> { %v534_v5 = vadd.f32 %v528_v1, %v449_v0  ;;  %v531_v6 = vpop.f32.mrb[6].mxu1  ;;  %v2004_v7 = vpop.f32.mrb[7].mxu0 }
 0x10a   : >> { %v2016_v8 = vpop.f32.mrb[7].mxu1 }
 0x116   : >> { %v609_v9 = vpop.f32.mrb[8].mxu0 }
 0x117   : >> { %v615_v10 = vadd.f32 %v609_v9, %v534_v5  ;;  %v696_v11 = vpop.f32.mrb[8].mxu1  ;;  %v2027_v12 = vpop.f32.mrb[9].mxu0 }
 0x118   : >> { %v2039_v13 = vpop.f32.mrb[9].mxu1  ;;  %v612_v14 = vpop.f32.mrb[10].mxu0 }
 0x119   : >> { %v702_v15 = vadd.f32 %v696_v11, %v615_v10  ;;  %v699_v16 = vpop.f32.mrb[10].mxu1  ;;  %v2028_v17 = vpop.f32.mrb[11].mxu0 }
 0x11a   : >> { %v2040_v18 = vpop.f32.mrb[11].mxu1 }
 0x126   : >> { %v778_v19 = vpop.f32.mrb[12].mxu0 }
 0x127   : >> { %v784_v20 = vadd.f32 %v778_v19, %v702_v15  ;;  %v863_v21 = vpop.f32.mrb[12].mxu1  ;;  %v2051_v22 = vpop.f32.mrb[13].mxu0 }
 0x128   : >> { %v2063_v23 = vpop.f32.mrb[13].mxu1  ;;  %v781_v24 = vpop.f32.mrb[14].mxu0 }
 0x129   : >> { %v869_v25 = vadd.f32 %v863_v21, %v784_v20  ;;  %v866_v26 = vpop.f32.mrb[14].mxu1  ;;  %v2052_v27 = vpop.f32.mrb[15].mxu0 }
 0x12a   : >> { %v2064_v28 = vpop.f32.mrb[15].mxu1 }
 0x136   : >> { %v944_v29 = vpop.f32.mrb[16].mxu0 }
 0x137   : >> { %v950_v30 = vadd.f32 %v944_v29, %v869_v25  ;;  %v1031_v31 = vpop.f32.mrb[16].mxu1  ;;  %v2075_v32 = vpop.f32.mrb[17].mxu0 }
 0x138   : >> { %v2087_v33 = vpop.f32.mrb[17].mxu1  ;;  %v947_v34 = vpop.f32.mrb[18].mxu0 }
 0x139   : >> { %v1037_v35 = vadd.f32 %v1031_v31, %v950_v30  ;;  %v1034_v36 = vpop.f32.mrb[18].mxu1  ;;  %v2076_v37 = vpop.f32.mrb[19].mxu0 }
 0x13a   : >> { %v2088_v38 = vpop.f32.mrb[19].mxu1 }
 0x146   : >> { %v1113_v39 = vpop.f32.mrb[20].mxu0 }
 0x147   : >> { %v1119_v40 = vadd.f32 %v1113_v39, %v1037_v35  ;;  %v1198_v41 = vpop.f32.mrb[20].mxu1  ;;  %v2099_v42 = vpop.f32.mrb[21].mxu0 }
 0x148   : >> { %v2111_v43 = vpop.f32.mrb[21].mxu1  ;;  %v1116_v44 = vpop.f32.mrb[22].mxu0 }
 0x149   : >> { %v1204_v45 = vadd.f32 %v1198_v41, %v1119_v40  ;;  %v1201_v46 = vpop.f32.mrb[22].mxu1  ;;  %v2100_v47 = vpop.f32.mrb[23].mxu0 }
 0x14a   : >> { %v2112_v48 = vpop.f32.mrb[23].mxu1 }
 0x156   : >> { %v1279_v49 = vpop.f32.mrb[24].mxu0 }
 0x157   : >> { %v1285_v50 = vadd.f32 %v1279_v49, %v1204_v45  ;;  %v1366_v51 = vpop.f32.mrb[24].mxu1  ;;  %v2123_v52 = vpop.f32.mrb[25].mxu0 }
 0x158   : >> { %v2135_v53 = vpop.f32.mrb[25].mxu1  ;;  %v1282_v54 = vpop.f32.mrb[26].mxu0 }
 0x159   : >> { %v1372_v55 = vadd.f32 %v1366_v51, %v1285_v50  ;;  %v1369_v56 = vpop.f32.mrb[26].mxu1  ;;  %v2124_v57 = vpop.f32.mrb[27].mxu0 }
 0x15a   : >> { %v2136_v58 = vpop.f32.mrb[27].mxu1 }
 0x166   : >> { %v1448_v59 = vpop.f32.mrb[28].mxu0 }
 0x167   : >> { %v1454_v60 = vadd.f32 %v1448_v59, %v1372_v55  ;;  %v1533_v61 = vpop.f32.mrb[28].mxu1  ;;  %v2147_v62 = vpop.f32.mrb[29].mxu0  ;;  %200 = sbr.rel (!%p198_p5) target bundleno = 18 (0x12), region = 89 }
 0x168   : >> { %v2159_v0 = vpop.f32.mrb[29].mxu1  ;;  %v1451_v1 = vpop.f32.mrb[30].mxu0 }
 0x169   : >> { %v1539_v2 = vadd.f32 %v1533_v61, %v1454_v60  ;;  %v1536_v3 = vpop.f32.mrb[30].mxu1  ;;  %v2148_v4 = vpop.f32.mrb[31].mxu0 }
 0x16a   : >> { %v2160_v5 = vpop.f32.mrb[31].mxu1 }
 0x16b   : >> { %v1547_v6 = vadd.f32 %v1884_v63, %v1539_v2 }
 0x16d   : >> { %1550 = vst [vmem:[%s1549_s10] sm:$0x1f] %v1547_v6 }
 0x16e PF: > { %s13_s14 = sadd.s32 1, %s2294_s14   ;;  %s2692_s12 = smov %s2290_s13 }
 0x16f   : > { %p10_p6 = scmp.ge.s32.totalorder %s13_s14, 4   ;;  %s2693_s13 = smov %s2695_s15 }
 0x171   :  { %12 = sbr.rel (!%p10_p6) target bundleno = 2 (0x2), region = 100 }

</bundles_post_ra>
